<compile_context>
chip_gen: v7x
topology: tpu7x:2x2x1
jax: 0.10.0
libtpu: 0.0.40
codegen_flags: <defaults>
</compile_context>

<pallas_src>
import jax
import jax.numpy as jnp
from jax import lax
from jax.experimental import pallas as pl
from jax.experimental.pallas import tpu as pltpu


def make_unroll_kernel(H, W, Cp, Lb, num_unrolls):
    # Flat-index lane shift of each of the 9 taps (dy, dx) relative to center.
    shifts = [(dy - 1) * W + (dx - 1) for dy in range(3) for dx in range(3)]

    def kernel(mask_ref, x_ref, w1_ref, b1_ref, w2_ref, b2_ref, lam_ref, o_ref):
        lam = lam_ref[0, 0]
        inv = 1.0 / (1.0 + lam)          # hoisted: prox becomes a multiply

        # Hoisted once per grid step: per-tap boundary masks (host precomputed,
        # per-image coordinates so they stay valid across the B-image lane
        # extent), bias broadcasts (JAX does not CSE broadcast_in_dim), and
        # bf16 per-tap weight matrices for the MXU.
        mask_rows = [mask_ref[pl.ds(k, 1), :] for k in range(9)]     # each (1, Lb)
        b1_full = jnp.broadcast_to(b1_ref[...], (Cp, Lb))
        b2_full = jnp.broadcast_to(b2_ref[...], (Cp, Lb))
        w1_bf = [w1_ref[k].astype(jnp.bfloat16) for k in range(9)]
        w2_bf = [w2_ref[k].astype(jnp.bfloat16) for k in range(9)]

        def conv3x3(a, w_bf, b_full):
            # a: (Cp, Lb) f32.  9 taps = 8 lane rolls (XLU) + masks, each fed to
            # a small bf16 MXU matmul accumulated in f32 vregs -- no im2col
            # scratch writes/reads.  Wrapped lanes (image boundaries, including
            # the boundary between adjacent images in the block) are masked to
            # zero, which realizes the 'SAME' zero padding.
            acc = jnp.dot(w_bf[4], a.astype(jnp.bfloat16),
                          preferred_element_type=jnp.float32)        # center tap
            for k, s in enumerate(shifts):
                if s == 0:
                    continue
                tap = pltpu.roll(a, (-s) % Lb, axis=1) * mask_rows[k]
                acc = acc + jnp.dot(w_bf[k], tap.astype(jnp.bfloat16),
                                    preferred_element_type=jnp.float32)
            return acc + b_full

        x = x_ref[...]                   # (Cp, Lb) f32
        y = x                            # data-consistency target ("data")

        # TODO(synk): module.get_metadata() / metadata_list is python-side
        # bookkeeping with no tensor semantics; not representable in Pallas.
        # num_unrolls is small here (3) so a static unroll is fine; switch to
        # lax.fori_loop with a modest unroll factor if it grows large.
        for _ in range(num_unrolls):
            h = jnp.maximum(conv3x3(x, w1_bf, b1_full), 0.0)   # denoiser, conv1+relu
            x = x + conv3x3(h, w2_bf, b2_full)                 # residual conv2
            x = (x + lam * y) * inv                            # proximal data consistency

        o_ref[...] = x.astype(o_ref.dtype)

    return kernel


def unroll_net_forward(x_nchw, w1_oihw, b1, w2_oihw, b2, lam, num_unrolls,
                       images_per_block=None, vmem_limit_bytes=32 * 1024 * 1024):
    N, Cin, H, W = x_nchw.shape
    Ch = w1_oihw.shape[0]
    Cp = ((max(Cin, Ch) + 7) // 8) * 8   # channel count padded to the sublane tile
    Mb = H * W

    # Images per grid step: as many as comfortably fit the VMEM budget
    # (x/out blocks, double buffers, plus ~a dozen live f32 activation copies
    # inside the kernel: x, y, h, acc, taps, bf16 casts).
    if images_per_block is None:
        per_image = Cp * Mb * 4
        images_per_block = max(1, min(N, (vmem_limit_bytes // 4) // (per_image * 12)))
    B = int(images_per_block)
    num_blocks = pl.cdiv(N, B)
    N_pad = num_blocks * B
    Lb = B * Mb

    # Activations: NCHW -> (Cp, N_pad*H*W). Channels in sublanes (zero-padded),
    # image-major flattened spatial in lanes (lane-dense slab for loads/stores).
    x_cm = jnp.transpose(x_nchw, (1, 0, 2, 3)).reshape(Cin, N * Mb).astype(jnp.float32)
    x_cm = jnp.pad(x_cm, ((0, Cp - Cin), (0, (N_pad - N) * Mb)))

    # Weights: OIHW -> (9, Cp, Cp) per-tap matrices, zero-padded in both the
    # output- and input-channel dimensions (kept f32; cast to bf16 in-kernel).
    def pack_w(w_oihw, cout, cin):
        w = jnp.transpose(w_oihw, (2, 3, 0, 1)).astype(jnp.float32)     # (3,3,cout,cin)
        w = jnp.pad(w, ((0, 0), (0, 0), (0, Cp - cout), (0, Cp - cin)))  # (3,3,Cp,Cp)
        return w.reshape(9, Cp, Cp)

    w1_t = pack_w(w1_oihw, Ch, Cin)
    w2_t = pack_w(w2_oihw, Cin, Ch)
    b1_p = jnp.pad(b1.astype(jnp.float32), (0, Cp - Ch)).reshape(Cp, 1)
    b2_p = jnp.pad(b2.astype(jnp.float32), (0, Cp - Cin)).reshape(Cp, 1)
    lam_k = jnp.asarray(lam, jnp.float32).reshape(1, 1)

    # 9 boundary masks for one image (per-image coordinates), tiled across the
    # B images packed into one block's lane extent.
    idx = jnp.arange(Mb, dtype=jnp.int32)
    row = idx // W
    col = idx % W
    masks = []
    for dy in range(3):
        for dx in range(3):
            ii = row + (dy - 1)
            jj = col + (dx - 1)
            masks.append(((ii >= 0) & (ii < H) & (jj >= 0) & (jj < W)).astype(jnp.float32))
    mask_img = jnp.stack(masks, axis=0)                # (9, Mb)
    mask_blk = jnp.tile(mask_img, (1, B))              # (9, B*Mb)

    kernel = make_unroll_kernel(H, W, Cp, Lb, num_unrolls)

    out_cm = pl.pallas_call(
        kernel,
        grid=(num_blocks,),   # B images per grid step (whole batch in 1 step at toy size)
        out_shape=jax.ShapeDtypeStruct((Cp, N_pad * Mb), jnp.float32),
        in_specs=[
            pl.BlockSpec((9, Lb), lambda n: (0, 0)),               # boundary masks
            pl.BlockSpec((Cp, Lb), lambda n: (0, n)),              # x: B images / step
            pl.BlockSpec((9, Cp, Cp), lambda n: (0, 0, 0)),        # w1 (VMEM resident)
            pl.BlockSpec((Cp, 1), lambda n: (0, 0)),               # b1
            pl.BlockSpec((9, Cp, Cp), lambda n: (0, 0, 0)),        # w2
            pl.BlockSpec((Cp, 1), lambda n: (0, 0)),               # b2
            pl.BlockSpec(memory_space=pltpu.MemorySpace.SMEM),     # lam scalar
        ],
        out_specs=pl.BlockSpec((Cp, Lb), lambda n: (0, n)),
        compiler_params=pltpu.CompilerParams(
            dimension_semantics=("parallel",),
            vmem_limit_bytes=int(vmem_limit_bytes)),
    )(mask_blk, x_cm, w1_t, b1_p, w2_t, b2_p, lam_k)

    out = out_cm[:Cin].reshape(Cin, N_pad, H, W).transpose(1, 0, 2, 3)
    return out[:N]


def reference_forward(x, w1, b1, w2, b2, lam, num_unrolls, operand_dtype=jnp.float32):
    """Pure-JAX reference. operand_dtype controls the conv operand precision
    (f32 = original module semantics; bf16 = same precision choice as the
    kernel's MXU operands, with f32 accumulation)."""
    dn = ('NCHW', 'OIHW', 'NCHW')
    xx = x.astype(jnp.float32)
    y = xx
    w1c = w1.astype(operand_dtype)
    w2c = w2.astype(operand_dtype)
    for _ in range(num_unrolls):
        h = lax.conv_general_dilated(xx.astype(operand_dtype), w1c, (1, 1), 'SAME',
                                     dimension_numbers=dn,
                                     preferred_element_type=jnp.float32)
        h = jnp.maximum(h + b1[None, :, None, None], 0.0)
        r = lax.conv_general_dilated(h.astype(operand_dtype), w2c, (1, 1), 'SAME',
                                     dimension_numbers=dn,
                                     preferred_element_type=jnp.float32)
        r = r + b2[None, :, None, None]
        xx = xx + r
        xx = (xx + lam * y) / (1.0 + lam)
    return xx


if __name__ == "__main__":
    key = jax.random.PRNGKey(0)
    N, Cin, H, W = 2, 4, 16, 16
    Ch = 8
    num_unrolls = 3

    k1, k2, k3, k4, k5 = jax.random.split(key, 5)
    x = jax.random.normal(k1, (N, Cin, H, W), jnp.float32)
    w1 = 0.1 * jax.random.normal(k2, (Ch, Cin, 3, 3), jnp.float32)
    b1 = 0.1 * jax.random.normal(k3, (Ch,), jnp.float32)
    w2 = 0.1 * jax.random.normal(k4, (Cin, Ch, 3, 3), jnp.float32)
    b2 = 0.1 * jax.random.normal(k5, (Cin,), jnp.float32)
    lam = 0.5

    out = unroll_net_forward(x, w1, b1, w2, b2, lam, num_unrolls)
    out = jax.block_until_ready(out)

    # Tight check: reference with the same precision choice (bf16 conv operands,
    # f32 accumulation) -- differences are only f32 accumulation-order noise.
    ref_bf16 = reference_forward(x, w1, b1, w2, b2, lam, num_unrolls,
                                 operand_dtype=jnp.bfloat16)
    assert out.shape == ref_bf16.shape, (out.shape, ref_bf16.shape)
    err_bf16 = float(jnp.max(jnp.abs(out - ref_bf16)))
    assert jnp.allclose(out, ref_bf16, atol=1e-3, rtol=1e-3), f"bf16-ref max_err={err_bf16}"

    # Looser sanity check against the full-f32 module semantics (tolerance sized
    # for bf16 operand quantization over num_unrolls iterations).
    ref_f32 = reference_forward(x, w1, b1, w2, b2, lam, num_unrolls,
                                operand_dtype=jnp.float32)
    err_f32 = float(jnp.max(jnp.abs(out - ref_f32)))
    assert jnp.allclose(out, ref_f32, atol=3e-2, rtol=3e-2), f"f32-ref max_err={err_f32}"

    print("KERNEL_OK")
</pallas_src>

<mosaic_0001>
module attributes {stable_mosaic.version = 11 : i64} {
  func.func @kernel(%arg0: i32, %arg1: memref<9x512xf32, #tpu.memory_space<vmem>>, %arg2: memref<8x512xf32, #tpu.memory_space<vmem>>, %arg3: memref<9x8x8xf32, #tpu.memory_space<vmem>>, %arg4: memref<8x1xf32, #tpu.memory_space<vmem>>, %arg5: memref<9x8x8xf32, #tpu.memory_space<vmem>>, %arg6: memref<8x1xf32, #tpu.memory_space<vmem>>, %arg7: memref<1x1xf32, #tpu.memory_space<smem>>, %arg8: memref<8x512xf32, #tpu.memory_space<vmem>>) attributes {dimension_semantics = [#tpu.dimension_semantics<parallel>], iteration_bounds = array<i64: 1>, scalar_prefetch = 0 : i64, scratch_operands = 0 : i64, tpu.core_type = #tpu.core_type<tc>, window_params = [{pipeline_mode = #tpu.pipeline_mode<synchronous>, transform_indices = @transform_0, window_bounds = array<i64: 9, 512>}, {transform_indices = @transform_1, window_bounds = array<i64: 8, 512>}, {pipeline_mode = #tpu.pipeline_mode<synchronous>, transform_indices = @transform_2, window_bounds = array<i64: 9, 8, 8>}, {pipeline_mode = #tpu.pipeline_mode<synchronous>, transform_indices = @transform_3, window_bounds = array<i64: 8, 1>}, {pipeline_mode = #tpu.pipeline_mode<synchronous>, transform_indices = @transform_4, window_bounds = array<i64: 9, 8, 8>}, {pipeline_mode = #tpu.pipeline_mode<synchronous>, transform_indices = @transform_5, window_bounds = array<i64: 8, 1>}, {transform_indices = @transform_6, window_bounds = array<i64: 1, 1>}, {transform_indices = @transform_7, window_bounds = array<i64: 8, 512>}]} {
    %c0 = arith.constant 0 : index
    %c0_0 = arith.constant 0 : index
    %0 = memref.load %arg7[%c0, %c0_0] : memref<1x1xf32, #tpu.memory_space<smem>>
    %cst = arith.constant 1.000000e+00 : f32
    %1 = arith.addf %cst, %0 : f32
    %cst_1 = arith.constant 1.000000e+00 : f32
    %2 = arith.divf %cst_1, %1 : f32
    %c0_2 = arith.constant 0 : index
    %c0_3 = arith.constant 0 : index
    %3 = vector.load %arg1[%c0_2, %c0_3] : memref<9x512xf32, #tpu.memory_space<vmem>>, vector<1x512xf32>
    %c1 = arith.constant 1 : index
    %c0_4 = arith.constant 0 : index
    %4 = vector.load %arg1[%c1, %c0_4] : memref<9x512xf32, #tpu.memory_space<vmem>>, vector<1x512xf32>
    %c2 = arith.constant 2 : index
    %c0_5 = arith.constant 0 : index
    %5 = vector.load %arg1[%c2, %c0_5] : memref<9x512xf32, #tpu.memory_space<vmem>>, vector<1x512xf32>
    %c3 = arith.constant 3 : index
    %c0_6 = arith.constant 0 : index
    %6 = vector.load %arg1[%c3, %c0_6] : memref<9x512xf32, #tpu.memory_space<vmem>>, vector<1x512xf32>
    %c5 = arith.constant 5 : index
    %c0_7 = arith.constant 0 : index
    %7 = vector.load %arg1[%c5, %c0_7] : memref<9x512xf32, #tpu.memory_space<vmem>>, vector<1x512xf32>
    %c6 = arith.constant 6 : index
    %c0_8 = arith.constant 0 : index
    %8 = vector.load %arg1[%c6, %c0_8] : memref<9x512xf32, #tpu.memory_space<vmem>>, vector<1x512xf32>
    %c7 = arith.constant 7 : index
    %c0_9 = arith.constant 0 : index
    %9 = vector.load %arg1[%c7, %c0_9] : memref<9x512xf32, #tpu.memory_space<vmem>>, vector<1x512xf32>
    %c8 = arith.constant 8 : index
    %c0_10 = arith.constant 0 : index
    %10 = vector.load %arg1[%c8, %c0_10] : memref<9x512xf32, #tpu.memory_space<vmem>>, vector<1x512xf32>
    %c0_11 = arith.constant 0 : index
    %c0_12 = arith.constant 0 : index
    %11 = vector.load %arg4[%c0_11, %c0_12] : memref<8x1xf32, #tpu.memory_space<vmem>>, vector<8x1xf32>
    %12 = vector.shape_cast %11 : vector<8x1xf32> to vector<8x1xf32>
    %13 = vector.broadcast %12 : vector<8x1xf32> to vector<8x512xf32>
    %c0_13 = arith.constant 0 : index
    %c0_14 = arith.constant 0 : index
    %14 = vector.load %arg6[%c0_13, %c0_14] : memref<8x1xf32, #tpu.memory_space<vmem>>, vector<8x1xf32>
    %15 = vector.shape_cast %14 : vector<8x1xf32> to vector<8x1xf32>
    %16 = vector.broadcast %15 : vector<8x1xf32> to vector<8x512xf32>
    %c0_15 = arith.constant 0 : index
    %c0_16 = arith.constant 0 : index
    %c0_17 = arith.constant 0 : index
    %17 = vector.load %arg3[%c0_15, %c0_16, %c0_17] : memref<9x8x8xf32, #tpu.memory_space<vmem>>, vector<1x8x8xf32>
    %18 = vector.shape_cast %17 : vector<1x8x8xf32> to vector<8x8xf32>
    %19 = arith.truncf %18 : vector<8x8xf32> to vector<8x8xbf16>
    %c1_18 = arith.constant 1 : index
    %c0_19 = arith.constant 0 : index
    %c0_20 = arith.constant 0 : index
    %20 = vector.load %arg3[%c1_18, %c0_19, %c0_20] : memref<9x8x8xf32, #tpu.memory_space<vmem>>, vector<1x8x8xf32>
    %21 = vector.shape_cast %20 : vector<1x8x8xf32> to vector<8x8xf32>
    %22 = arith.truncf %21 : vector<8x8xf32> to vector<8x8xbf16>
    %c2_21 = arith.constant 2 : index
    %c0_22 = arith.constant 0 : index
    %c0_23 = arith.constant 0 : index
    %23 = vector.load %arg3[%c2_21, %c0_22, %c0_23] : memref<9x8x8xf32, #tpu.memory_space<vmem>>, vector<1x8x8xf32>
    %24 = vector.shape_cast %23 : vector<1x8x8xf32> to vector<8x8xf32>
    %25 = arith.truncf %24 : vector<8x8xf32> to vector<8x8xbf16>
    %c3_24 = arith.constant 3 : index
    %c0_25 = arith.constant 0 : index
    %c0_26 = arith.constant 0 : index
    %26 = vector.load %arg3[%c3_24, %c0_25, %c0_26] : memref<9x8x8xf32, #tpu.memory_space<vmem>>, vector<1x8x8xf32>
    %27 = vector.shape_cast %26 : vector<1x8x8xf32> to vector<8x8xf32>
    %28 = arith.truncf %27 : vector<8x8xf32> to vector<8x8xbf16>
    %c4 = arith.constant 4 : index
    %c0_27 = arith.constant 0 : index
    %c0_28 = arith.constant 0 : index
    %29 = vector.load %arg3[%c4, %c0_27, %c0_28] : memref<9x8x8xf32, #tpu.memory_space<vmem>>, vector<1x8x8xf32>
    %30 = vector.shape_cast %29 : vector<1x8x8xf32> to vector<8x8xf32>
    %31 = arith.truncf %30 : vector<8x8xf32> to vector<8x8xbf16>
    %c5_29 = arith.constant 5 : index
    %c0_30 = arith.constant 0 : index
    %c0_31 = arith.constant 0 : index
    %32 = vector.load %arg3[%c5_29, %c0_30, %c0_31] : memref<9x8x8xf32, #tpu.memory_space<vmem>>, vector<1x8x8xf32>
    %33 = vector.shape_cast %32 : vector<1x8x8xf32> to vector<8x8xf32>
    %34 = arith.truncf %33 : vector<8x8xf32> to vector<8x8xbf16>
    %c6_32 = arith.constant 6 : index
    %c0_33 = arith.constant 0 : index
    %c0_34 = arith.constant 0 : index
    %35 = vector.load %arg3[%c6_32, %c0_33, %c0_34] : memref<9x8x8xf32, #tpu.memory_space<vmem>>, vector<1x8x8xf32>
    %36 = vector.shape_cast %35 : vector<1x8x8xf32> to vector<8x8xf32>
    %37 = arith.truncf %36 : vector<8x8xf32> to vector<8x8xbf16>
    %c7_35 = arith.constant 7 : index
    %c0_36 = arith.constant 0 : index
    %c0_37 = arith.constant 0 : index
    %38 = vector.load %arg3[%c7_35, %c0_36, %c0_37] : memref<9x8x8xf32, #tpu.memory_space<vmem>>, vector<1x8x8xf32>
    %39 = vector.shape_cast %38 : vector<1x8x8xf32> to vector<8x8xf32>
    %40 = arith.truncf %39 : vector<8x8xf32> to vector<8x8xbf16>
    %c8_38 = arith.constant 8 : index
    %c0_39 = arith.constant 0 : index
    %c0_40 = arith.constant 0 : index
    %41 = vector.load %arg3[%c8_38, %c0_39, %c0_40] : memref<9x8x8xf32, #tpu.memory_space<vmem>>, vector<1x8x8xf32>
    %42 = vector.shape_cast %41 : vector<1x8x8xf32> to vector<8x8xf32>
    %43 = arith.truncf %42 : vector<8x8xf32> to vector<8x8xbf16>
    %c0_41 = arith.constant 0 : index
    %c0_42 = arith.constant 0 : index
    %c0_43 = arith.constant 0 : index
    %44 = vector.load %arg5[%c0_41, %c0_42, %c0_43] : memref<9x8x8xf32, #tpu.memory_space<vmem>>, vector<1x8x8xf32>
    %45 = vector.shape_cast %44 : vector<1x8x8xf32> to vector<8x8xf32>
    %46 = arith.truncf %45 : vector<8x8xf32> to vector<8x8xbf16>
    %c1_44 = arith.constant 1 : index
    %c0_45 = arith.constant 0 : index
    %c0_46 = arith.constant 0 : index
    %47 = vector.load %arg5[%c1_44, %c0_45, %c0_46] : memref<9x8x8xf32, #tpu.memory_space<vmem>>, vector<1x8x8xf32>
    %48 = vector.shape_cast %47 : vector<1x8x8xf32> to vector<8x8xf32>
    %49 = arith.truncf %48 : vector<8x8xf32> to vector<8x8xbf16>
    %c2_47 = arith.constant 2 : index
    %c0_48 = arith.constant 0 : index
    %c0_49 = arith.constant 0 : index
    %50 = vector.load %arg5[%c2_47, %c0_48, %c0_49] : memref<9x8x8xf32, #tpu.memory_space<vmem>>, vector<1x8x8xf32>
    %51 = vector.shape_cast %50 : vector<1x8x8xf32> to vector<8x8xf32>
    %52 = arith.truncf %51 : vector<8x8xf32> to vector<8x8xbf16>
    %c3_50 = arith.constant 3 : index
    %c0_51 = arith.constant 0 : index
    %c0_52 = arith.constant 0 : index
    %53 = vector.load %arg5[%c3_50, %c0_51, %c0_52] : memref<9x8x8xf32, #tpu.memory_space<vmem>>, vector<1x8x8xf32>
    %54 = vector.shape_cast %53 : vector<1x8x8xf32> to vector<8x8xf32>
    %55 = arith.truncf %54 : vector<8x8xf32> to vector<8x8xbf16>
    %c4_53 = arith.constant 4 : index
    %c0_54 = arith.constant 0 : index
    %c0_55 = arith.constant 0 : index
    %56 = vector.load %arg5[%c4_53, %c0_54, %c0_55] : memref<9x8x8xf32, #tpu.memory_space<vmem>>, vector<1x8x8xf32>
    %57 = vector.shape_cast %56 : vector<1x8x8xf32> to vector<8x8xf32>
    %58 = arith.truncf %57 : vector<8x8xf32> to vector<8x8xbf16>
    %c5_56 = arith.constant 5 : index
    %c0_57 = arith.constant 0 : index
    %c0_58 = arith.constant 0 : index
    %59 = vector.load %arg5[%c5_56, %c0_57, %c0_58] : memref<9x8x8xf32, #tpu.memory_space<vmem>>, vector<1x8x8xf32>
    %60 = vector.shape_cast %59 : vector<1x8x8xf32> to vector<8x8xf32>
    %61 = arith.truncf %60 : vector<8x8xf32> to vector<8x8xbf16>
    %c6_59 = arith.constant 6 : index
    %c0_60 = arith.constant 0 : index
    %c0_61 = arith.constant 0 : index
    %62 = vector.load %arg5[%c6_59, %c0_60, %c0_61] : memref<9x8x8xf32, #tpu.memory_space<vmem>>, vector<1x8x8xf32>
    %63 = vector.shape_cast %62 : vector<1x8x8xf32> to vector<8x8xf32>
    %64 = arith.truncf %63 : vector<8x8xf32> to vector<8x8xbf16>
    %c7_62 = arith.constant 7 : index
    %c0_63 = arith.constant 0 : index
    %c0_64 = arith.constant 0 : index
    %65 = vector.load %arg5[%c7_62, %c0_63, %c0_64] : memref<9x8x8xf32, #tpu.memory_space<vmem>>, vector<1x8x8xf32>
    %66 = vector.shape_cast %65 : vector<1x8x8xf32> to vector<8x8xf32>
    %67 = arith.truncf %66 : vector<8x8xf32> to vector<8x8xbf16>
    %c8_65 = arith.constant 8 : index
    %c0_66 = arith.constant 0 : index
    %c0_67 = arith.constant 0 : index
    %68 = vector.load %arg5[%c8_65, %c0_66, %c0_67] : memref<9x8x8xf32, #tpu.memory_space<vmem>>, vector<1x8x8xf32>
    %69 = vector.shape_cast %68 : vector<1x8x8xf32> to vector<8x8xf32>
    %70 = arith.truncf %69 : vector<8x8xf32> to vector<8x8xbf16>
    %c0_68 = arith.constant 0 : index
    %c0_69 = arith.constant 0 : index
    %71 = vector.load %arg2[%c0_68, %c0_69] : memref<8x512xf32, #tpu.memory_space<vmem>>, vector<8x512xf32>
    %72 = arith.truncf %71 : vector<8x512xf32> to vector<8x512xbf16>
    %cst_70 = arith.constant dense<0.000000e+00> : vector<8x512xf32>
    %73 = tpu.matmul %31, %72, %cst_70 {dimension_numbers = #tpu.dot_dimension_numbers<[1], [0], [0], [1], [0, 0, 1, 1], [], []>} : vector<8x8xbf16>, vector<8x512xbf16>, vector<8x512xf32> -> vector<8x512xf32>
    %c17_i32 = arith.constant 17 : i32
    %74 = tpu.dynamic_rotate %71 by %c17_i32 dim 1 : vector<8x512xf32>, i32 -> vector<8x512xf32>
    %75 = vector.broadcast %3 : vector<1x512xf32> to vector<8x512xf32>
    %76 = arith.mulf %74, %75 : vector<8x512xf32>
    %77 = arith.truncf %76 : vector<8x512xf32> to vector<8x512xbf16>
    %cst_71 = arith.constant dense<0.000000e+00> : vector<8x512xf32>
    %78 = tpu.matmul %19, %77, %cst_71 {dimension_numbers = #tpu.dot_dimension_numbers<[1], [0], [0], [1], [0, 0, 1, 1], [], []>} : vector<8x8xbf16>, vector<8x512xbf16>, vector<8x512xf32> -> vector<8x512xf32>
    %79 = arith.addf %73, %78 : vector<8x512xf32>
    %c16_i32 = arith.constant 16 : i32
    %80 = tpu.dynamic_rotate %71 by %c16_i32 dim 1 : vector<8x512xf32>, i32 -> vector<8x512xf32>
    %81 = vector.broadcast %4 : vector<1x512xf32> to vector<8x512xf32>
    %82 = arith.mulf %80, %81 : vector<8x512xf32>
    %83 = arith.truncf %82 : vector<8x512xf32> to vector<8x512xbf16>
    %cst_72 = arith.constant dense<0.000000e+00> : vector<8x512xf32>
    %84 = tpu.matmul %22, %83, %cst_72 {dimension_numbers = #tpu.dot_dimension_numbers<[1], [0], [0], [1], [0, 0, 1, 1], [], []>} : vector<8x8xbf16>, vector<8x512xbf16>, vector<8x512xf32> -> vector<8x512xf32>
    %85 = arith.addf %79, %84 : vector<8x512xf32>
    %c15_i32 = arith.constant 15 : i32
    %86 = tpu.dynamic_rotate %71 by %c15_i32 dim 1 : vector<8x512xf32>, i32 -> vector<8x512xf32>
    %87 = vector.broadcast %5 : vector<1x512xf32> to vector<8x512xf32>
    %88 = arith.mulf %86, %87 : vector<8x512xf32>
    %89 = arith.truncf %88 : vector<8x512xf32> to vector<8x512xbf16>
    %cst_73 = arith.constant dense<0.000000e+00> : vector<8x512xf32>
    %90 = tpu.matmul %25, %89, %cst_73 {dimension_numbers = #tpu.dot_dimension_numbers<[1], [0], [0], [1], [0, 0, 1, 1], [], []>} : vector<8x8xbf16>, vector<8x512xbf16>, vector<8x512xf32> -> vector<8x512xf32>
    %91 = arith.addf %85, %90 : vector<8x512xf32>
    %c1_i32 = arith.constant 1 : i32
    %92 = tpu.dynamic_rotate %71 by %c1_i32 dim 1 : vector<8x512xf32>, i32 -> vector<8x512xf32>
    %93 = vector.broadcast %6 : vector<1x512xf32> to vector<8x512xf32>
    %94 = arith.mulf %92, %93 : vector<8x512xf32>
    %95 = arith.truncf %94 : vector<8x512xf32> to vector<8x512xbf16>
    %cst_74 = arith.constant dense<0.000000e+00> : vector<8x512xf32>
    %96 = tpu.matmul %28, %95, %cst_74 {dimension_numbers = #tpu.dot_dimension_numbers<[1], [0], [0], [1], [0, 0, 1, 1], [], []>} : vector<8x8xbf16>, vector<8x512xbf16>, vector<8x512xf32> -> vector<8x512xf32>
    %97 = arith.addf %91, %96 : vector<8x512xf32>
    %c511_i32 = arith.constant 511 : i32
    %98 = tpu.dynamic_rotate %71 by %c511_i32 dim 1 : vector<8x512xf32>, i32 -> vector<8x512xf32>
    %99 = vector.broadcast %7 : vector<1x512xf32> to vector<8x512xf32>
    %100 = arith.mulf %98, %99 : vector<8x512xf32>
    %101 = arith.truncf %100 : vector<8x512xf32> to vector<8x512xbf16>
    %cst_75 = arith.constant dense<0.000000e+00> : vector<8x512xf32>
    %102 = tpu.matmul %34, %101, %cst_75 {dimension_numbers = #tpu.dot_dimension_numbers<[1], [0], [0], [1], [0, 0, 1, 1], [], []>} : vector<8x8xbf16>, vector<8x512xbf16>, vector<8x512xf32> -> vector<8x512xf32>
    %103 = arith.addf %97, %102 : vector<8x512xf32>
    %c497_i32 = arith.constant 497 : i32
    %104 = tpu.dynamic_rotate %71 by %c497_i32 dim 1 : vector<8x512xf32>, i32 -> vector<8x512xf32>
    %105 = vector.broadcast %8 : vector<1x512xf32> to vector<8x512xf32>
    %106 = arith.mulf %104, %105 : vector<8x512xf32>
    %107 = arith.truncf %106 : vector<8x512xf32> to vector<8x512xbf16>
    %cst_76 = arith.constant dense<0.000000e+00> : vector<8x512xf32>
    %108 = tpu.matmul %37, %107, %cst_76 {dimension_numbers = #tpu.dot_dimension_numbers<[1], [0], [0], [1], [0, 0, 1, 1], [], []>} : vector<8x8xbf16>, vector<8x512xbf16>, vector<8x512xf32> -> vector<8x512xf32>
    %109 = arith.addf %103, %108 : vector<8x512xf32>
    %c496_i32 = arith.constant 496 : i32
    %110 = tpu.dynamic_rotate %71 by %c496_i32 dim 1 : vector<8x512xf32>, i32 -> vector<8x512xf32>
    %111 = vector.broadcast %9 : vector<1x512xf32> to vector<8x512xf32>
    %112 = arith.mulf %110, %111 : vector<8x512xf32>
    %113 = arith.truncf %112 : vector<8x512xf32> to vector<8x512xbf16>
    %cst_77 = arith.constant dense<0.000000e+00> : vector<8x512xf32>
    %114 = tpu.matmul %40, %113, %cst_77 {dimension_numbers = #tpu.dot_dimension_numbers<[1], [0], [0], [1], [0, 0, 1, 1], [], []>} : vector<8x8xbf16>, vector<8x512xbf16>, vector<8x512xf32> -> vector<8x512xf32>
    %115 = arith.addf %109, %114 : vector<8x512xf32>
    %c495_i32 = arith.constant 495 : i32
    %116 = tpu.dynamic_rotate %71 by %c495_i32 dim 1 : vector<8x512xf32>, i32 -> vector<8x512xf32>
    %117 = vector.broadcast %10 : vector<1x512xf32> to vector<8x512xf32>
    %118 = arith.mulf %116, %117 : vector<8x512xf32>
    %119 = arith.truncf %118 : vector<8x512xf32> to vector<8x512xbf16>
    %cst_78 = arith.constant dense<0.000000e+00> : vector<8x512xf32>
    %120 = tpu.matmul %43, %119, %cst_78 {dimension_numbers = #tpu.dot_dimension_numbers<[1], [0], [0], [1], [0, 0, 1, 1], [], []>} : vector<8x8xbf16>, vector<8x512xbf16>, vector<8x512xf32> -> vector<8x512xf32>
    %121 = arith.addf %115, %120 : vector<8x512xf32>
    %122 = arith.addf %121, %13 : vector<8x512xf32>
    %cst_79 = arith.constant 0.000000e+00 : f32
    %123 = vector.broadcast %cst_79 : f32 to vector<8x512xf32>
    %124 = arith.maximumf %122, %123 : vector<8x512xf32>
    %125 = arith.truncf %124 : vector<8x512xf32> to vector<8x512xbf16>
    %cst_80 = arith.constant dense<0.000000e+00> : vector<8x512xf32>
    %126 = tpu.matmul %58, %125, %cst_80 {dimension_numbers = #tpu.dot_dimension_numbers<[1], [0], [0], [1], [0, 0, 1, 1], [], []>} : vector<8x8xbf16>, vector<8x512xbf16>, vector<8x512xf32> -> vector<8x512xf32>
    %c17_i32_81 = arith.constant 17 : i32
    %127 = tpu.dynamic_rotate %124 by %c17_i32_81 dim 1 : vector<8x512xf32>, i32 -> vector<8x512xf32>
    %128 = vector.broadcast %3 : vector<1x512xf32> to vector<8x512xf32>
    %129 = arith.mulf %127, %128 : vector<8x512xf32>
    %130 = arith.truncf %129 : vector<8x512xf32> to vector<8x512xbf16>
    %cst_82 = arith.constant dense<0.000000e+00> : vector<8x512xf32>
    %131 = tpu.matmul %46, %130, %cst_82 {dimension_numbers = #tpu.dot_dimension_numbers<[1], [0], [0], [1], [0, 0, 1, 1], [], []>} : vector<8x8xbf16>, vector<8x512xbf16>, vector<8x512xf32> -> vector<8x512xf32>
    %132 = arith.addf %126, %131 : vector<8x512xf32>
    %c16_i32_83 = arith.constant 16 : i32
    %133 = tpu.dynamic_rotate %124 by %c16_i32_83 dim 1 : vector<8x512xf32>, i32 -> vector<8x512xf32>
    %134 = vector.broadcast %4 : vector<1x512xf32> to vector<8x512xf32>
    %135 = arith.mulf %133, %134 : vector<8x512xf32>
    %136 = arith.truncf %135 : vector<8x512xf32> to vector<8x512xbf16>
    %cst_84 = arith.constant dense<0.000000e+00> : vector<8x512xf32>
    %137 = tpu.matmul %49, %136, %cst_84 {dimension_numbers = #tpu.dot_dimension_numbers<[1], [0], [0], [1], [0, 0, 1, 1], [], []>} : vector<8x8xbf16>, vector<8x512xbf16>, vector<8x512xf32> -> vector<8x512xf32>
    %138 = arith.addf %132, %137 : vector<8x512xf32>
    %c15_i32_85 = arith.constant 15 : i32
    %139 = tpu.dynamic_rotate %124 by %c15_i32_85 dim 1 : vector<8x512xf32>, i32 -> vector<8x512xf32>
    %140 = vector.broadcast %5 : vector<1x512xf32> to vector<8x512xf32>
    %141 = arith.mulf %139, %140 : vector<8x512xf32>
    %142 = arith.truncf %141 : vector<8x512xf32> to vector<8x512xbf16>
    %cst_86 = arith.constant dense<0.000000e+00> : vector<8x512xf32>
    %143 = tpu.matmul %52, %142, %cst_86 {dimension_numbers = #tpu.dot_dimension_numbers<[1], [0], [0], [1], [0, 0, 1, 1], [], []>} : vector<8x8xbf16>, vector<8x512xbf16>, vector<8x512xf32> -> vector<8x512xf32>
    %144 = arith.addf %138, %143 : vector<8x512xf32>
    %c1_i32_87 = arith.constant 1 : i32
    %145 = tpu.dynamic_rotate %124 by %c1_i32_87 dim 1 : vector<8x512xf32>, i32 -> vector<8x512xf32>
    %146 = vector.broadcast %6 : vector<1x512xf32> to vector<8x512xf32>
    %147 = arith.mulf %145, %146 : vector<8x512xf32>
    %148 = arith.truncf %147 : vector<8x512xf32> to vector<8x512xbf16>
    %cst_88 = arith.constant dense<0.000000e+00> : vector<8x512xf32>
    %149 = tpu.matmul %55, %148, %cst_88 {dimension_numbers = #tpu.dot_dimension_numbers<[1], [0], [0], [1], [0, 0, 1, 1], [], []>} : vector<8x8xbf16>, vector<8x512xbf16>, vector<8x512xf32> -> vector<8x512xf32>
    %150 = arith.addf %144, %149 : vector<8x512xf32>
    %c511_i32_89 = arith.constant 511 : i32
    %151 = tpu.dynamic_rotate %124 by %c511_i32_89 dim 1 : vector<8x512xf32>, i32 -> vector<8x512xf32>
    %152 = vector.broadcast %7 : vector<1x512xf32> to vector<8x512xf32>
    %153 = arith.mulf %151, %152 : vector<8x512xf32>
    %154 = arith.truncf %153 : vector<8x512xf32> to vector<8x512xbf16>
    %cst_90 = arith.constant dense<0.000000e+00> : vector<8x512xf32>
    %155 = tpu.matmul %61, %154, %cst_90 {dimension_numbers = #tpu.dot_dimension_numbers<[1], [0], [0], [1], [0, 0, 1, 1], [], []>} : vector<8x8xbf16>, vector<8x512xbf16>, vector<8x512xf32> -> vector<8x512xf32>
    %156 = arith.addf %150, %155 : vector<8x512xf32>
    %c497_i32_91 = arith.constant 497 : i32
    %157 = tpu.dynamic_rotate %124 by %c497_i32_91 dim 1 : vector<8x512xf32>, i32 -> vector<8x512xf32>
    %158 = vector.broadcast %8 : vector<1x512xf32> to vector<8x512xf32>
    %159 = arith.mulf %157, %158 : vector<8x512xf32>
    %160 = arith.truncf %159 : vector<8x512xf32> to vector<8x512xbf16>
    %cst_92 = arith.constant dense<0.000000e+00> : vector<8x512xf32>
    %161 = tpu.matmul %64, %160, %cst_92 {dimension_numbers = #tpu.dot_dimension_numbers<[1], [0], [0], [1], [0, 0, 1, 1], [], []>} : vector<8x8xbf16>, vector<8x512xbf16>, vector<8x512xf32> -> vector<8x512xf32>
    %162 = arith.addf %156, %161 : vector<8x512xf32>
    %c496_i32_93 = arith.constant 496 : i32
    %163 = tpu.dynamic_rotate %124 by %c496_i32_93 dim 1 : vector<8x512xf32>, i32 -> vector<8x512xf32>
    %164 = vector.broadcast %9 : vector<1x512xf32> to vector<8x512xf32>
    %165 = arith.mulf %163, %164 : vector<8x512xf32>
    %166 = arith.truncf %165 : vector<8x512xf32> to vector<8x512xbf16>
    %cst_94 = arith.constant dense<0.000000e+00> : vector<8x512xf32>
    %167 = tpu.matmul %67, %166, %cst_94 {dimension_numbers = #tpu.dot_dimension_numbers<[1], [0], [0], [1], [0, 0, 1, 1], [], []>} : vector<8x8xbf16>, vector<8x512xbf16>, vector<8x512xf32> -> vector<8x512xf32>
    %168 = arith.addf %162, %167 : vector<8x512xf32>
    %c495_i32_95 = arith.constant 495 : i32
    %169 = tpu.dynamic_rotate %124 by %c495_i32_95 dim 1 : vector<8x512xf32>, i32 -> vector<8x512xf32>
    %170 = vector.broadcast %10 : vector<1x512xf32> to vector<8x512xf32>
    %171 = arith.mulf %169, %170 : vector<8x512xf32>
    %172 = arith.truncf %171 : vector<8x512xf32> to vector<8x512xbf16>
    %cst_96 = arith.constant dense<0.000000e+00> : vector<8x512xf32>
    %173 = tpu.matmul %70, %172, %cst_96 {dimension_numbers = #tpu.dot_dimension_numbers<[1], [0], [0], [1], [0, 0, 1, 1], [], []>} : vector<8x8xbf16>, vector<8x512xbf16>, vector<8x512xf32> -> vector<8x512xf32>
    %174 = arith.addf %168, %173 : vector<8x512xf32>
    %175 = arith.addf %174, %16 : vector<8x512xf32>
    %176 = arith.addf %71, %175 : vector<8x512xf32>
    %177 = vector.broadcast %0 : f32 to vector<8x512xf32>
    %178 = arith.mulf %177, %71 : vector<8x512xf32>
    %179 = arith.addf %176, %178 : vector<8x512xf32>
    %180 = vector.broadcast %2 : f32 to vector<8x512xf32>
    %181 = arith.mulf %179, %180 : vector<8x512xf32>
    %182 = arith.truncf %181 : vector<8x512xf32> to vector<8x512xbf16>
    %cst_97 = arith.constant dense<0.000000e+00> : vector<8x512xf32>
    %183 = tpu.matmul %31, %182, %cst_97 {dimension_numbers = #tpu.dot_dimension_numbers<[1], [0], [0], [1], [0, 0, 1, 1], [], []>} : vector<8x8xbf16>, vector<8x512xbf16>, vector<8x512xf32> -> vector<8x512xf32>
    %c17_i32_98 = arith.constant 17 : i32
    %184 = tpu.dynamic_rotate %181 by %c17_i32_98 dim 1 : vector<8x512xf32>, i32 -> vector<8x512xf32>
    %185 = vector.broadcast %3 : vector<1x512xf32> to vector<8x512xf32>
    %186 = arith.mulf %184, %185 : vector<8x512xf32>
    %187 = arith.truncf %186 : vector<8x512xf32> to vector<8x512xbf16>
    %cst_99 = arith.constant dense<0.000000e+00> : vector<8x512xf32>
    %188 = tpu.matmul %19, %187, %cst_99 {dimension_numbers = #tpu.dot_dimension_numbers<[1], [0], [0], [1], [0, 0, 1, 1], [], []>} : vector<8x8xbf16>, vector<8x512xbf16>, vector<8x512xf32> -> vector<8x512xf32>
    %189 = arith.addf %183, %188 : vector<8x512xf32>
    %c16_i32_100 = arith.constant 16 : i32
    %190 = tpu.dynamic_rotate %181 by %c16_i32_100 dim 1 : vector<8x512xf32>, i32 -> vector<8x512xf32>
    %191 = vector.broadcast %4 : vector<1x512xf32> to vector<8x512xf32>
    %192 = arith.mulf %190, %191 : vector<8x512xf32>
    %193 = arith.truncf %192 : vector<8x512xf32> to vector<8x512xbf16>
    %cst_101 = arith.constant dense<0.000000e+00> : vector<8x512xf32>
    %194 = tpu.matmul %22, %193, %cst_101 {dimension_numbers = #tpu.dot_dimension_numbers<[1], [0], [0], [1], [0, 0, 1, 1], [], []>} : vector<8x8xbf16>, vector<8x512xbf16>, vector<8x512xf32> -> vector<8x512xf32>
    %195 = arith.addf %189, %194 : vector<8x512xf32>
    %c15_i32_102 = arith.constant 15 : i32
    %196 = tpu.dynamic_rotate %181 by %c15_i32_102 dim 1 : vector<8x512xf32>, i32 -> vector<8x512xf32>
    %197 = vector.broadcast %5 : vector<1x512xf32> to vector<8x512xf32>
    %198 = arith.mulf %196, %197 : vector<8x512xf32>
    %199 = arith.truncf %198 : vector<8x512xf32> to vector<8x512xbf16>
    %cst_103 = arith.constant dense<0.000000e+00> : vector<8x512xf32>
    %200 = tpu.matmul %25, %199, %cst_103 {dimension_numbers = #tpu.dot_dimension_numbers<[1], [0], [0], [1], [0, 0, 1, 1], [], []>} : vector<8x8xbf16>, vector<8x512xbf16>, vector<8x512xf32> -> vector<8x512xf32>
    %201 = arith.addf %195, %200 : vector<8x512xf32>
    %c1_i32_104 = arith.constant 1 : i32
    %202 = tpu.dynamic_rotate %181 by %c1_i32_104 dim 1 : vector<8x512xf32>, i32 -> vector<8x512xf32>
    %203 = vector.broadcast %6 : vector<1x512xf32> to vector<8x512xf32>
    %204 = arith.mulf %202, %203 : vector<8x512xf32>
    %205 = arith.truncf %204 : vector<8x512xf32> to vector<8x512xbf16>
    %cst_105 = arith.constant dense<0.000000e+00> : vector<8x512xf32>
    %206 = tpu.matmul %28, %205, %cst_105 {dimension_numbers = #tpu.dot_dimension_numbers<[1], [0], [0], [1], [0, 0, 1, 1], [], []>} : vector<8x8xbf16>, vector<8x512xbf16>, vector<8x512xf32> -> vector<8x512xf32>
    %207 = arith.addf %201, %206 : vector<8x512xf32>
    %c511_i32_106 = arith.constant 511 : i32
    %208 = tpu.dynamic_rotate %181 by %c511_i32_106 dim 1 : vector<8x512xf32>, i32 -> vector<8x512xf32>
    %209 = vector.broadcast %7 : vector<1x512xf32> to vector<8x512xf32>
    %210 = arith.mulf %208, %209 : vector<8x512xf32>
    %211 = arith.truncf %210 : vector<8x512xf32> to vector<8x512xbf16>
    %cst_107 = arith.constant dense<0.000000e+00> : vector<8x512xf32>
    %212 = tpu.matmul %34, %211, %cst_107 {dimension_numbers = #tpu.dot_dimension_numbers<[1], [0], [0], [1], [0, 0, 1, 1], [], []>} : vector<8x8xbf16>, vector<8x512xbf16>, vector<8x512xf32> -> vector<8x512xf32>
    %213 = arith.addf %207, %212 : vector<8x512xf32>
    %c497_i32_108 = arith.constant 497 : i32
    %214 = tpu.dynamic_rotate %181 by %c497_i32_108 dim 1 : vector<8x512xf32>, i32 -> vector<8x512xf32>
    %215 = vector.broadcast %8 : vector<1x512xf32> to vector<8x512xf32>
    %216 = arith.mulf %214, %215 : vector<8x512xf32>
    %217 = arith.truncf %216 : vector<8x512xf32> to vector<8x512xbf16>
    %cst_109 = arith.constant dense<0.000000e+00> : vector<8x512xf32>
    %218 = tpu.matmul %37, %217, %cst_109 {dimension_numbers = #tpu.dot_dimension_numbers<[1], [0], [0], [1], [0, 0, 1, 1], [], []>} : vector<8x8xbf16>, vector<8x512xbf16>, vector<8x512xf32> -> vector<8x512xf32>
    %219 = arith.addf %213, %218 : vector<8x512xf32>
    %c496_i32_110 = arith.constant 496 : i32
    %220 = tpu.dynamic_rotate %181 by %c496_i32_110 dim 1 : vector<8x512xf32>, i32 -> vector<8x512xf32>
    %221 = vector.broadcast %9 : vector<1x512xf32> to vector<8x512xf32>
    %222 = arith.mulf %220, %221 : vector<8x512xf32>
    %223 = arith.truncf %222 : vector<8x512xf32> to vector<8x512xbf16>
    %cst_111 = arith.constant dense<0.000000e+00> : vector<8x512xf32>
    %224 = tpu.matmul %40, %223, %cst_111 {dimension_numbers = #tpu.dot_dimension_numbers<[1], [0], [0], [1], [0, 0, 1, 1], [], []>} : vector<8x8xbf16>, vector<8x512xbf16>, vector<8x512xf32> -> vector<8x512xf32>
    %225 = arith.addf %219, %224 : vector<8x512xf32>
    %c495_i32_112 = arith.constant 495 : i32
    %226 = tpu.dynamic_rotate %181 by %c495_i32_112 dim 1 : vector<8x512xf32>, i32 -> vector<8x512xf32>
    %227 = vector.broadcast %10 : vector<1x512xf32> to vector<8x512xf32>
    %228 = arith.mulf %226, %227 : vector<8x512xf32>
    %229 = arith.truncf %228 : vector<8x512xf32> to vector<8x512xbf16>
    %cst_113 = arith.constant dense<0.000000e+00> : vector<8x512xf32>
    %230 = tpu.matmul %43, %229, %cst_113 {dimension_numbers = #tpu.dot_dimension_numbers<[1], [0], [0], [1], [0, 0, 1, 1], [], []>} : vector<8x8xbf16>, vector<8x512xbf16>, vector<8x512xf32> -> vector<8x512xf32>
    %231 = arith.addf %225, %230 : vector<8x512xf32>
    %232 = arith.addf %231, %13 : vector<8x512xf32>
    %cst_114 = arith.constant 0.000000e+00 : f32
    %233 = vector.broadcast %cst_114 : f32 to vector<8x512xf32>
    %234 = arith.maximumf %232, %233 : vector<8x512xf32>
    %235 = arith.truncf %234 : vector<8x512xf32> to vector<8x512xbf16>
    %cst_115 = arith.constant dense<0.000000e+00> : vector<8x512xf32>
    %236 = tpu.matmul %58, %235, %cst_115 {dimension_numbers = #tpu.dot_dimension_numbers<[1], [0], [0], [1], [0, 0, 1, 1], [], []>} : vector<8x8xbf16>, vector<8x512xbf16>, vector<8x512xf32> -> vector<8x512xf32>
    %c17_i32_116 = arith.constant 17 : i32
    %237 = tpu.dynamic_rotate %234 by %c17_i32_116 dim 1 : vector<8x512xf32>, i32 -> vector<8x512xf32>
    %238 = vector.broadcast %3 : vector<1x512xf32> to vector<8x512xf32>
    %239 = arith.mulf %237, %238 : vector<8x512xf32>
    %240 = arith.truncf %239 : vector<8x512xf32> to vector<8x512xbf16>
    %cst_117 = arith.constant dense<0.000000e+00> : vector<8x512xf32>
    %241 = tpu.matmul %46, %240, %cst_117 {dimension_numbers = #tpu.dot_dimension_numbers<[1], [0], [0], [1], [0, 0, 1, 1], [], []>} : vector<8x8xbf16>, vector<8x512xbf16>, vector<8x512xf32> -> vector<8x512xf32>
    %242 = arith.addf %236, %241 : vector<8x512xf32>
    %c16_i32_118 = arith.constant 16 : i32
    %243 = tpu.dynamic_rotate %234 by %c16_i32_118 dim 1 : vector<8x512xf32>, i32 -> vector<8x512xf32>
    %244 = vector.broadcast %4 : vector<1x512xf32> to vector<8x512xf32>
    %245 = arith.mulf %243, %244 : vector<8x512xf32>
    %246 = arith.truncf %245 : vector<8x512xf32> to vector<8x512xbf16>
    %cst_119 = arith.constant dense<0.000000e+00> : vector<8x512xf32>
    %247 = tpu.matmul %49, %246, %cst_119 {dimension_numbers = #tpu.dot_dimension_numbers<[1], [0], [0], [1], [0, 0, 1, 1], [], []>} : vector<8x8xbf16>, vector<8x512xbf16>, vector<8x512xf32> -> vector<8x512xf32>
    %248 = arith.addf %242, %247 : vector<8x512xf32>
    %c15_i32_120 = arith.constant 15 : i32
    %249 = tpu.dynamic_rotate %234 by %c15_i32_120 dim 1 : vector<8x512xf32>, i32 -> vector<8x512xf32>
    %250 = vector.broadcast %5 : vector<1x512xf32> to vector<8x512xf32>
    %251 = arith.mulf %249, %250 : vector<8x512xf32>
    %252 = arith.truncf %251 : vector<8x512xf32> to vector<8x512xbf16>
    %cst_121 = arith.constant dense<0.000000e+00> : vector<8x512xf32>
    %253 = tpu.matmul %52, %252, %cst_121 {dimension_numbers = #tpu.dot_dimension_numbers<[1], [0], [0], [1], [0, 0, 1, 1], [], []>} : vector<8x8xbf16>, vector<8x512xbf16>, vector<8x512xf32> -> vector<8x512xf32>
    %254 = arith.addf %248, %253 : vector<8x512xf32>
    %c1_i32_122 = arith.constant 1 : i32
    %255 = tpu.dynamic_rotate %234 by %c1_i32_122 dim 1 : vector<8x512xf32>, i32 -> vector<8x512xf32>
    %256 = vector.broadcast %6 : vector<1x512xf32> to vector<8x512xf32>
    %257 = arith.mulf %255, %256 : vector<8x512xf32>
    %258 = arith.truncf %257 : vector<8x512xf32> to vector<8x512xbf16>
    %cst_123 = arith.constant dense<0.000000e+00> : vector<8x512xf32>
    %259 = tpu.matmul %55, %258, %cst_123 {dimension_numbers = #tpu.dot_dimension_numbers<[1], [0], [0], [1], [0, 0, 1, 1], [], []>} : vector<8x8xbf16>, vector<8x512xbf16>, vector<8x512xf32> -> vector<8x512xf32>
    %260 = arith.addf %254, %259 : vector<8x512xf32>
    %c511_i32_124 = arith.constant 511 : i32
    %261 = tpu.dynamic_rotate %234 by %c511_i32_124 dim 1 : vector<8x512xf32>, i32 -> vector<8x512xf32>
    %262 = vector.broadcast %7 : vector<1x512xf32> to vector<8x512xf32>
    %263 = arith.mulf %261, %262 : vector<8x512xf32>
    %264 = arith.truncf %263 : vector<8x512xf32> to vector<8x512xbf16>
    %cst_125 = arith.constant dense<0.000000e+00> : vector<8x512xf32>
    %265 = tpu.matmul %61, %264, %cst_125 {dimension_numbers = #tpu.dot_dimension_numbers<[1], [0], [0], [1], [0, 0, 1, 1], [], []>} : vector<8x8xbf16>, vector<8x512xbf16>, vector<8x512xf32> -> vector<8x512xf32>
    %266 = arith.addf %260, %265 : vector<8x512xf32>
    %c497_i32_126 = arith.constant 497 : i32
    %267 = tpu.dynamic_rotate %234 by %c497_i32_126 dim 1 : vector<8x512xf32>, i32 -> vector<8x512xf32>
    %268 = vector.broadcast %8 : vector<1x512xf32> to vector<8x512xf32>
    %269 = arith.mulf %267, %268 : vector<8x512xf32>
    %270 = arith.truncf %269 : vector<8x512xf32> to vector<8x512xbf16>
    %cst_127 = arith.constant dense<0.000000e+00> : vector<8x512xf32>
    %271 = tpu.matmul %64, %270, %cst_127 {dimension_numbers = #tpu.dot_dimension_numbers<[1], [0], [0], [1], [0, 0, 1, 1], [], []>} : vector<8x8xbf16>, vector<8x512xbf16>, vector<8x512xf32> -> vector<8x512xf32>
    %272 = arith.addf %266, %271 : vector<8x512xf32>
    %c496_i32_128 = arith.constant 496 : i32
    %273 = tpu.dynamic_rotate %234 by %c496_i32_128 dim 1 : vector<8x512xf32>, i32 -> vector<8x512xf32>
    %274 = vector.broadcast %9 : vector<1x512xf32> to vector<8x512xf32>
    %275 = arith.mulf %273, %274 : vector<8x512xf32>
    %276 = arith.truncf %275 : vector<8x512xf32> to vector<8x512xbf16>
    %cst_129 = arith.constant dense<0.000000e+00> : vector<8x512xf32>
    %277 = tpu.matmul %67, %276, %cst_129 {dimension_numbers = #tpu.dot_dimension_numbers<[1], [0], [0], [1], [0, 0, 1, 1], [], []>} : vector<8x8xbf16>, vector<8x512xbf16>, vector<8x512xf32> -> vector<8x512xf32>
    %278 = arith.addf %272, %277 : vector<8x512xf32>
    %c495_i32_130 = arith.constant 495 : i32
    %279 = tpu.dynamic_rotate %234 by %c495_i32_130 dim 1 : vector<8x512xf32>, i32 -> vector<8x512xf32>
    %280 = vector.broadcast %10 : vector<1x512xf32> to vector<8x512xf32>
    %281 = arith.mulf %279, %280 : vector<8x512xf32>
    %282 = arith.truncf %281 : vector<8x512xf32> to vector<8x512xbf16>
    %cst_131 = arith.constant dense<0.000000e+00> : vector<8x512xf32>
    %283 = tpu.matmul %70, %282, %cst_131 {dimension_numbers = #tpu.dot_dimension_numbers<[1], [0], [0], [1], [0, 0, 1, 1], [], []>} : vector<8x8xbf16>, vector<8x512xbf16>, vector<8x512xf32> -> vector<8x512xf32>
    %284 = arith.addf %278, %283 : vector<8x512xf32>
    %285 = arith.addf %284, %16 : vector<8x512xf32>
    %286 = arith.addf %181, %285 : vector<8x512xf32>
    %287 = vector.broadcast %0 : f32 to vector<8x512xf32>
    %288 = arith.mulf %287, %71 : vector<8x512xf32>
    %289 = arith.addf %286, %288 : vector<8x512xf32>
    %290 = vector.broadcast %2 : f32 to vector<8x512xf32>
    %291 = arith.mulf %289, %290 : vector<8x512xf32>
    %292 = arith.truncf %291 : vector<8x512xf32> to vector<8x512xbf16>
    %cst_132 = arith.constant dense<0.000000e+00> : vector<8x512xf32>
    %293 = tpu.matmul %31, %292, %cst_132 {dimension_numbers = #tpu.dot_dimension_numbers<[1], [0], [0], [1], [0, 0, 1, 1], [], []>} : vector<8x8xbf16>, vector<8x512xbf16>, vector<8x512xf32> -> vector<8x512xf32>
    %c17_i32_133 = arith.constant 17 : i32
    %294 = tpu.dynamic_rotate %291 by %c17_i32_133 dim 1 : vector<8x512xf32>, i32 -> vector<8x512xf32>
    %295 = vector.broadcast %3 : vector<1x512xf32> to vector<8x512xf32>
    %296 = arith.mulf %294, %295 : vector<8x512xf32>
    %297 = arith.truncf %296 : vector<8x512xf32> to vector<8x512xbf16>
    %cst_134 = arith.constant dense<0.000000e+00> : vector<8x512xf32>
    %298 = tpu.matmul %19, %297, %cst_134 {dimension_numbers = #tpu.dot_dimension_numbers<[1], [0], [0], [1], [0, 0, 1, 1], [], []>} : vector<8x8xbf16>, vector<8x512xbf16>, vector<8x512xf32> -> vector<8x512xf32>
    %299 = arith.addf %293, %298 : vector<8x512xf32>
    %c16_i32_135 = arith.constant 16 : i32
    %300 = tpu.dynamic_rotate %291 by %c16_i32_135 dim 1 : vector<8x512xf32>, i32 -> vector<8x512xf32>
    %301 = vector.broadcast %4 : vector<1x512xf32> to vector<8x512xf32>
    %302 = arith.mulf %300, %301 : vector<8x512xf32>
    %303 = arith.truncf %302 : vector<8x512xf32> to vector<8x512xbf16>
    %cst_136 = arith.constant dense<0.000000e+00> : vector<8x512xf32>
    %304 = tpu.matmul %22, %303, %cst_136 {dimension_numbers = #tpu.dot_dimension_numbers<[1], [0], [0], [1], [0, 0, 1, 1], [], []>} : vector<8x8xbf16>, vector<8x512xbf16>, vector<8x512xf32> -> vector<8x512xf32>
    %305 = arith.addf %299, %304 : vector<8x512xf32>
    %c15_i32_137 = arith.constant 15 : i32
    %306 = tpu.dynamic_rotate %291 by %c15_i32_137 dim 1 : vector<8x512xf32>, i32 -> vector<8x512xf32>
    %307 = vector.broadcast %5 : vector<1x512xf32> to vector<8x512xf32>
    %308 = arith.mulf %306, %307 : vector<8x512xf32>
    %309 = arith.truncf %308 : vector<8x512xf32> to vector<8x512xbf16>
    %cst_138 = arith.constant dense<0.000000e+00> : vector<8x512xf32>
    %310 = tpu.matmul %25, %309, %cst_138 {dimension_numbers = #tpu.dot_dimension_numbers<[1], [0], [0], [1], [0, 0, 1, 1], [], []>} : vector<8x8xbf16>, vector<8x512xbf16>, vector<8x512xf32> -> vector<8x512xf32>
    %311 = arith.addf %305, %310 : vector<8x512xf32>
    %c1_i32_139 = arith.constant 1 : i32
    %312 = tpu.dynamic_rotate %291 by %c1_i32_139 dim 1 : vector<8x512xf32>, i32 -> vector<8x512xf32>
    %313 = vector.broadcast %6 : vector<1x512xf32> to vector<8x512xf32>
    %314 = arith.mulf %312, %313 : vector<8x512xf32>
    %315 = arith.truncf %314 : vector<8x512xf32> to vector<8x512xbf16>
    %cst_140 = arith.constant dense<0.000000e+00> : vector<8x512xf32>
    %316 = tpu.matmul %28, %315, %cst_140 {dimension_numbers = #tpu.dot_dimension_numbers<[1], [0], [0], [1], [0, 0, 1, 1], [], []>} : vector<8x8xbf16>, vector<8x512xbf16>, vector<8x512xf32> -> vector<8x512xf32>
    %317 = arith.addf %311, %316 : vector<8x512xf32>
    %c511_i32_141 = arith.constant 511 : i32
    %318 = tpu.dynamic_rotate %291 by %c511_i32_141 dim 1 : vector<8x512xf32>, i32 -> vector<8x512xf32>
    %319 = vector.broadcast %7 : vector<1x512xf32> to vector<8x512xf32>
    %320 = arith.mulf %318, %319 : vector<8x512xf32>
    %321 = arith.truncf %320 : vector<8x512xf32> to vector<8x512xbf16>
    %cst_142 = arith.constant dense<0.000000e+00> : vector<8x512xf32>
    %322 = tpu.matmul %34, %321, %cst_142 {dimension_numbers = #tpu.dot_dimension_numbers<[1], [0], [0], [1], [0, 0, 1, 1], [], []>} : vector<8x8xbf16>, vector<8x512xbf16>, vector<8x512xf32> -> vector<8x512xf32>
    %323 = arith.addf %317, %322 : vector<8x512xf32>
    %c497_i32_143 = arith.constant 497 : i32
    %324 = tpu.dynamic_rotate %291 by %c497_i32_143 dim 1 : vector<8x512xf32>, i32 -> vector<8x512xf32>
    %325 = vector.broadcast %8 : vector<1x512xf32> to vector<8x512xf32>
    %326 = arith.mulf %324, %325 : vector<8x512xf32>
    %327 = arith.truncf %326 : vector<8x512xf32> to vector<8x512xbf16>
    %cst_144 = arith.constant dense<0.000000e+00> : vector<8x512xf32>
    %328 = tpu.matmul %37, %327, %cst_144 {dimension_numbers = #tpu.dot_dimension_numbers<[1], [0], [0], [1], [0, 0, 1, 1], [], []>} : vector<8x8xbf16>, vector<8x512xbf16>, vector<8x512xf32> -> vector<8x512xf32>
    %329 = arith.addf %323, %328 : vector<8x512xf32>
    %c496_i32_145 = arith.constant 496 : i32
    %330 = tpu.dynamic_rotate %291 by %c496_i32_145 dim 1 : vector<8x512xf32>, i32 -> vector<8x512xf32>
    %331 = vector.broadcast %9 : vector<1x512xf32> to vector<8x512xf32>
    %332 = arith.mulf %330, %331 : vector<8x512xf32>
    %333 = arith.truncf %332 : vector<8x512xf32> to vector<8x512xbf16>
    %cst_146 = arith.constant dense<0.000000e+00> : vector<8x512xf32>
    %334 = tpu.matmul %40, %333, %cst_146 {dimension_numbers = #tpu.dot_dimension_numbers<[1], [0], [0], [1], [0, 0, 1, 1], [], []>} : vector<8x8xbf16>, vector<8x512xbf16>, vector<8x512xf32> -> vector<8x512xf32>
    %335 = arith.addf %329, %334 : vector<8x512xf32>
    %c495_i32_147 = arith.constant 495 : i32
    %336 = tpu.dynamic_rotate %291 by %c495_i32_147 dim 1 : vector<8x512xf32>, i32 -> vector<8x512xf32>
    %337 = vector.broadcast %10 : vector<1x512xf32> to vector<8x512xf32>
    %338 = arith.mulf %336, %337 : vector<8x512xf32>
    %339 = arith.truncf %338 : vector<8x512xf32> to vector<8x512xbf16>
    %cst_148 = arith.constant dense<0.000000e+00> : vector<8x512xf32>
    %340 = tpu.matmul %43, %339, %cst_148 {dimension_numbers = #tpu.dot_dimension_numbers<[1], [0], [0], [1], [0, 0, 1, 1], [], []>} : vector<8x8xbf16>, vector<8x512xbf16>, vector<8x512xf32> -> vector<8x512xf32>
    %341 = arith.addf %335, %340 : vector<8x512xf32>
    %342 = arith.addf %341, %13 : vector<8x512xf32>
    %cst_149 = arith.constant 0.000000e+00 : f32
    %343 = vector.broadcast %cst_149 : f32 to vector<8x512xf32>
    %344 = arith.maximumf %342, %343 : vector<8x512xf32>
    %345 = arith.truncf %344 : vector<8x512xf32> to vector<8x512xbf16>
    %cst_150 = arith.constant dense<0.000000e+00> : vector<8x512xf32>
    %346 = tpu.matmul %58, %345, %cst_150 {dimension_numbers = #tpu.dot_dimension_numbers<[1], [0], [0], [1], [0, 0, 1, 1], [], []>} : vector<8x8xbf16>, vector<8x512xbf16>, vector<8x512xf32> -> vector<8x512xf32>
    %c17_i32_151 = arith.constant 17 : i32
    %347 = tpu.dynamic_rotate %344 by %c17_i32_151 dim 1 : vector<8x512xf32>, i32 -> vector<8x512xf32>
    %348 = vector.broadcast %3 : vector<1x512xf32> to vector<8x512xf32>
    %349 = arith.mulf %347, %348 : vector<8x512xf32>
    %350 = arith.truncf %349 : vector<8x512xf32> to vector<8x512xbf16>
    %cst_152 = arith.constant dense<0.000000e+00> : vector<8x512xf32>
    %351 = tpu.matmul %46, %350, %cst_152 {dimension_numbers = #tpu.dot_dimension_numbers<[1], [0], [0], [1], [0, 0, 1, 1], [], []>} : vector<8x8xbf16>, vector<8x512xbf16>, vector<8x512xf32> -> vector<8x512xf32>
    %352 = arith.addf %346, %351 : vector<8x512xf32>
    %c16_i32_153 = arith.constant 16 : i32
    %353 = tpu.dynamic_rotate %344 by %c16_i32_153 dim 1 : vector<8x512xf32>, i32 -> vector<8x512xf32>
    %354 = vector.broadcast %4 : vector<1x512xf32> to vector<8x512xf32>
    %355 = arith.mulf %353, %354 : vector<8x512xf32>
    %356 = arith.truncf %355 : vector<8x512xf32> to vector<8x512xbf16>
    %cst_154 = arith.constant dense<0.000000e+00> : vector<8x512xf32>
    %357 = tpu.matmul %49, %356, %cst_154 {dimension_numbers = #tpu.dot_dimension_numbers<[1], [0], [0], [1], [0, 0, 1, 1], [], []>} : vector<8x8xbf16>, vector<8x512xbf16>, vector<8x512xf32> -> vector<8x512xf32>
    %358 = arith.addf %352, %357 : vector<8x512xf32>
    %c15_i32_155 = arith.constant 15 : i32
    %359 = tpu.dynamic_rotate %344 by %c15_i32_155 dim 1 : vector<8x512xf32>, i32 -> vector<8x512xf32>
    %360 = vector.broadcast %5 : vector<1x512xf32> to vector<8x512xf32>
    %361 = arith.mulf %359, %360 : vector<8x512xf32>
    %362 = arith.truncf %361 : vector<8x512xf32> to vector<8x512xbf16>
    %cst_156 = arith.constant dense<0.000000e+00> : vector<8x512xf32>
    %363 = tpu.matmul %52, %362, %cst_156 {dimension_numbers = #tpu.dot_dimension_numbers<[1], [0], [0], [1], [0, 0, 1, 1], [], []>} : vector<8x8xbf16>, vector<8x512xbf16>, vector<8x512xf32> -> vector<8x512xf32>
    %364 = arith.addf %358, %363 : vector<8x512xf32>
    %c1_i32_157 = arith.constant 1 : i32
    %365 = tpu.dynamic_rotate %344 by %c1_i32_157 dim 1 : vector<8x512xf32>, i32 -> vector<8x512xf32>
    %366 = vector.broadcast %6 : vector<1x512xf32> to vector<8x512xf32>
    %367 = arith.mulf %365, %366 : vector<8x512xf32>
    %368 = arith.truncf %367 : vector<8x512xf32> to vector<8x512xbf16>
    %cst_158 = arith.constant dense<0.000000e+00> : vector<8x512xf32>
    %369 = tpu.matmul %55, %368, %cst_158 {dimension_numbers = #tpu.dot_dimension_numbers<[1], [0], [0], [1], [0, 0, 1, 1], [], []>} : vector<8x8xbf16>, vector<8x512xbf16>, vector<8x512xf32> -> vector<8x512xf32>
    %370 = arith.addf %364, %369 : vector<8x512xf32>
    %c511_i32_159 = arith.constant 511 : i32
    %371 = tpu.dynamic_rotate %344 by %c511_i32_159 dim 1 : vector<8x512xf32>, i32 -> vector<8x512xf32>
    %372 = vector.broadcast %7 : vector<1x512xf32> to vector<8x512xf32>
    %373 = arith.mulf %371, %372 : vector<8x512xf32>
    %374 = arith.truncf %373 : vector<8x512xf32> to vector<8x512xbf16>
    %cst_160 = arith.constant dense<0.000000e+00> : vector<8x512xf32>
    %375 = tpu.matmul %61, %374, %cst_160 {dimension_numbers = #tpu.dot_dimension_numbers<[1], [0], [0], [1], [0, 0, 1, 1], [], []>} : vector<8x8xbf16>, vector<8x512xbf16>, vector<8x512xf32> -> vector<8x512xf32>
    %376 = arith.addf %370, %375 : vector<8x512xf32>
    %c497_i32_161 = arith.constant 497 : i32
    %377 = tpu.dynamic_rotate %344 by %c497_i32_161 dim 1 : vector<8x512xf32>, i32 -> vector<8x512xf32>
    %378 = vector.broadcast %8 : vector<1x512xf32> to vector<8x512xf32>
    %379 = arith.mulf %377, %378 : vector<8x512xf32>
    %380 = arith.truncf %379 : vector<8x512xf32> to vector<8x512xbf16>
    %cst_162 = arith.constant dense<0.000000e+00> : vector<8x512xf32>
    %381 = tpu.matmul %64, %380, %cst_162 {dimension_numbers = #tpu.dot_dimension_numbers<[1], [0], [0], [1], [0, 0, 1, 1], [], []>} : vector<8x8xbf16>, vector<8x512xbf16>, vector<8x512xf32> -> vector<8x512xf32>
    %382 = arith.addf %376, %381 : vector<8x512xf32>
    %c496_i32_163 = arith.constant 496 : i32
    %383 = tpu.dynamic_rotate %344 by %c496_i32_163 dim 1 : vector<8x512xf32>, i32 -> vector<8x512xf32>
    %384 = vector.broadcast %9 : vector<1x512xf32> to vector<8x512xf32>
    %385 = arith.mulf %383, %384 : vector<8x512xf32>
    %386 = arith.truncf %385 : vector<8x512xf32> to vector<8x512xbf16>
    %cst_164 = arith.constant dense<0.000000e+00> : vector<8x512xf32>
    %387 = tpu.matmul %67, %386, %cst_164 {dimension_numbers = #tpu.dot_dimension_numbers<[1], [0], [0], [1], [0, 0, 1, 1], [], []>} : vector<8x8xbf16>, vector<8x512xbf16>, vector<8x512xf32> -> vector<8x512xf32>
    %388 = arith.addf %382, %387 : vector<8x512xf32>
    %c495_i32_165 = arith.constant 495 : i32
    %389 = tpu.dynamic_rotate %344 by %c495_i32_165 dim 1 : vector<8x512xf32>, i32 -> vector<8x512xf32>
    %390 = vector.broadcast %10 : vector<1x512xf32> to vector<8x512xf32>
    %391 = arith.mulf %389, %390 : vector<8x512xf32>
    %392 = arith.truncf %391 : vector<8x512xf32> to vector<8x512xbf16>
    %cst_166 = arith.constant dense<0.000000e+00> : vector<8x512xf32>
    %393 = tpu.matmul %70, %392, %cst_166 {dimension_numbers = #tpu.dot_dimension_numbers<[1], [0], [0], [1], [0, 0, 1, 1], [], []>} : vector<8x8xbf16>, vector<8x512xbf16>, vector<8x512xf32> -> vector<8x512xf32>
    %394 = arith.addf %388, %393 : vector<8x512xf32>
    %395 = arith.addf %394, %16 : vector<8x512xf32>
    %396 = arith.addf %291, %395 : vector<8x512xf32>
    %397 = vector.broadcast %0 : f32 to vector<8x512xf32>
    %398 = arith.mulf %397, %71 : vector<8x512xf32>
    %399 = arith.addf %396, %398 : vector<8x512xf32>
    %400 = vector.broadcast %2 : f32 to vector<8x512xf32>
    %401 = arith.mulf %399, %400 : vector<8x512xf32>
    %c0_167 = arith.constant 0 : index
    %c0_168 = arith.constant 0 : index
    %402 = vector.load %arg8[%c0_167, %c0_168] : memref<8x512xf32, #tpu.memory_space<vmem>>, vector<8x512xf32>
    tpu.vector_store %arg8[%c0_167, %c0_168], %401 {strides = array<i32>} : memref<8x512xf32, #tpu.memory_space<vmem>>, vector<8x512xf32>,
    return
  }
  func.func @transform_0(%arg0: i32) -> (i32, i32) {
    %c0_i32 = arith.constant 0 : i32
    %c0_i32_0 = arith.constant 0 : i32
    %c0_i32_1 = arith.constant 0 : i32
    return %c0_i32, %c0_i32_0 : i32, i32
  }
  func.func @transform_1(%arg0: i32) -> (i32, i32) {
    %c0_i32 = arith.constant 0 : i32
    %c0_i32_0 = arith.constant 0 : i32
    return %c0_i32, %arg0 : i32, i32
  }
  func.func @transform_2(%arg0: i32) -> (i32, i32, i32) {
    %c0_i32 = arith.constant 0 : i32
    %c0_i32_0 = arith.constant 0 : i32
    %c0_i32_1 = arith.constant 0 : i32
    %c0_i32_2 = arith.constant 0 : i32
    return %c0_i32, %c0_i32_0, %c0_i32_1 : i32, i32, i32
  }
  func.func @transform_3(%arg0: i32) -> (i32, i32) {
    %c0_i32 = arith.constant 0 : i32
    %c0_i32_0 = arith.constant 0 : i32
    %c0_i32_1 = arith.constant 0 : i32
    return %c0_i32, %c0_i32_0 : i32, i32
  }
  func.func @transform_4(%arg0: i32) -> (i32, i32, i32) {
    %c0_i32 = arith.constant 0 : i32
    %c0_i32_0 = arith.constant 0 : i32
    %c0_i32_1 = arith.constant 0 : i32
    %c0_i32_2 = arith.constant 0 : i32
    return %c0_i32, %c0_i32_0, %c0_i32_1 : i32, i32, i32
  }
  func.func @transform_5(%arg0: i32) -> (i32, i32) {
    %c0_i32 = arith.constant 0 : i32
    %c0_i32_0 = arith.constant 0 : i32
    %c0_i32_1 = arith.constant 0 : i32
    return %c0_i32, %c0_i32_0 : i32, i32
  }
  func.func @transform_6(%arg0: i32) -> (i32, i32) {
    %c0_i32 = arith.constant 0 : i32
    %c0_i32_0 = arith.constant 0 : i32
    %c0_i32_1 = arith.constant 0 : i32
    return %c0_i32, %c0_i32_0 : i32, i32
  }
  func.func @transform_7(%arg0: i32) -> (i32, i32) {
    %c0_i32 = arith.constant 0 : i32
    %c0_i32_0 = arith.constant 0 : i32
    return %c0_i32, %arg0 : i32, i32
  }
}

</mosaic_0001>

<bundles_post_ra>
// kernel: tpu_custom_call.1
= control target key start
LH: loop header
LB: loop body
LE: loop exit
PB: predicated region body
PF: predicated region fallthrough
CT: control target
= control target key end

     0   :  { %s6957_s28 = smov 17   ;;  %v8958_v4 = vmov 0   ;;  %s8950_s0 = inlined_call_operand.vmem [shape: f32[9,512], index: 0, kind: input, shape index: {}]   ;;  %s8951_s1 = inlined_call_operand.vmem [shape: f32[8,512], index: 1, kind: input, shape index: {}]   ;;  %s8952_s2 = inlined_call_operand.vmem [shape: f32[9,8,8], index: 2, kind: input, shape index: {}]   ;;  %s8953_s3 = inlined_call_operand.vmem [shape: f32[8,1], index: 3, kind: input, shape index: {}]   ;;  %s8954_s4 = inlined_call_operand.vmem [shape: f32[9,8,8], index: 4, kind: input, shape index: {}]   ;;  %s8955_s5 = inlined_call_operand.vmem [shape: f32[8,1], index: 5, kind: input, shape index: {}]   ;;  %s8956_s6 = inlined_call_operand.<no memory space> [shape: f32[1,1], index: 6, kind: input, shape index: {}]   ;;  %s8957_s7 = inlined_call_operand.hbm [shape: f32[8,512], index: 7, kind: output, shape index: {}]  }
   0x1   :  { %v7010_v0 = vld [vmem:[%s8951_s1 + $0x10] sm:$0xff]  ;;  %v7015_v1 = vld [vmem:[%s8951_s1] sm:$0xff]  ;;  %v7024_v2 = vld [vmem:[%s8951_s1 + $0x18] sm:$0xff]  ;;  %214 = vmatprep.mubr.bf16.mxu0 %v8958_v4  ;;  %255 = vmatprep.mubr.bf16.mxu1 %v8958_v4 }
   0x2   :  { %125 = vrot.lane.b32.xlu1 %v7010_v0, %s6957_s28  ;;  %121 = vrot.lane.b32.xlu0 %v7015_v1, %s6957_s28  ;;  %v7029_v3 = vld [vmem:[%s8951_s1 + $0x8] sm:$0xff] }
   0x3   :  { %6926 = vset.pattern.permute.xlu0 %v8958_v4 }
   0x4   :  { %13 = vsyncpa [#allocation4], 0  ;;  %s6959_s10 = smov 16   ;;  %s6960_s11 = smov 15   ;;  %v49_v5 = vld [vmem:[%s8953_s3] sm:$0xff]  ;;  %v129_v6 = vlaneseq  ;;  %vm169_vm1 = vcmask 1043456   ;;  %v118_v33 = vpack.c.bf16 %v7029_v3, %v7029_v3  ;;  %v120_v34 = vpack.c.bf16 %v7024_v2, %v7024_v2 }
   0x5   :  { %s6961_s12 = smov 1   ;;  %s6962_s13 = smov 127   ;;  %v34_v13 = vld [vmem:[%s8950_s0] ss:$8 sm:$0xf]  ;;  %v117_v35 = vpack.c.bf16 %v7015_v1, %v7015_v1  ;;  %v119_v36 = vpack.c.bf16 %v7010_v0, %v7010_v0  ;;  %vm165_vm3 = vcmask 64512  }
   0x6   :  { %127 = vrot.lane.b32.xlu1 %v7024_v2, %s6957_s28  ;;  %123 = vrot.lane.b32.xlu0 %v7029_v3, %s6957_s28  ;;  %s6963_s14 = smov 113   ;;  %s6964_s15 = smov 112   ;;  %v138_v7 = vshrl.u32 %v129_v6, 7  ;;  %v7097_v8 = vand.u32 127, %v129_v6  ;;  %v61_v32 = vld [vmem:[%s8952_s2] sm:$0xff] }
   0x7   :  { %s6965_s16 = smov 111   ;;  %v6675_v16 = vld [vmem:[%s8950_s0 + $0x1] ss:$8 sm:$0xf]  ;;  %v7155_v44 = vpack.c.bf16 %v61_v32, %v61_v32  ;;  %v268_v54 = vsel %vm169_vm1, %v117_v35, 0  ;;  %v274_v55 = vsel %vm169_vm1, %v119_v36, 0 }
   0x8   :  { %v7099_v9 = vsub.s32 1, %v138_v7  ;;  %v7101_v10 = vsub.s32 3, %v138_v7  ;;  %v7103_v11 = vsub.s32 0, %v138_v7  ;;  %v7105_v12 = vsub.s32 2, %v138_v7  ;;  %v6682_v36 = vld [vmem:[%s8952_s2 + $0x8] sm:$0xff] }
   0x9   :  { %vm131_vm0 = vcmp.lt.s32.totalorder %v7097_v8, 17  ;;  %vm369_vm2 = vcmp.lt.s32.totalorder %v7097_v8, 16  ;;  %9027 = vst [vmem:[#allocation6_spill] sm:$0xff] %v7155_v44  ;;  %v6676_v47 = vld [vmem:[%s8950_s0 + $0x2] ss:$8 sm:$0xf] }
   0xa   :  { %363 = vrot.lane.b32.xlu1 %v7029_v3, %s6959_s10  ;;  %361 = vrot.lane.b32.xlu0 %v7015_v1, %s6959_s10  ;;  %v7115_v17 = vrot.slane %v34_v13, %v7099_v9  ;;  %v7118_v18 = vrot.slane %v34_v13, %v7101_v10  ;;  %v7121_v19 = vrot.slane %v34_v13, %v7103_v11  ;;  %vm512_vm4 = vcmp.lt.s32.totalorder %v7097_v8, 15 }
   0xb   :  { %v7124_v20 = vrot.slane %v34_v13, %v7105_v12  ;;  %v7128_v23 = vrot.slane %v6675_v16, %v7099_v9  ;;  %v7158_v45 = vrot.slane %v6675_v16, %v7103_v11  ;;  %v7161_v46 = vrot.slane %v6675_v16, %v7101_v10 }
   0xc   :  { %v7172_v51 = vrot.slane %v6675_v16, %v7105_v12  ;;  %v7179_v56 = vrot.slane %v6676_v47, %v7099_v9  ;;  %v7211_v16 = vrot.slane %v6676_v47, %v7103_v11  ;;  %vm655_vm5 = vcmp.lt.s32.totalorder %v7097_v8, 1 }
   0xd   :  { %vm798_vm6 = vcmp.lt.s32.totalorder %v7097_v8, 127  ;;  %vm941_vm7 = vcmp.lt.s32.totalorder %v7097_v8, 113  ;;  %vm1084_vm8 = vcmp.lt.s32.totalorder %v7097_v8, 112  ;;  %vm1227_vm9 = vcmp.lt.s32.totalorder %v7097_v8, 111 }
   0xe   :  { %367 = vrot.lane.b32.xlu1 %v7024_v2, %s6959_s10  ;;  %365 = vrot.lane.b32.xlu0 %v7010_v0, %s6959_s10 }
  0x12   :  { %506 = vrot.lane.b32.xlu1 %v7029_v3, %s6960_s11  ;;  %504 = vrot.lane.b32.xlu0 %v7015_v1, %s6960_s11 }
  0x16   :  { %510 = vrot.lane.b32.xlu1 %v7024_v2, %s6960_s11  ;;  %508 = vrot.lane.b32.xlu0 %v7010_v0, %s6960_s11 }
  0x1a   :  { %649 = vrot.lane.b32.xlu1 %v7029_v3, %s6961_s12  ;;  %647 = vrot.lane.b32.xlu0 %v7015_v1, %s6961_s12 }
  0x1e   :  { %653 = vrot.lane.b32.xlu1 %v7024_v2, %s6961_s12  ;;  %651 = vrot.lane.b32.xlu0 %v7010_v0, %s6961_s12 }
  0x22   :  { %792 = vrot.lane.b32.xlu1 %v7029_v3, %s6962_s13  ;;  %790 = vrot.lane.b32.xlu0 %v7015_v1, %s6962_s13 }
  0x26   :  { %796 = vrot.lane.b32.xlu1 %v7024_v2, %s6962_s13  ;;  %794 = vrot.lane.b32.xlu0 %v7010_v0, %s6962_s13 }
  0x2a   :  { %935 = vrot.lane.b32.xlu1 %v7029_v3, %s6963_s14  ;;  %933 = vrot.lane.b32.xlu0 %v7015_v1, %s6963_s14 }
  0x2e   :  { %939 = vrot.lane.b32.xlu1 %v7024_v2, %s6963_s14  ;;  %937 = vrot.lane.b32.xlu0 %v7010_v0, %s6963_s14 }
  0x32   :  { %1078 = vrot.lane.b32.xlu1 %v7029_v3, %s6964_s15  ;;  %1076 = vrot.lane.b32.xlu0 %v7015_v1, %s6964_s15 }
  0x36   :  { %1082 = vrot.lane.b32.xlu1 %v7024_v2, %s6964_s15  ;;  %1080 = vrot.lane.b32.xlu0 %v7010_v0, %s6964_s15 }
  0x3a   :  { %1221 = vrot.lane.b32.xlu1 %v7029_v3, %s6965_s16  ;;  %1219 = vrot.lane.b32.xlu0 %v7015_v1, %s6965_s16 }
  0x3e   :  { %1225 = vrot.lane.b32.xlu1 %v7024_v2, %s6965_s16  ;;  %1223 = vrot.lane.b32.xlu0 %v7010_v0, %s6965_s16  ;;  %v6685_v0 = vld [vmem:[%s8952_s2 + $0x20] sm:$0xff] }
  0x3f   :  { %v7202_v13 = vpack.c.bf16 %v6685_v0, %v6685_v0 }
  0x41   :  { %9028 = vst [vmem:[#allocation7_spill] sm:$0xff] %v7202_v13 }
  0x42   :  { %52 = vperm.xlu0 %6926, %v49_v5  }
  0x74   :  { %v126_v14 = vpop.permute.xlu1 %125  ;;  %v122_v15 = vpop.permute.xlu0 %121 }
  0x78   :  { %v128_v21 = vpop.permute.xlu1 %127  ;;  %v124_v22 = vpop.permute.xlu0 %123 }
  0x79   :  { %v135_v24 = vsel %vm131_vm0, %v128_v21, %v122_v15  ;;  %v133_v25 = vsel %vm131_vm0, %v124_v22, %v126_v14  ;;  %v134_v26 = vsel %vm131_vm0, %v122_v15, %v124_v22  ;;  %v132_v27 = vsel %vm131_vm0, %v126_v14, %v128_v21  ;;  %v6677_v14 = vld [vmem:[%s8950_s0 + $0x3] ss:$8 sm:$0xf] }
  0x7a   :  { %v158_v28 = vmul.f32 %v7115_v17, %v134_v26  ;;  %v160_v29 = vmul.f32 %v7118_v18, %v132_v27  ;;  %v157_v30 = vmul.f32 %v7121_v19, %v135_v24  ;;  %v159_v31 = vmul.f32 %v7124_v20, %v133_v25 }
  0x7b   :  { %v7214_v21 = vrot.slane %v6676_v47, %v7105_v12  ;;  %v7217_v22 = vrot.slane %v6676_v47, %v7101_v10 }
  0x7c   :  { %v162_v37 = vpack.c.bf16 %v158_v28, %v158_v28  ;;  %v164_v38 = vpack.c.bf16 %v160_v29, %v160_v29  ;;  %v161_v39 = vpack.c.bf16 %v157_v30, %v157_v30  ;;  %v163_v40 = vpack.c.bf16 %v159_v31, %v159_v31  ;;  %v364_v41 = vpop.permute.xlu1 %363  ;;  %v362_v42 = vpop.permute.xlu0 %361 }
  0x7d   :  { %v372_v43 = vsel %vm369_vm2, %v362_v42, %v364_v41  ;;  %v7222_v28 = vrot.slane %v6677_v14, %v7099_v9 }
  0x7e   :  { %6698 = vmatprep.subr.msk.bf16.mxu0 %vm169_vm1, %v162_v37  ;;  %6700 = vmatprep.subr.msk.bf16.mxu1 %vm169_vm1, %v164_v38  ;;  %v171_v48 = vsel %vm169_vm1, %v161_v39, 0  ;;  %v177_v49 = vsel %vm169_vm1, %v163_v40, 0  ;;  %v396_v50 = vmul.f32 %v7128_v23, %v372_v43  ;;  %v7245_v43 = vpack.c.bf16 %v6682_v36, %v6682_v36 }
  0x7f   :  { %183 = vmatpush1.bf16.msra.mxu0 %v171_v48  ;;  %224 = vmatpush1.bf16.msra.mxu1 %v177_v49  ;;  %v7251_v48 = vrot.slane %v6677_v14, %v7103_v11  ;;  %v7254_v49 = vrot.slane %v6677_v14, %v7105_v12 }
  0x80   :  { %v368_v52 = vpop.permute.xlu1 %367  ;;  %v366_v53 = vpop.permute.xlu0 %365  ;;  %6702 = vmatprep.subr.msk.bf16.mxu0 %vm169_vm1, %v118_v33  ;;  %6704 = vmatprep.subr.msk.bf16.mxu1 %vm169_vm1, %v120_v34  ;;  %v400_v57 = vpack.c.bf16 %v396_v50, %v396_v50  ;;  %9029 = vst [vmem:[#allocation8_spill] sm:$0xff] %v7245_v43  ;;  %v7257_v50 = vrot.slane %v6677_v14, %v7101_v10 }
  0x81   :  { %v373_v58 = vsel %vm369_vm2, %v368_v52, %v362_v42  ;;  %v370_v59 = vsel %vm369_vm2, %v366_v53, %v368_v52  ;;  %v371_v60 = vsel %vm369_vm2, %v364_v41, %v366_v53 }
  0x82   :  { %6699 = vmatmul.mubr.msk.bf16.vlgmr.msra.gmra.mrb[0].mxu0 %vm165_vm3, %v7155_v44  ;;  %6701 = vmatmul.mubr.msk.bf16.vlgmr.msra.gmra.mrb[0].mxu1 %vm165_vm3, %v7155_v44  ;;  %v395_v61 = vmul.f32 %v7158_v45, %v373_v58  ;;  %v397_v62 = vmul.f32 %v7172_v51, %v371_v60  ;;  %v398_v63 = vmul.f32 %v7161_v46, %v370_v59 }
  0x83   :  { %280 = vmatpush1.bf16.msra.mxu0 %v268_v54  ;;  %321 = vmatpush1.bf16.msra.mxu1 %v274_v55 }
  0x84   :  { %v399_v1 = vpack.c.bf16 %v395_v61, %v395_v61  ;;  %v401_v2 = vpack.c.bf16 %v397_v62, %v397_v62  ;;  %v402_v3 = vpack.c.bf16 %v398_v63, %v398_v63  ;;  %v507_v5 = vpop.permute.xlu1 %506  ;;  %v505_v6 = vpop.permute.xlu0 %504  ;;  %311 = vmatprep.mubr.bf16.mxu0 %v8958_v4  ;;  %352 = vmatprep.mubr.bf16.mxu1 %v8958_v4 }
  0x85   :  { %v515_v7 = vsel %vm512_vm4, %v505_v6, %v507_v5  ;;  %6706 = vmatprep.subr.msk.bf16.mxu0 %vm169_vm1, %v400_v57  ;;  %v6678_v57 = vld [vmem:[%s8950_s0 + $0x5] ss:$8 sm:$0xf] }
  0x86   :  { %v539_v15 = vmul.f32 %v7179_v56, %v515_v7  ;;  %6708 = vmatprep.subr.msk.bf16.mxu1 %vm169_vm1, %v402_v3  ;;  %v407_v24 = vsel %vm169_vm1, %v399_v1, 0  ;;  %v413_v25 = vsel %vm169_vm1, %v401_v2, 0  ;;  %v7279_v1 = vrot.slane %v6678_v57, %v7103_v11  ;;  %v6683_v2 = vld [vmem:[%s8952_s2 + $0x10] sm:$0xff] }
  0x88   :  { %v511_v26 = vpop.permute.xlu1 %510  ;;  %v509_v27 = vpop.permute.xlu0 %508  ;;  %v543_v29 = vpack.c.bf16 %v539_v15, %v539_v15 }
  0x89   :  { %v516_v30 = vsel %vm512_vm4, %v511_v26, %v505_v6  ;;  %v513_v31 = vsel %vm512_vm4, %v509_v27, %v511_v26  ;;  %v514_v32 = vsel %vm512_vm4, %v507_v5, %v509_v27  ;;  %v7296_v26 = vrot.slane %v6678_v57, %v7099_v9 }
  0x8a   :  { %6703 = vmatmul.mubr.msk.bf16.vlgmr.msra.gmra.mrb[4].mxu0 %vm165_vm3, %v7202_v13  ;;  %6705 = vmatmul.mubr.msk.bf16.vlgmr.msra.gmra.mrb[4].mxu1 %vm165_vm3, %v7202_v13  ;;  %v538_v33 = vmul.f32 %v7211_v16, %v516_v30  ;;  %v540_v34 = vmul.f32 %v7214_v21, %v514_v32  ;;  %v541_v35 = vmul.f32 %v7217_v22, %v513_v31 }
  0x8b   :  { %419 = vmatpush1.bf16.msra.mxu0 %v407_v24  ;;  %460 = vmatpush1.bf16.msra.mxu1 %v413_v25  ;;  %v7289_v24 = vpack.c.bf16 %v6683_v2, %v6683_v2  ;;  %v7293_v25 = vrot.slane %v6678_v57, %v7101_v10  ;;  %v7299_v27 = vrot.slane %v6678_v57, %v7105_v12 }
  0x8c   :  { %v542_v37 = vpack.c.bf16 %v538_v33, %v538_v33  ;;  %v544_v38 = vpack.c.bf16 %v540_v34, %v540_v34  ;;  %v545_v39 = vpack.c.bf16 %v541_v35, %v541_v35  ;;  %v650_v40 = vpop.permute.xlu1 %649  ;;  %v648_v41 = vpop.permute.xlu0 %647  ;;  %450 = vmatprep.mubr.bf16.mxu0 %v8958_v4  ;;  %491 = vmatprep.mubr.bf16.mxu1 %v8958_v4  ;;  %v6679_v34 = vld [vmem:[%s8950_s0 + $0x6] ss:$8 sm:$0xf] }
  0x8d   :  { %v658_v42 = vsel %vm655_vm5, %v648_v41, %v650_v40  ;;  %6710 = vmatprep.subr.msk.bf16.mxu0 %vm169_vm1, %v543_v29  ;;  %9030 = vst [vmem:[#allocation9_spill] sm:$0xff] %v7289_v24 }
  0x8e   :  { %v682_v47 = vmul.f32 %v7222_v28, %v658_v42  ;;  %6712 = vmatprep.subr.msk.bf16.mxu1 %vm169_vm1, %v545_v39  ;;  %v550_v52 = vsel %vm169_vm1, %v542_v37, 0  ;;  %v556_v53 = vsel %vm169_vm1, %v544_v38, 0 }
  0x90   :  { %v654_v54 = vpop.permute.xlu1 %653  ;;  %v652_v55 = vpop.permute.xlu0 %651  ;;  %v686_v58 = vpack.c.bf16 %v682_v47, %v682_v47  ;;  %v7325_v47 = vrot.slane %v6679_v34, %v7103_v11 }
  0x91   :  { %v659_v59 = vsel %vm655_vm5, %v654_v54, %v648_v41  ;;  %v656_v60 = vsel %vm655_vm5, %v652_v55, %v654_v54  ;;  %v657_v61 = vsel %vm655_vm5, %v650_v40, %v652_v55  ;;  %v6684_v41 = vld [vmem:[%s8952_s2 + $0x18] sm:$0xff] }
  0x92   :  { %6707 = vmatmul.mubr.msk.bf16.vlgmr.msra.gmra.mrb[8].mxu0 %vm165_vm3, %v7245_v43  ;;  %6709 = vmatmul.mubr.msk.bf16.vlgmr.msra.gmra.mrb[8].mxu1 %vm165_vm3, %v7245_v43  ;;  %v681_v62 = vmul.f32 %v7251_v48, %v659_v59  ;;  %v683_v63 = vmul.f32 %v7254_v49, %v657_v61  ;;  %v684_v0 = vmul.f32 %v7257_v50, %v656_v60 }
  0x93   :  { %562 = vmatpush1.bf16.msra.mxu0 %v550_v52  ;;  %603 = vmatpush1.bf16.msra.mxu1 %v556_v53  ;;  %v7331_v59 = vpack.c.bf16 %v6684_v41, %v6684_v41  ;;  %v7336_v60 = vrot.slane %v6679_v34, %v7101_v10  ;;  %v7339_v61 = vrot.slane %v6679_v34, %v7099_v9 }
  0x94   :  { %v685_v3 = vpack.c.bf16 %v681_v62, %v681_v62  ;;  %v687_v5 = vpack.c.bf16 %v683_v63, %v683_v63  ;;  %v688_v6 = vpack.c.bf16 %v684_v0, %v684_v0  ;;  %v793_v7 = vpop.permute.xlu1 %792  ;;  %v791_v14 = vpop.permute.xlu0 %790  ;;  %593 = vmatprep.mubr.bf16.mxu0 %v8958_v4  ;;  %634 = vmatprep.mubr.bf16.mxu1 %v8958_v4 }
  0x95   :  { %v801_v15 = vsel %vm798_vm6, %v791_v14, %v793_v7  ;;  %6714 = vmatprep.subr.msk.bf16.mxu0 %vm169_vm1, %v686_v58  ;;  %9031 = vst [vmem:[#allocation10_spill] sm:$0xff] %v7331_v59  ;;  %v7342_v62 = vrot.slane %v6679_v34, %v7105_v12 }
  0x96   :  { %6716 = vmatprep.subr.msk.bf16.mxu1 %vm169_vm1, %v688_v6  ;;  %v824_v29 = vmul.f32 %v7279_v1, %v801_v15  ;;  %v693_v30 = vsel %vm169_vm1, %v685_v3, 0  ;;  %v699_v31 = vsel %vm169_vm1, %v687_v5, 0  ;;  %v6680_v6 = vld [vmem:[%s8950_s0 + $0x7] ss:$8 sm:$0xf] }
  0x97   :  { %v7368_v34 = vrot.slane %v6680_v6, %v7103_v11 }
  0x98   :  { %v797_v32 = vpop.permute.xlu1 %796  ;;  %v795_v33 = vpop.permute.xlu0 %794  ;;  %v828_v42 = vpack.c.bf16 %v824_v29, %v824_v29 }
  0x99   :  { %v802_v35 = vsel %vm798_vm6, %v797_v32, %v791_v14  ;;  %v799_v36 = vsel %vm798_vm6, %v795_v33, %v797_v32  ;;  %v800_v37 = vsel %vm798_vm6, %v793_v7, %v795_v33  ;;  %v6686_v32 = vld [vmem:[%s8952_s2 + $0x28] sm:$0xff] }
  0x9a   :  { %6711 = vmatmul.mubr.msk.bf16.vlgmr.msra.gmra.mrb[12].mxu0 %vm165_vm3, %v7289_v24  ;;  %6713 = vmatmul.mubr.msk.bf16.vlgmr.msra.gmra.mrb[12].mxu1 %vm165_vm3, %v7289_v24  ;;  %v827_v38 = vmul.f32 %v7293_v25, %v802_v35  ;;  %v825_v39 = vmul.f32 %v7296_v26, %v800_v37  ;;  %v826_v40 = vmul.f32 %v7299_v27, %v799_v36  ;;  %v836_v0 = vsel %vm169_vm1, %v828_v42, 0 }
  0x9b   :  { %705 = vmatpush1.bf16.msra.mxu0 %v693_v30  ;;  %746 = vmatpush1.bf16.msra.mxu1 %v699_v31  ;;  %v7374_v41 = vpack.c.bf16 %v6686_v32, %v6686_v32  ;;  %v7379_v42 = vrot.slane %v6680_v6, %v7101_v10 }
  0x9c   :  { %v831_v52 = vpack.c.bf16 %v827_v38, %v827_v38  ;;  %v829_v53 = vpack.c.bf16 %v825_v39, %v825_v39  ;;  %v830_v54 = vpack.c.bf16 %v826_v40, %v826_v40  ;;  %v936_v55 = vpop.permute.xlu1 %935  ;;  %v934_v57 = vpop.permute.xlu0 %933  ;;  %736 = vmatprep.mubr.bf16.mxu0 %v8958_v4  ;;  %777 = vmatprep.mubr.bf16.mxu1 %v8958_v4 }
  0x9d   :  { %v944_v58 = vsel %vm941_vm7, %v934_v57, %v936_v55  ;;  %9032 = vst [vmem:[#allocation11_spill] sm:$0xff] %v7374_v41 }
  0x9e   :  { %6718 = vmatprep.subr.msk.bf16.mxu0 %vm169_vm1, %v829_v53  ;;  %6720 = vmatprep.subr.msk.bf16.mxu1 %vm169_vm1, %v831_v52  ;;  %v967_v63 = vmul.f32 %v7325_v47, %v944_v58  ;;  %v842_v5 = vsel %vm169_vm1, %v830_v54, 0  ;;  %v7382_v52 = vrot.slane %v6680_v6, %v7099_v9  ;;  %v7385_v53 = vrot.slane %v6680_v6, %v7105_v12 }
  0xa0   :  { %v940_v2 = vpop.permute.xlu1 %939  ;;  %v938_v3 = vpop.permute.xlu0 %937  ;;  %v971_v33 = vpack.c.bf16 %v967_v63, %v967_v63 }
  0xa1   :  { %v945_v7 = vsel %vm941_vm7, %v940_v2, %v934_v57  ;;  %v942_v14 = vsel %vm941_vm7, %v938_v3, %v940_v2  ;;  %v943_v15 = vsel %vm941_vm7, %v936_v55, %v938_v3 }
  0xa2   :  { %6715 = vmatmul.mubr.msk.bf16.vlgmr.msra.gmra.mrb[16].mxu0 %vm165_vm3, %v7331_v59  ;;  %6717 = vmatmul.mubr.msk.bf16.vlgmr.msra.gmra.mrb[16].mxu1 %vm165_vm3, %v7331_v59  ;;  %v970_v29 = vmul.f32 %v7336_v60, %v945_v7  ;;  %v968_v30 = vmul.f32 %v7339_v61, %v943_v15  ;;  %v969_v31 = vmul.f32 %v7342_v62, %v942_v14  ;;  %v979_v55 = vsel %vm169_vm1, %v971_v33, 0  ;;  %v6687_v15 = vld [vmem:[%s8952_s2 + $0x30] sm:$0xff] }
  0xa3   :  { %848 = vmatpush1.bf16.msra.mxu0 %v836_v0  ;;  %889 = vmatpush1.bf16.msra.mxu1 %v842_v5  ;;  %v6681_v0 = vld [vmem:[%s8950_s0 + $0x20] ss:$8 sm:$0xf] }
  0xa4   :  { %v974_v35 = vpack.c.bf16 %v970_v29, %v970_v29  ;;  %v972_v36 = vpack.c.bf16 %v968_v30, %v968_v30  ;;  %v973_v37 = vpack.c.bf16 %v969_v31, %v969_v31  ;;  %v1079_v38 = vpop.permute.xlu1 %1078  ;;  %v1077_v39 = vpop.permute.xlu0 %1076  ;;  %879 = vmatprep.mubr.bf16.mxu0 %v8958_v4  ;;  %920 = vmatprep.mubr.bf16.mxu1 %v8958_v4 }
  0xa5   :  { %v1087_v40 = vsel %vm1084_vm8, %v1077_v39, %v1079_v38  ;;  %v7411_v30 = vrot.slane %v6681_v0, %v7103_v11  ;;  %v7422_v11 = vrot.slane %v6681_v0, %v7101_v10 }
  0xa6   :  { %6722 = vmatprep.subr.msk.bf16.mxu0 %vm169_vm1, %v972_v36  ;;  %6724 = vmatprep.subr.msk.bf16.mxu1 %vm169_vm1, %v974_v35  ;;  %v1110_v54 = vmul.f32 %v7368_v34, %v1087_v40  ;;  %v985_v63 = vsel %vm169_vm1, %v973_v37, 0  ;;  %v7428_v40 = vrot.slane %v6681_v0, %v7105_v12 }
  0xa7   :  { %9034 = vst [vmem:[#allocation13_spill] sm:$0xff] %v7422_v11 }
  0xa8   :  { %v1083_v57 = vpop.permute.xlu1 %1082  ;;  %v1081_v58 = vpop.permute.xlu0 %1080  ;;  %v1114_v29 = vpack.c.bf16 %v1110_v54, %v1110_v54 }
  0xa9   :  { %v1088_v2 = vsel %vm1084_vm8, %v1083_v57, %v1077_v39  ;;  %v1085_v3 = vsel %vm1084_vm8, %v1081_v58, %v1083_v57  ;;  %v1086_v5 = vsel %vm1084_vm8, %v1079_v38, %v1081_v58  ;;  %v7417_v38 = vpack.c.bf16 %v6687_v15, %v6687_v15 }
  0xaa   :  { %6719 = vmatmul.mubr.msk.bf16.vlgmr.msra.gmra.mrb[20].mxu0 %vm165_vm3, %v7374_v41  ;;  %6721 = vmatmul.mubr.msk.bf16.vlgmr.msra.gmra.mrb[20].mxu1 %vm165_vm3, %v7374_v41  ;;  %v1113_v6 = vmul.f32 %v7379_v42, %v1088_v2  ;;  %v1111_v7 = vmul.f32 %v7382_v52, %v1086_v5  ;;  %v1112_v14 = vmul.f32 %v7385_v53, %v1085_v3 }
  0xab   :  { %991 = vmatpush1.bf16.msra.mxu0 %v979_v55  ;;  %1032 = vmatpush1.bf16.msra.mxu1 %v985_v63  ;;  %9033 = vst [vmem:[#allocation12_spill] sm:$0xff] %v7417_v38  ;;  %v7425_v39 = vrot.slane %v6681_v0, %v7099_v9  ;;  %v1122_v55 = vsel %vm169_vm1, %v1114_v29, 0 }
  0xac   :  { %v1117_v31 = vpack.c.bf16 %v1113_v6, %v1113_v6  ;;  %v1115_v32 = vpack.c.bf16 %v1111_v7, %v1111_v7  ;;  %v1116_v33 = vpack.c.bf16 %v1112_v14, %v1112_v14  ;;  %v1222_v35 = vpop.permute.xlu1 %1221  ;;  %v1220_v36 = vpop.permute.xlu0 %1219  ;;  %1022 = vmatprep.mubr.bf16.mxu0 %v8958_v4  ;;  %1063 = vmatprep.mubr.bf16.mxu1 %v8958_v4  ;;  %v6688_v6 = vld [vmem:[%s8952_s2 + $0x38] sm:$0xff] }
  0xad   :  { %v1230_v37 = vsel %vm1227_vm9, %v1220_v36, %v1222_v35  ;;  %v7451_v29 = vpack.c.bf16 %v6688_v6, %v6688_v6 }
  0xae   :  { %6726 = vmatprep.subr.msk.bf16.mxu0 %vm169_vm1, %v1115_v32  ;;  %6728 = vmatprep.subr.msk.bf16.mxu1 %vm169_vm1, %v1117_v31  ;;  %v1253_v54 = vmul.f32 %v7411_v30, %v1230_v37  ;;  %v1128_v63 = vsel %vm169_vm1, %v1116_v33, 0  ;;  %v6689_v33 = vld [vmem:[%s8952_s2 + $0x40] sm:$0xff] }
  0xaf   :  { %9035 = vst [vmem:[#allocation14_spill] sm:$0xff] %v7451_v29 }
  0xb0   :  { %v1226_v57 = vpop.permute.xlu1 %1225  ;;  %v1224_v58 = vpop.permute.xlu0 %1223  ;;  %v1257_v5 = vpack.c.bf16 %v1253_v54, %v1253_v54 }
  0xb1   :  { %v1231_v2 = vsel %vm1227_vm9, %v1226_v57, %v1220_v36  ;;  %v1228_v10 = vsel %vm1227_vm9, %v1224_v58, %v1226_v57  ;;  %v1229_v9 = vsel %vm1227_vm9, %v1222_v35, %v1224_v58  ;;  %v7466_v35 = vpack.c.bf16 %v6689_v33, %v6689_v33 }
  0xb2   :  { %6723 = vmatmul.mubr.msk.bf16.vlgmr.msra.gmra.mrb[24].mxu0 %vm165_vm3, %v7417_v38  ;;  %6725 = vmatmul.mubr.msk.bf16.vlgmr.msra.gmra.mrb[24].mxu1 %vm165_vm3, %v7417_v38  ;;  %v1256_v12 = vmul.f32 %v7422_v11, %v1231_v2  ;;  %v1254_v0 = vmul.f32 %v7425_v39, %v1229_v9  ;;  %v1255_v3 = vmul.f32 %v7428_v40, %v1228_v10  ;;  %v1265_v31 = vsel %vm169_vm1, %v1257_v5, 0 }
  0xb3   :  { %1134 = vmatpush1.bf16.msra.mxu0 %v1122_v55  ;;  %1175 = vmatpush1.bf16.msra.mxu1 %v1128_v63  ;;  %9036 = vst [vmem:[#allocation15_spill] sm:$0xff] %v7466_v35 }
  0xb4   :  { %v1260_v7 = vpack.c.bf16 %v1256_v12, %v1256_v12  ;;  %v1258_v14 = vpack.c.bf16 %v1254_v0, %v1254_v0  ;;  %v1259_v15 = vpack.c.bf16 %v1255_v3, %v1255_v3  ;;  %1165 = vmatprep.mubr.bf16.mxu0 %v8958_v4  ;;  %1206 = vmatprep.mubr.bf16.mxu1 %v8958_v4 }
  0xb6   :  { %6730 = vmatprep.subr.msk.bf16.mxu0 %vm169_vm1, %v1258_v14  ;;  %6732 = vmatprep.subr.msk.bf16.mxu1 %vm169_vm1, %v1260_v7  ;;  %v1271_v32 = vsel %vm169_vm1, %v1259_v15, 0 }
  0xba   :  { %6727 = vmatmul.mubr.msk.bf16.vlgmr.msra.gmra.mrb[28].mxu0 %vm165_vm3, %v7451_v29  ;;  %6729 = vmatmul.mubr.msk.bf16.vlgmr.msra.gmra.mrb[28].mxu1 %vm165_vm3, %v7451_v29 }
  0xbb   :  { %1277 = vmatpush1.bf16.msra.mxu0 %v1265_v31  ;;  %1318 = vmatpush1.bf16.msra.mxu1 %v1271_v32 }
  0xbc   :  { %1308 = vmatprep.mubr.bf16.mxu0 %v8958_v4  ;;  %1349 = vmatprep.mubr.bf16.mxu1 %v8958_v4 }
  0xc2   :  { %6731 = vmatmul.mubr.msk.bf16.vlgmr.msra.gmra.mrb[32].mxu0 %vm165_vm3, %v7466_v35  ;;  %6733 = vmatmul.mubr.msk.bf16.vlgmr.msra.gmra.mrb[32].mxu1 %vm165_vm3, %v7466_v35 }
  0xc3   :  { %1441 = vmatprep.mubr.bf16.mxu0 %v8958_v4  ;;  %1482 = vmatprep.mubr.bf16.mxu1 %v8958_v4 }
 0x155   :  { %v216_v36 = vpop.f32.mrb[0].mxu0  ;;  %v257_v37 = vpop.f32.mrb[0].mxu1 }
 0x156   :  { %v218_v54 = vpop.f32.mrb[1].mxu0  ;;  %v259_v55 = vpop.f32.mrb[1].mxu1 }
 0x157   :  { %v220_v57 = vpop.f32.mrb[2].mxu0  ;;  %v261_v58 = vpop.f32.mrb[2].mxu1 }
 0x158   :  { %v221_v63 = vpop.f32.mrb[3].mxu0  ;;  %v262_v2 = vpop.f32.mrb[3].mxu1 }
 0x15d   :  { %v313_v10 = vpop.f32.mrb[4].mxu0  ;;  %v354_v9 = vpop.f32.mrb[4].mxu1 }
 0x15e   :  { %v314_v12 = vadd.f32 %v313_v10, %v216_v36  ;;  %v355_v0 = vadd.f32 %v354_v9, %v257_v37  ;;  %v315_v3 = vpop.f32.mrb[5].mxu0  ;;  %v356_v5 = vpop.f32.mrb[5].mxu1 }
 0x15f   :  { %v316_v6 = vadd.f32 %v315_v3, %v218_v54  ;;  %v357_v7 = vadd.f32 %v356_v5, %v259_v55  ;;  %v317_v14 = vpop.f32.mrb[6].mxu0  ;;  %v358_v15 = vpop.f32.mrb[6].mxu1 }
 0x160   :  { %v318_v31 = vpop.f32.mrb[7].mxu0  ;;  %v359_v32 = vpop.f32.mrb[7].mxu1 }
 0x165   :  { %v452_v33 = vpop.f32.mrb[8].mxu0  ;;  %v493_v4 = vpop.f32.mrb[8].mxu1 }
 0x166   :  { %v500_v35 = vadd.f32 %v452_v33, %v314_v12  ;;  %v502_v29 = vadd.f32 %v493_v4, %v355_v0  ;;  %v454_v57 = vpop.f32.mrb[9].mxu0  ;;  %v495_v58 = vpop.f32.mrb[9].mxu1 }
 0x167   :  { %v501_v63 = vadd.f32 %v454_v57, %v316_v6  ;;  %v503_v2 = vadd.f32 %v495_v58, %v357_v7  ;;  %v456_v38 = vpop.f32.mrb[10].mxu0  ;;  %v497_v41 = vpop.f32.mrb[10].mxu1 }
 0x168   :  { %v457_v36 = vpop.f32.mrb[11].mxu0  ;;  %v498_v37 = vpop.f32.mrb[11].mxu1 }
 0x16d   :  { %v595_v10 = vpop.f32.mrb[12].mxu0  ;;  %v636_v9 = vpop.f32.mrb[12].mxu1 }
 0x16e   :  { %v643_v54 = vadd.f32 %v595_v10, %v500_v35  ;;  %v645_v55 = vadd.f32 %v636_v9, %v502_v29  ;;  %v597_v3 = vpop.f32.mrb[13].mxu0  ;;  %v638_v5 = vpop.f32.mrb[13].mxu1 }
 0x16f   :  { %v644_v14 = vadd.f32 %v597_v3, %v501_v63  ;;  %v646_v15 = vadd.f32 %v638_v5, %v503_v2  ;;  %v599_v31 = vpop.f32.mrb[14].mxu0  ;;  %v640_v32 = vpop.f32.mrb[14].mxu1 }
 0x170   :  { %v600_v12 = vpop.f32.mrb[15].mxu0  ;;  %v641_v4 = vpop.f32.mrb[15].mxu1 }
 0x175   :  { %v738_v0 = vpop.f32.mrb[16].mxu0  ;;  %v779_v33 = vpop.f32.mrb[16].mxu1 }
 0x176   :  { %v786_v6 = vadd.f32 %v738_v0, %v643_v54  ;;  %v788_v7 = vadd.f32 %v779_v33, %v645_v55  ;;  %v740_v38 = vpop.f32.mrb[17].mxu0  ;;  %v781_v41 = vpop.f32.mrb[17].mxu1 }
 0x177   :  { %v787_v57 = vadd.f32 %v740_v38, %v644_v14  ;;  %v789_v58 = vadd.f32 %v781_v41, %v646_v15  ;;  %v742_v36 = vpop.f32.mrb[18].mxu0  ;;  %v783_v37 = vpop.f32.mrb[18].mxu1 }
 0x178   :  { %v743_v35 = vpop.f32.mrb[19].mxu0  ;;  %v784_v29 = vpop.f32.mrb[19].mxu1 }
 0x17d   :  { %v881_v10 = vpop.f32.mrb[20].mxu0  ;;  %v922_v9 = vpop.f32.mrb[20].mxu1 }
 0x17e   :  { %v929_v63 = vadd.f32 %v881_v10, %v786_v6  ;;  %v931_v2 = vadd.f32 %v922_v9, %v788_v7  ;;  %v883_v3 = vpop.f32.mrb[21].mxu0  ;;  %v924_v5 = vpop.f32.mrb[21].mxu1 }
 0x17f   :  { %v930_v31 = vadd.f32 %v883_v3, %v787_v57  ;;  %v932_v32 = vadd.f32 %v924_v5, %v789_v58  ;;  %v885_v12 = vpop.f32.mrb[22].mxu0  ;;  %v926_v4 = vpop.f32.mrb[22].mxu1 }
 0x180   :  { %v886_v54 = vpop.f32.mrb[23].mxu0  ;;  %v927_v55 = vpop.f32.mrb[23].mxu1 }
 0x185   :  { %v1024_v0 = vpop.f32.mrb[24].mxu0  ;;  %v1065_v33 = vpop.f32.mrb[24].mxu1 }
 0x186   :  { %v1072_v14 = vadd.f32 %v1024_v0, %v929_v63  ;;  %v1074_v15 = vadd.f32 %v1065_v33, %v931_v2  ;;  %v1026_v38 = vpop.f32.mrb[25].mxu0  ;;  %v1067_v41 = vpop.f32.mrb[25].mxu1 }
 0x187   :  { %v1073_v36 = vadd.f32 %v1026_v38, %v930_v31  ;;  %v1075_v37 = vadd.f32 %v1067_v41, %v932_v32  ;;  %v1028_v35 = vpop.f32.mrb[26].mxu0  ;;  %v1069_v29 = vpop.f32.mrb[26].mxu1 }
 0x188   :  { %v1029_v6 = vpop.f32.mrb[27].mxu0  ;;  %v1070_v7 = vpop.f32.mrb[27].mxu1 }
 0x189   :  { %v7474_v0 = vpop.permute.xlu0 %52 }
 0x18a   :  { %9037 = vst [vmem:[#allocation16_spill] sm:$0xff] %v7474_v0 }
 0x18d   :  { %v1167_v10 = vpop.f32.mrb[28].mxu0  ;;  %v1208_v9 = vpop.f32.mrb[28].mxu1 }
 0x18e   :  { %v1215_v57 = vadd.f32 %v1167_v10, %v1072_v14  ;;  %v1217_v58 = vadd.f32 %v1208_v9, %v1074_v15  ;;  %v1169_v3 = vpop.f32.mrb[29].mxu0  ;;  %v1210_v5 = vpop.f32.mrb[29].mxu1 }
 0x18f   :  { %v1216_v12 = vadd.f32 %v1169_v3, %v1073_v36  ;;  %v1218_v4 = vadd.f32 %v1210_v5, %v1075_v37  ;;  %v1171_v54 = vpop.f32.mrb[30].mxu0  ;;  %v1212_v55 = vpop.f32.mrb[30].mxu1 }
 0x190   :  { %v1172_v63 = vpop.f32.mrb[31].mxu0  ;;  %v1213_v2 = vpop.f32.mrb[31].mxu1 }
 0x195   :  { %v1310_v31 = vpop.f32.mrb[32].mxu0  ;;  %v1351_v32 = vpop.f32.mrb[32].mxu1 }
 0x196   :  { %v1358_v33 = vadd.f32 %v1310_v31, %v1215_v57  ;;  %v1360_v38 = vadd.f32 %v1351_v32, %v1217_v58  ;;  %v1312_v41 = vpop.f32.mrb[33].mxu0  ;;  %v1353_v35 = vpop.f32.mrb[33].mxu1 }
 0x197   :  { %v1359_v29 = vadd.f32 %v1312_v41, %v1216_v12  ;;  %v1361_v6 = vadd.f32 %v1353_v35, %v1218_v4  ;;  %v1314_v14 = vpop.f32.mrb[34].mxu0  ;;  %v1355_v15 = vpop.f32.mrb[34].mxu1  ;;  %v55_v4 = vld [vmem:[%s8955_s5] sm:$0xff] }
 0x198   :  { %v1315_v7 = vpop.f32.mrb[35].mxu0  ;;  %v1356_v10 = vpop.f32.mrb[35].mxu1  ;;  %v1364_v36 = vadd.f32 %v1360_v38, %v7474_v0  ;;  %v1362_v37 = vadd.f32 %v1358_v33, %v7474_v0 }
 0x199   :  { %v1363_v5 = vadd.f32 %v1359_v29, %v7474_v0  ;;  %v1365_v58 = vadd.f32 %v1361_v6, %v7474_v0 }
 0x19a   :  { %v7478_v9 = vmax.f32 %v1364_v36, 0.0  ;;  %v7480_v3 = vmax.f32 %v1362_v37, 0.0  ;;  %v87_v36 = vld [vmem:[%s8954_s4] sm:$0xff] }
 0x19b   :  { %v7487_v57 = vmax.f32 %v1363_v5, 0.0  ;;  %v7494_v12 = vmax.f32 %v1365_v58, 0.0 }
 0x19c   :  { %1378 = vrot.lane.b32.xlu0 %v7478_v9, %s6957_s28  ;;  %1374 = vrot.lane.b32.xlu1 %v7480_v3, %s6957_s28 }
 0x1a0   :  { %1588 = vrot.lane.b32.xlu0 %v7480_v3, %s6959_s10  ;;  %1376 = vrot.lane.b32.xlu1 %v7487_v57, %s6957_s28 }
 0x1a4   :  { %1592 = vrot.lane.b32.xlu0 %v7478_v9, %s6959_s10  ;;  %1380 = vrot.lane.b32.xlu1 %v7494_v12, %s6957_s28 }
 0x1a8   :  { %1709 = vrot.lane.b32.xlu0 %v7480_v3, %s6960_s11  ;;  %1590 = vrot.lane.b32.xlu1 %v7487_v57, %s6959_s10 }
 0x1ac   :  { %1713 = vrot.lane.b32.xlu0 %v7478_v9, %s6960_s11  ;;  %1594 = vrot.lane.b32.xlu1 %v7494_v12, %s6959_s10 }
 0x1b0   :  { %1830 = vrot.lane.b32.xlu0 %v7480_v3, %s6961_s12  ;;  %1711 = vrot.lane.b32.xlu1 %v7487_v57, %s6960_s11 }
 0x1b4   :  { %1834 = vrot.lane.b32.xlu0 %v7478_v9, %s6961_s12  ;;  %1715 = vrot.lane.b32.xlu1 %v7494_v12, %s6960_s11 }
 0x1b8   :  { %1951 = vrot.lane.b32.xlu0 %v7480_v3, %s6962_s13  ;;  %1832 = vrot.lane.b32.xlu1 %v7487_v57, %s6961_s12 }
 0x1bc   :  { %1955 = vrot.lane.b32.xlu0 %v7478_v9, %s6962_s13  ;;  %1836 = vrot.lane.b32.xlu1 %v7494_v12, %s6961_s12 }
 0x1c0   :  { %2072 = vrot.lane.b32.xlu0 %v7480_v3, %s6963_s14  ;;  %1953 = vrot.lane.b32.xlu1 %v7487_v57, %s6962_s13 }
 0x1c4   :  { %2076 = vrot.lane.b32.xlu0 %v7478_v9, %s6963_s14  ;;  %1957 = vrot.lane.b32.xlu1 %v7494_v12, %s6962_s13 }
 0x1c8   :  { %2193 = vrot.lane.b32.xlu0 %v7480_v3, %s6964_s15  ;;  %2074 = vrot.lane.b32.xlu1 %v7487_v57, %s6963_s14 }
 0x1cc   :  { %2197 = vrot.lane.b32.xlu0 %v7478_v9, %s6964_s15  ;;  %2078 = vrot.lane.b32.xlu1 %v7494_v12, %s6963_s14 }
 0x1d0   :  { %2314 = vrot.lane.b32.xlu0 %v7480_v3, %s6965_s16  ;;  %2195 = vrot.lane.b32.xlu1 %v7487_v57, %s6964_s15 }
 0x1d4   :  { %2318 = vrot.lane.b32.xlu0 %v7478_v9, %s6965_s16  ;;  %2199 = vrot.lane.b32.xlu1 %v7494_v12, %s6964_s15 }
 0x1d8   :  { %58 = vperm.xlu0 %6926, %v55_v4   ;;  %2316 = vrot.lane.b32.xlu1 %v7487_v57, %s6965_s16 }
 0x1dc   :  { %2320 = vrot.lane.b32.xlu1 %v7494_v12, %s6965_s16 }
 0x20e   :  { %v1379_v54 = vpop.permute.xlu0 %1378  ;;  %v1375_v55 = vpop.permute.xlu1 %1374 }
 0x212   :  { %v1589_v63 = vpop.permute.xlu0 %1588  ;;  %v1377_v2 = vpop.permute.xlu1 %1376 }
 0x213   :  { %v1383_v31 = vsel %vm131_vm0, %v1377_v2, %v1379_v54  ;;  %v1384_v32 = vsel %vm131_vm0, %v1375_v55, %v1377_v2 }
 0x214   :  { %v1387_v33 = vmul.f32 %v1384_v32, %v7115_v17  ;;  %v1388_v38 = vmul.f32 %v1383_v31, %v7124_v20  ;;  %v1371_v31 = vpack.c.bf16 %v7487_v57, %v7487_v57  ;;  %v1373_v32 = vpack.c.bf16 %v7494_v12, %v7494_v12 }
 0x216   :  { %v1391_v41 = vpack.c.bf16 %v1387_v33, %v1387_v33  ;;  %v1593_v35 = vpop.permute.xlu0 %1592  ;;  %v1381_v29 = vpop.permute.xlu1 %1380  ;;  %v1392_v15 = vpack.c.bf16 %v1388_v38, %v1388_v38  ;;  %v7581_v33 = vpack.c.bf16 %v87_v36, %v87_v36 }
 0x217   :  { %v1382_v6 = vsel %vm131_vm0, %v1379_v54, %v1381_v29  ;;  %v1385_v14 = vsel %vm131_vm0, %v1381_v29, %v1375_v55  ;;  %v1370_v54 = vpack.c.bf16 %v7480_v3, %v7480_v3  ;;  %v1372_v55 = vpack.c.bf16 %v7478_v9, %v7478_v9 }
 0x218   :  { %v1386_v7 = vmul.f32 %v1385_v14, %v7121_v19  ;;  %v1389_v10 = vmul.f32 %v1382_v6, %v7118_v18  ;;  %6734 = vmatprep.subr.msk.bf16.mxu0 %vm169_vm1, %v1391_v41  ;;  %9038 = vst [vmem:[#allocation17_spill] sm:$0xff] %v7581_v33  ;;  %v1404_v3 = vsel %vm169_vm1, %v1392_v15, 0 }
 0x21a   :  { %v1390_v37 = vpack.c.bf16 %v1386_v7, %v1386_v7  ;;  %v1393_v5 = vpack.c.bf16 %v1389_v10, %v1389_v10  ;;  %v1710_v58 = vpop.permute.xlu0 %1709  ;;  %v1591_v4 = vpop.permute.xlu1 %1590  ;;  %v1495_v7 = vsel %vm169_vm1, %v1370_v54, 0  ;;  %v9039_v54 = vmov 0  }
 0x21b   :  { %v1598_v2 = vsel %vm369_vm2, %v1589_v63, %v1591_v4  ;;  %v1597_v38 = vsel %vm369_vm2, %v1591_v4, %v1593_v35 }
 0x21c   :  { %v1601_v41 = vmul.f32 %v1598_v2, %v7128_v23  ;;  %6736 = vmatprep.subr.msk.bf16.mxu1 %vm169_vm1, %v1393_v5  ;;  %v1398_v9 = vsel %vm169_vm1, %v1390_v37, 0  ;;  %v1602_v12 = vmul.f32 %v1597_v38, %v7172_v51  ;;  %v1501_v37 = vsel %vm169_vm1, %v1372_v55, 0 }
 0x21d   :  { %1410 = vmatpush1.bf16.msra.mxu0 %v1398_v9  ;;  %1451 = vmatpush1.bf16.msra.mxu1 %v1404_v3 }
 0x21e   :  { %v1714_v29 = vpop.permute.xlu0 %1713  ;;  %6738 = vmatprep.subr.msk.bf16.mxu0 %vm169_vm1, %v1371_v31  ;;  %6740 = vmatprep.subr.msk.bf16.mxu1 %vm169_vm1, %v1373_v32  ;;  %v1595_v57 = vpop.permute.xlu1 %1594  ;;  %v1605_v10 = vpack.c.bf16 %v1601_v41, %v1601_v41  ;;  %v1606_v55 = vpack.c.bf16 %v1602_v12, %v1602_v12 }
 0x21f   :  { %v1596_v6 = vsel %vm369_vm2, %v1593_v35, %v1595_v57  ;;  %v1599_v14 = vsel %vm369_vm2, %v1595_v57, %v1589_v63  ;;  %v6693_v35 = vld [vmem:[%s8954_s4 + $0x20] sm:$0xff] }
 0x220   :  { %v1600_v15 = vmul.f32 %v1599_v14, %v7158_v45  ;;  %v1603_v36 = vmul.f32 %v1596_v6, %v7161_v46  ;;  %6735 = vmatmul.mubr.msk.bf16.vlgmr.msra.gmra.mrb[36].mxu0 %vm165_vm3, %v7581_v33  ;;  %6737 = vmatmul.mubr.msk.bf16.vlgmr.msra.gmra.mrb[36].mxu1 %vm165_vm3, %v7581_v33  ;;  %v7612_v31 = vpack.c.bf16 %v6693_v35, %v6693_v35 }
 0x221   :  { %1507 = vmatpush1.bf16.msra.mxu0 %v1495_v7  ;;  %1548 = vmatpush1.bf16.msra.mxu1 %v1501_v37 }
 0x222   :  { %v1607_v63 = vpack.c.bf16 %v1603_v36, %v1603_v36  ;;  %v1831_v5 = vpop.permute.xlu0 %1830  ;;  %v1712_v4 = vpop.permute.xlu1 %1711  ;;  %6742 = vmatprep.subr.msk.bf16.mxu0 %vm169_vm1, %v1605_v10  ;;  %1538 = vmatprep.mubr.bf16.mxu0 %v9039_v54  ;;  %9040 = vst [vmem:[#allocation18_spill] sm:$0xff] %v7612_v31  ;;  %v1604_v32 = vpack.c.bf16 %v1600_v15, %v1600_v15  ;;  %v1618_v36 = vsel %vm169_vm1, %v1606_v55, 0 }
 0x223   :  { %v1719_v2 = vsel %vm512_vm4, %v1710_v58, %v1712_v4  ;;  %1579 = vmatprep.mubr.bf16.mxu1 %v9039_v54  ;;  %v1718_v38 = vsel %vm512_vm4, %v1712_v4, %v1714_v29 }
 0x224   :  { %v1722_v41 = vmul.f32 %v1719_v2, %v7179_v56  ;;  %6744 = vmatprep.subr.msk.bf16.mxu1 %vm169_vm1, %v1607_v63  ;;  %v1723_v6 = vmul.f32 %v1718_v38, %v7214_v21  ;;  %v1612_v15 = vsel %vm169_vm1, %v1604_v32, 0 }
 0x226   :  { %v1726_v9 = vpack.c.bf16 %v1722_v41, %v1722_v41  ;;  %v1835_v3 = vpop.permute.xlu0 %1834  ;;  %v1716_v57 = vpop.permute.xlu1 %1715  ;;  %v1727_v63 = vpack.c.bf16 %v1723_v6, %v1723_v6 }
 0x227   :  { %v1717_v14 = vsel %vm512_vm4, %v1714_v29, %v1716_v57  ;;  %v1720_v7 = vsel %vm512_vm4, %v1716_v57, %v1710_v58  ;;  %v6690_v58 = vld [vmem:[%s8954_s4 + $0x8] sm:$0xff] }
 0x228   :  { %v1721_v12 = vmul.f32 %v1720_v7, %v7211_v16  ;;  %v1724_v10 = vmul.f32 %v1717_v14, %v7217_v22  ;;  %6739 = vmatmul.mubr.msk.bf16.vlgmr.msra.gmra.mrb[40].mxu0 %vm165_vm3, %v7612_v31  ;;  %6741 = vmatmul.mubr.msk.bf16.vlgmr.msra.gmra.mrb[40].mxu1 %vm165_vm3, %v7612_v31  ;;  %v7641_v32 = vpack.c.bf16 %v6690_v58, %v6690_v58  ;;  %v1739_v7 = vsel %vm169_vm1, %v1727_v63, 0 }
 0x229   :  { %1624 = vmatpush1.bf16.msra.mxu0 %v1612_v15  ;;  %1665 = vmatpush1.bf16.msra.mxu1 %v1618_v36 }
 0x22a   :  { %v1728_v29 = vpack.c.bf16 %v1724_v10, %v1724_v10  ;;  %6746 = vmatprep.subr.msk.bf16.mxu0 %vm169_vm1, %v1726_v9  ;;  %v1952_v37 = vpop.permute.xlu0 %1951  ;;  %v1833_v35 = vpop.permute.xlu1 %1832  ;;  %1655 = vmatprep.mubr.bf16.mxu0 %v9039_v54  ;;  %v1725_v2 = vpack.c.bf16 %v1721_v12, %v1721_v12  ;;  %9041 = vst [vmem:[#allocation19_spill] sm:$0xff] %v7641_v32 }
 0x22b   :  { %v1840_v4 = vsel %vm655_vm5, %v1831_v5, %v1833_v35  ;;  %1696 = vmatprep.mubr.bf16.mxu1 %v9039_v54  ;;  %v1839_v38 = vsel %vm655_vm5, %v1833_v35, %v1835_v3 }
 0x22c   :  { %v1843_v55 = vmul.f32 %v1840_v4, %v7222_v28  ;;  %6748 = vmatprep.subr.msk.bf16.mxu1 %vm169_vm1, %v1728_v29  ;;  %v1844_v12 = vmul.f32 %v1839_v38, %v7254_v49  ;;  %v1733_v36 = vsel %vm169_vm1, %v1725_v2, 0 }
 0x22e   :  { %v1847_v41 = vpack.c.bf16 %v1843_v55, %v1843_v55  ;;  %v1956_v9 = vpop.permute.xlu0 %1955  ;;  %v1837_v57 = vpop.permute.xlu1 %1836  ;;  %v1848_v4 = vpack.c.bf16 %v1844_v12, %v1844_v12 }
 0x22f   :  { %v1838_v6 = vsel %vm655_vm5, %v1835_v3, %v1837_v57  ;;  %v1841_v14 = vsel %vm655_vm5, %v1837_v57, %v1831_v5  ;;  %v6691_v5 = vld [vmem:[%s8954_s4 + $0x10] sm:$0xff] }
 0x230   :  { %v1842_v10 = vmul.f32 %v1841_v14, %v7251_v48  ;;  %v1845_v15 = vmul.f32 %v1838_v6, %v7257_v50  ;;  %6743 = vmatmul.mubr.msk.bf16.vlgmr.msra.gmra.mrb[44].mxu0 %vm165_vm3, %v7641_v32  ;;  %6745 = vmatmul.mubr.msk.bf16.vlgmr.msra.gmra.mrb[44].mxu1 %vm165_vm3, %v7641_v32  ;;  %v7666_v63 = vpack.c.bf16 %v6691_v5, %v6691_v5  ;;  %v1860_v5 = vsel %vm169_vm1, %v1848_v4, 0 }
 0x231   :  { %1745 = vmatpush1.bf16.msra.mxu0 %v1733_v36  ;;  %1786 = vmatpush1.bf16.msra.mxu1 %v1739_v7 }
 0x232   :  { %v1849_v3 = vpack.c.bf16 %v1845_v15, %v1845_v15  ;;  %6750 = vmatprep.subr.msk.bf16.mxu0 %vm169_vm1, %v1847_v41  ;;  %v2073_v58 = vpop.permute.xlu0 %2072  ;;  %v1954_v29 = vpop.permute.xlu1 %1953  ;;  %1776 = vmatprep.mubr.bf16.mxu0 %v9039_v54  ;;  %9042 = vst [vmem:[#allocation20_spill] sm:$0xff] %v7666_v63  ;;  %v1846_v2 = vpack.c.bf16 %v1842_v10, %v1842_v10 }
 0x233   :  { %v1960_v35 = vsel %vm798_vm6, %v1954_v29, %v1956_v9  ;;  %1817 = vmatprep.mubr.bf16.mxu1 %v9039_v54  ;;  %v1961_v55 = vsel %vm798_vm6, %v1952_v37, %v1954_v29 }
 0x234   :  { %v1964_v38 = vmul.f32 %v1960_v35, %v7296_v26  ;;  %6752 = vmatprep.subr.msk.bf16.mxu1 %vm169_vm1, %v1849_v3  ;;  %v1963_v14 = vmul.f32 %v1961_v55, %v7279_v1  ;;  %v1854_v36 = vsel %vm169_vm1, %v1846_v2, 0 }
 0x236   :  { %v1968_v41 = vpack.c.bf16 %v1964_v38, %v1964_v38  ;;  %v2077_v57 = vpop.permute.xlu0 %2076  ;;  %v1958_v6 = vpop.permute.xlu1 %1957  ;;  %v1967_v35 = vpack.c.bf16 %v1963_v14, %v1963_v14 }
 0x237   :  { %v1959_v7 = vsel %vm798_vm6, %v1956_v9, %v1958_v6  ;;  %v1962_v15 = vsel %vm798_vm6, %v1958_v6, %v1952_v37  ;;  %v6692_v37 = vld [vmem:[%s8954_s4 + $0x18] sm:$0xff] }
 0x238   :  { %v1965_v12 = vmul.f32 %v1959_v7, %v7299_v27  ;;  %v1966_v10 = vmul.f32 %v1962_v15, %v7293_v25  ;;  %6747 = vmatmul.mubr.msk.bf16.vlgmr.msra.gmra.mrb[48].mxu0 %vm165_vm3, %v7666_v63  ;;  %6749 = vmatmul.mubr.msk.bf16.vlgmr.msra.gmra.mrb[48].mxu1 %vm165_vm3, %v7666_v63  ;;  %v7695_v38 = vpack.c.bf16 %v6692_v37, %v6692_v37 }
 0x239   :  { %1866 = vmatpush1.bf16.msra.mxu0 %v1854_v36  ;;  %1907 = vmatpush1.bf16.msra.mxu1 %v1860_v5 }
 0x23a   :  { %v1970_v9 = vpack.c.bf16 %v1966_v10, %v1966_v10  ;;  %6754 = vmatprep.subr.msk.bf16.mxu0 %vm169_vm1, %v1968_v41  ;;  %v2194_v3 = vpop.permute.xlu0 %2193  ;;  %v2075_v29 = vpop.permute.xlu1 %2074  ;;  %1897 = vmatprep.mubr.bf16.mxu0 %v9039_v54  ;;  %v1969_v4 = vpack.c.bf16 %v1965_v12, %v1965_v12  ;;  %9043 = vst [vmem:[#allocation21_spill] sm:$0xff] %v7695_v38  ;;  %v1975_v12 = vsel %vm169_vm1, %v1967_v35, 0 }
 0x23b   :  { %v2081_v55 = vsel %vm941_vm7, %v2075_v29, %v2077_v57  ;;  %1938 = vmatprep.mubr.bf16.mxu1 %v9039_v54  ;;  %v2082_v41 = vsel %vm941_vm7, %v2073_v58, %v2075_v29 }
 0x23c   :  { %v2085_v2 = vmul.f32 %v2081_v55, %v7339_v61  ;;  %6756 = vmatprep.subr.msk.bf16.mxu1 %vm169_vm1, %v1970_v9  ;;  %v2084_v36 = vmul.f32 %v2082_v41, %v7325_v47  ;;  %v1981_v9 = vsel %vm169_vm1, %v1969_v4, 0 }
 0x23e   :  { %v2089_v6 = vpack.c.bf16 %v2085_v2, %v2085_v2  ;;  %v2198_v7 = vpop.permute.xlu0 %2197  ;;  %v2079_v15 = vpop.permute.xlu1 %2078  ;;  %v2088_v4 = vpack.c.bf16 %v2084_v36, %v2084_v36 }
 0x23f   :  { %v2080_v14 = vsel %vm941_vm7, %v2077_v57, %v2079_v15  ;;  %v2083_v10 = vsel %vm941_vm7, %v2079_v15, %v2073_v58  ;;  %v6694_v58 = vld [vmem:[%s8954_s4 + $0x28] sm:$0xff] }
 0x240   :  { %v2086_v5 = vmul.f32 %v2080_v14, %v7342_v62  ;;  %v2087_v37 = vmul.f32 %v2083_v10, %v7336_v60  ;;  %6751 = vmatmul.mubr.msk.bf16.vlgmr.msra.gmra.mrb[52].mxu0 %vm165_vm3, %v7695_v38  ;;  %6753 = vmatmul.mubr.msk.bf16.vlgmr.msra.gmra.mrb[52].mxu1 %vm165_vm3, %v7695_v38  ;;  %v7720_v55 = vpack.c.bf16 %v6694_v58, %v6694_v58  ;;  %v2096_v58 = vsel %vm169_vm1, %v2088_v4, 0 }
 0x241   :  { %1987 = vmatpush1.bf16.msra.mxu0 %v1975_v12  ;;  %2028 = vmatpush1.bf16.msra.mxu1 %v1981_v9 }
 0x242   :  { %v2091_v57 = vpack.c.bf16 %v2087_v37, %v2087_v37  ;;  %6758 = vmatprep.subr.msk.bf16.mxu0 %vm169_vm1, %v2089_v6  ;;  %v2196_v29 = vpop.permute.xlu1 %2195  ;;  %2018 = vmatprep.mubr.bf16.mxu0 %v9039_v54  ;;  %9044 = vst [vmem:[#allocation22_spill] sm:$0xff] %v7720_v55  ;;  %v2090_v2 = vpack.c.bf16 %v2086_v5, %v2086_v5  ;;  %v2315_v41 = vpop.permute.xlu0 %2314 }
 0x243   :  { %v2202_v35 = vsel %vm1084_vm8, %v2196_v29, %v2198_v7  ;;  %2059 = vmatprep.mubr.bf16.mxu1 %v9039_v54  ;;  %v2203_v15 = vsel %vm1084_vm8, %v2194_v3, %v2196_v29 }
 0x244   :  { %v2206_v14 = vmul.f32 %v2202_v35, %v7382_v52  ;;  %6760 = vmatprep.subr.msk.bf16.mxu1 %vm169_vm1, %v2091_v57  ;;  %v2205_v12 = vmul.f32 %v2203_v15, %v7368_v34  ;;  %v2102_v57 = vsel %vm169_vm1, %v2090_v2, 0 }
 0x246   :  { %v2210_v6 = vpack.c.bf16 %v2206_v14, %v2206_v14  ;;  %v2200_v10 = vpop.permute.xlu1 %2199  ;;  %v2209_v15 = vpack.c.bf16 %v2205_v12, %v2205_v12 }
 0x247   :  { %v2201_v37 = vsel %vm1084_vm8, %v2198_v7, %v2200_v10  ;;  %v2204_v9 = vsel %vm1084_vm8, %v2200_v10, %v2194_v3  ;;  %v6695_v3 = vld [vmem:[%s8954_s4 + $0x30] sm:$0xff]  ;;  %v2319_v7 = vpop.permute.xlu0 %2318 }
 0x248   :  { %v2207_v36 = vmul.f32 %v2201_v37, %v7385_v53  ;;  %v2208_v5 = vmul.f32 %v2204_v9, %v7379_v42  ;;  %6755 = vmatmul.mubr.msk.bf16.vlgmr.msra.gmra.mrb[56].mxu0 %vm165_vm3, %v7720_v55  ;;  %6757 = vmatmul.mubr.msk.bf16.vlgmr.msra.gmra.mrb[56].mxu1 %vm165_vm3, %v7720_v55  ;;  %v7749_v10 = vpack.c.bf16 %v6695_v3, %v6695_v3 }
 0x249   :  { %2108 = vmatpush1.bf16.msra.mxu0 %v2096_v58  ;;  %2149 = vmatpush1.bf16.msra.mxu1 %v2102_v57  ;;  %v2217_v58 = vsel %vm169_vm1, %v2209_v15, 0 }
 0x24a   :  { %v2212_v29 = vpack.c.bf16 %v2208_v5, %v2208_v5  ;;  %6762 = vmatprep.subr.msk.bf16.mxu0 %vm169_vm1, %v2210_v6  ;;  %v2317_v35 = vpop.permute.xlu1 %2316  ;;  %2139 = vmatprep.mubr.bf16.mxu0 %v9039_v54  ;;  %v2211_v4 = vpack.c.bf16 %v2207_v36, %v2207_v36  ;;  %9045 = vst [vmem:[#allocation23_spill] sm:$0xff] %v7749_v10 }
 0x24b   :  { %v2323_v14 = vsel %vm1227_vm9, %v2317_v35, %v2319_v7  ;;  %2180 = vmatprep.mubr.bf16.mxu1 %v9039_v54  ;;  %v2324_v37 = vsel %vm1227_vm9, %v2315_v41, %v2317_v35 }
 0x24c   :  { %v2327_v2 = vmul.f32 %v2323_v14, %v7425_v39  ;;  %6764 = vmatprep.subr.msk.bf16.mxu1 %vm169_vm1, %v2212_v29  ;;  %v2326_v36 = vmul.f32 %v2324_v37, %v7411_v30  ;;  %v2223_v29 = vsel %vm169_vm1, %v2211_v4, 0  ;;  %v6697_v37 = vld [vmem:[%s8954_s4 + $0x40] sm:$0xff] }
 0x24e   :  { %v2331_v6 = vpack.c.bf16 %v2327_v2, %v2327_v2  ;;  %v2321_v9 = vpop.permute.xlu1 %2320  ;;  %v2330_v35 = vpack.c.bf16 %v2326_v36, %v2326_v36 }
 0x24f   :  { %v2322_v12 = vsel %vm1227_vm9, %v2319_v7, %v2321_v9  ;;  %v2325_v5 = vsel %vm1227_vm9, %v2321_v9, %v2315_v41  ;;  %v6696_v41 = vld [vmem:[%s8954_s4 + $0x38] sm:$0xff]  ;;  %s30_s4 = sadd.f32 1.0, %s8956_s6 }
 0x250   :  { %v2328_v57 = vmul.f32 %v2322_v12, %v7428_v40  ;;  %v2329_v3 = vmul.f32 %v2325_v5, %v7422_v11  ;;  %6759 = vmatmul.mubr.msk.bf16.vlgmr.msra.gmra.mrb[60].mxu0 %vm165_vm3, %v7749_v10  ;;  %6761 = vmatmul.mubr.msk.bf16.vlgmr.msra.gmra.mrb[60].mxu1 %vm165_vm3, %v7749_v10  ;;  %v7773_v14 = vpack.c.bf16 %v6696_v41, %v6696_v41  ;;  %v2338_v4 = vsel %vm169_vm1, %v2330_v35, 0 }
 0x251   :  { %2229 = vmatpush1.bf16.msra.mxu0 %v2217_v58  ;;  %2270 = vmatpush1.bf16.msra.mxu1 %v2223_v29  ;;  %v31_v9 = vstv %s30_s4 }
 0x252   :  { %v2333_v7 = vpack.c.bf16 %v2329_v3, %v2329_v3  ;;  %6766 = vmatprep.subr.msk.bf16.mxu0 %vm169_vm1, %v2331_v6  ;;  %2260 = vmatprep.mubr.bf16.mxu0 %v9039_v54  ;;  %v2332_v15 = vpack.c.bf16 %v2328_v57, %v2328_v57  ;;  %9046 = vst [vmem:[#allocation24_spill] sm:$0xff] %v7773_v14  ;;  %6927 = vrcp.f32 %v31_v9 }
 0x253   :  { %2301 = vmatprep.mubr.bf16.mxu1 %v9039_v54  ;;  %v7786_v6 = vpack.c.bf16 %v6697_v37, %v6697_v37 }
 0x254   :  { %6768 = vmatprep.subr.msk.bf16.mxu1 %vm169_vm1, %v2333_v7  ;;  %v2344_v2 = vsel %vm169_vm1, %v2332_v15, 0 }
 0x255   :  { %9047 = vst [vmem:[#allocation25_spill] sm:$0xff] %v7786_v6 }
 0x258   :  { %6763 = vmatmul.mubr.msk.bf16.vlgmr.msra.gmra.mrb[64].mxu0 %vm165_vm3, %v7773_v14  ;;  %6765 = vmatmul.mubr.msk.bf16.vlgmr.msra.gmra.mrb[64].mxu1 %vm165_vm3, %v7773_v14 }
 0x259   :  { %2350 = vmatpush1.bf16.msra.mxu0 %v2338_v4  ;;  %2391 = vmatpush1.bf16.msra.mxu1 %v2344_v2 }
 0x25a   :  { %2381 = vmatprep.mubr.bf16.mxu0 %v9039_v54  ;;  %2422 = vmatprep.mubr.bf16.mxu1 %v9039_v54 }
 0x25c   :  { %v6928_v12 = vpop.eup %6927 }
 0x25d   :  { %6914 = vpush %v6928_v12 }
 0x260   :  { %6767 = vmatmul.mubr.msk.bf16.vlgmr.msra.gmra.mrb[68].mxu0 %vm165_vm3, %v7786_v6  ;;  %6769 = vmatmul.mubr.msk.bf16.vlgmr.msra.gmra.mrb[68].mxu1 %vm165_vm3, %v7786_v6 }
 0x261   :  { %2525 = vmatprep.mubr.bf16.mxu0 %v9039_v54  ;;  %2566 = vmatprep.mubr.bf16.mxu1 %v9039_v54 }
 0x2f3   :  { %v1443_v5 = vpop.f32.mrb[36].mxu0  ;;  %v1484_v58 = vpop.f32.mrb[36].mxu1 }
 0x2f4   :  { %v1445_v36 = vpop.f32.mrb[37].mxu0  ;;  %v1486_v57 = vpop.f32.mrb[37].mxu1 }
 0x2f5   :  { %v1447_v3 = vpop.f32.mrb[38].mxu0  ;;  %v1488_v29 = vpop.f32.mrb[38].mxu1 }
 0x2f6   :  { %v1448_v41 = vpop.f32.mrb[39].mxu0  ;;  %v1489_v7 = vpop.f32.mrb[39].mxu1 }
 0x2fb   :  { %v1540_v35 = vpop.f32.mrb[40].mxu0  ;;  %v1581_v15 = vpop.f32.mrb[40].mxu1 }
 0x2fc   :  { %v1541_v4 = vadd.f32 %v1540_v35, %v1443_v5  ;;  %v1582_v2 = vadd.f32 %v1581_v15, %v1484_v58  ;;  %v1542_v37 = vpop.f32.mrb[41].mxu0  ;;  %v1583_v6 = vpop.f32.mrb[41].mxu1 }
 0x2fd   :  { %v1543_v14 = vadd.f32 %v1542_v37, %v1445_v36  ;;  %v1584_v10 = vadd.f32 %v1583_v6, %v1486_v57  ;;  %v1544_v55 = vpop.f32.mrb[42].mxu0  ;;  %v1585_v9 = vpop.f32.mrb[42].mxu1 }
 0x2fe   :  { %v1545_v38 = vpop.f32.mrb[43].mxu0  ;;  %v1586_v12 = vpop.f32.mrb[43].mxu1 }
 0x303   :  { %v1657_v63 = vpop.f32.mrb[44].mxu0  ;;  %v1698_v32 = vpop.f32.mrb[44].mxu1 }
 0x304   :  { %v1705_v31 = vadd.f32 %v1657_v63, %v1541_v4  ;;  %v1707_v33 = vadd.f32 %v1698_v32, %v1582_v2  ;;  %v1659_v3 = vpop.f32.mrb[45].mxu0  ;;  %v1700_v29 = vpop.f32.mrb[45].mxu1 }
 0x305   :  { %v1706_v41 = vadd.f32 %v1659_v3, %v1543_v14  ;;  %v1708_v7 = vadd.f32 %v1700_v29, %v1584_v10  ;;  %v1661_v0 = vpop.f32.mrb[46].mxu0  ;;  %v1702_v11 = vpop.f32.mrb[46].mxu1 }
 0x306   :  { %v1662_v5 = vpop.f32.mrb[47].mxu0  ;;  %v1703_v58 = vpop.f32.mrb[47].mxu1 }
 0x30b   :  { %v1778_v35 = vpop.f32.mrb[48].mxu0  ;;  %v1819_v15 = vpop.f32.mrb[48].mxu1 }
 0x30c   :  { %v1826_v36 = vadd.f32 %v1778_v35, %v1705_v31  ;;  %v1828_v6 = vadd.f32 %v1819_v15, %v1707_v33  ;;  %v1780_v55 = vpop.f32.mrb[49].mxu0  ;;  %v1821_v57 = vpop.f32.mrb[49].mxu1 }
 0x30d   :  { %v1827_v38 = vadd.f32 %v1780_v55, %v1706_v41  ;;  %v1829_v37 = vadd.f32 %v1821_v57, %v1708_v7  ;;  %v1782_v9 = vpop.f32.mrb[50].mxu0  ;;  %v1823_v12 = vpop.f32.mrb[50].mxu1 }
 0x30e   :  { %v1783_v63 = vpop.f32.mrb[51].mxu0  ;;  %v1824_v32 = vpop.f32.mrb[51].mxu1 }
 0x313   :  { %v1899_v4 = vpop.f32.mrb[52].mxu0  ;;  %v1940_v2 = vpop.f32.mrb[52].mxu1 }
 0x314   :  { %v1947_v14 = vadd.f32 %v1899_v4, %v1826_v36  ;;  %v1949_v10 = vadd.f32 %v1940_v2, %v1828_v6  ;;  %v1901_v0 = vpop.f32.mrb[53].mxu0  ;;  %v1942_v11 = vpop.f32.mrb[53].mxu1 }
 0x315   :  { %v1948_v3 = vadd.f32 %v1901_v0, %v1827_v38  ;;  %v1950_v29 = vadd.f32 %v1942_v11, %v1829_v37  ;;  %v1903_v5 = vpop.f32.mrb[54].mxu0  ;;  %v1944_v58 = vpop.f32.mrb[54].mxu1 }
 0x316   :  { %v1904_v31 = vpop.f32.mrb[55].mxu0  ;;  %v1945_v33 = vpop.f32.mrb[55].mxu1 }
 0x31b   :  { %v2020_v35 = vpop.f32.mrb[56].mxu0  ;;  %v2061_v15 = vpop.f32.mrb[56].mxu1 }
 0x31c   :  { %v2068_v41 = vadd.f32 %v2020_v35, %v1947_v14  ;;  %v2070_v7 = vadd.f32 %v2061_v15, %v1949_v10  ;;  %v2022_v55 = vpop.f32.mrb[57].mxu0  ;;  %v2063_v57 = vpop.f32.mrb[57].mxu1 }
 0x31d   :  { %v2069_v9 = vadd.f32 %v2022_v55, %v1948_v3  ;;  %v2071_v12 = vadd.f32 %v2063_v57, %v1950_v29  ;;  %v2024_v63 = vpop.f32.mrb[58].mxu0  ;;  %v2065_v32 = vpop.f32.mrb[58].mxu1 }
 0x31e   :  { %v2025_v36 = vpop.f32.mrb[59].mxu0  ;;  %v2066_v6 = vpop.f32.mrb[59].mxu1 }
 0x323   :  { %v2141_v4 = vpop.f32.mrb[60].mxu0  ;;  %v2182_v2 = vpop.f32.mrb[60].mxu1 }
 0x324   :  { %v2189_v38 = vadd.f32 %v2141_v4, %v2068_v41  ;;  %v2191_v37 = vadd.f32 %v2182_v2, %v2070_v7  ;;  %v2143_v0 = vpop.f32.mrb[61].mxu0  ;;  %v2184_v11 = vpop.f32.mrb[61].mxu1 }
 0x325   :  { %v2190_v5 = vadd.f32 %v2143_v0, %v2069_v9  ;;  %v2192_v58 = vadd.f32 %v2184_v11, %v2071_v12  ;;  %v2145_v31 = vpop.f32.mrb[62].mxu0  ;;  %v2186_v33 = vpop.f32.mrb[62].mxu1  ;;  %v2443_v12 = vstv %s8956_s6  ;;  %s6915_s6 = spop %6914 }
 0x326   :  { %v2146_v14 = vpop.f32.mrb[63].mxu0  ;;  %v2187_v10 = vpop.f32.mrb[63].mxu1 }
 0x327   :  { %v7797_v4 = vpop.permute.xlu0 %58  ;;  %v6929_v10 = vld [vmem:[%s8951_s1] sm:$0xff] }
 0x32b   :  { %v2262_v35 = vpop.f32.mrb[64].mxu0  ;;  %v2303_v15 = vpop.f32.mrb[64].mxu1 }
 0x32c   :  { %v2310_v3 = vadd.f32 %v2262_v35, %v2189_v38  ;;  %v2312_v29 = vadd.f32 %v2303_v15, %v2191_v37  ;;  %v2264_v55 = vpop.f32.mrb[65].mxu0  ;;  %v2305_v57 = vpop.f32.mrb[65].mxu1  ;;  %v7806_v35 = vmul.f32 %v6929_v10, %v2443_v12 }
 0x32d   :  { %v2311_v63 = vadd.f32 %v2264_v55, %v2190_v5  ;;  %v2313_v32 = vadd.f32 %v2305_v57, %v2192_v58  ;;  %v2266_v36 = vpop.f32.mrb[66].mxu0  ;;  %v2307_v6 = vpop.f32.mrb[66].mxu1 }
 0x32e   :  { %v2267_v41 = vpop.f32.mrb[67].mxu0  ;;  %v2308_v7 = vpop.f32.mrb[67].mxu1  ;;  %9048 = vst [vmem:[#allocation26_spill] sm:$0xff] %v7806_v35  ;;  %v6931_v6 = vld [vmem:[%s8951_s1 + $0x10] sm:$0xff] }
 0x32f   :  { %v7819_v7 = vmul.f32 %v6931_v6, %v2443_v12 }
 0x331   :  { %9050 = vst [vmem:[#allocation28_spill] sm:$0xff] %v7819_v7 }
 0x333   :  { %v2383_v9 = vpop.f32.mrb[68].mxu0  ;;  %v2424_v2 = vpop.f32.mrb[68].mxu1 }
 0x334   :  { %v2431_v0 = vadd.f32 %v2383_v9, %v2310_v3  ;;  %v2433_v11 = vadd.f32 %v2424_v2, %v2312_v29  ;;  %v2385_v38 = vpop.f32.mrb[69].mxu0  ;;  %v2426_v37 = vpop.f32.mrb[69].mxu1  ;;  %v6930_v29 = vld [vmem:[%s8951_s1 + $0x8] sm:$0xff]  ;;  %v6932_v2 = vld [vmem:[%s8951_s1 + $0x18] sm:$0xff]  ;;  %s6966_s1 = smov [#allocation3]  }
 0x335   :  { %v2432_v31 = vadd.f32 %v2385_v38, %v2311_v63  ;;  %v2434_v33 = vadd.f32 %v2426_v37, %v2313_v32  ;;  %v2387_v5 = vpop.f32.mrb[70].mxu0  ;;  %v2428_v58 = vpop.f32.mrb[70].mxu1  ;;  %v7813_v63 = vmul.f32 %v6930_v29, %v2443_v12  ;;  %v7826_v38 = vstv %s6915_s6 }
 0x336   :  { %v2435_v14 = vadd.f32 %v2431_v0, %v7797_v4  ;;  %v2437_v15 = vadd.f32 %v2433_v11, %v7797_v4  ;;  %v2388_v55 = vpop.f32.mrb[71].mxu0  ;;  %v2429_v57 = vpop.f32.mrb[71].mxu1  ;;  %v7824_v11 = vmul.f32 %v6932_v2, %v2443_v12  ;;  %9052 = vst [vmem:[#allocation30_spill] sm:$0xff] %v7826_v38 }
 0x337   :  { %v2436_v3 = vadd.f32 %v2432_v31, %v7797_v4  ;;  %9049 = vst [vmem:[#allocation27_spill] sm:$0xff] %v7813_v63  ;;  %v2438_v32 = vadd.f32 %v2434_v33, %v7797_v4 }
 0x338   :  { %v2439_v36 = vadd.f32 %v6929_v10, %v2435_v14  ;;  %v2441_v41 = vadd.f32 %v6931_v6, %v2437_v15  ;;  %9051 = vst [vmem:[#allocation29_spill] sm:$0xff] %v7824_v11 }
 0x339   :  { %v2440_v9 = vadd.f32 %v6930_v29, %v2436_v3  ;;  %v2442_v0 = vadd.f32 %v6932_v2, %v2438_v32 }
 0x33a   :  { %v2448_v37 = vadd.f32 %v7806_v35, %v2439_v36  ;;  %v2450_v33 = vadd.f32 %v7819_v7, %v2441_v41 }
 0x33b   :  { %v2449_v31 = vadd.f32 %v7813_v63, %v2440_v9  ;;  %v2451_v58 = vadd.f32 %v7824_v11, %v2442_v0 }
 0x33c   :  { %v7832_v5 = vmul.f32 %v7826_v38, %v2448_v37  ;;  %v7843_v12 = vmul.f32 %v7826_v38, %v2450_v33 }
 0x33d   :  { %v7836_v14 = vmul.f32 %v7826_v38, %v2449_v31  ;;  %v7846_v10 = vmul.f32 %v7826_v38, %v2451_v58 }
 0x33e   :  { %2461 = vrot.lane.b32.xlu1 %v7832_v5, %s6957_s28 }
 0x33f   :  { %2463 = vrot.lane.b32.xlu0 %v7836_v14, %s6957_s28  ;;  %9053 = vst [vmem:[#allocation31_spill] sm:$0xff] %v7846_v10 }
 0x342   :  { %2465 = vrot.lane.b32.xlu1 %v7843_v12, %s6957_s28 }
 0x343   :  { %2467 = vrot.lane.b32.xlu0 %v7846_v10, %s6957_s28 }
 0x346   :  { %2669 = vrot.lane.b32.xlu1 %v7832_v5, %s6959_s10 }
 0x347   :  { %2671 = vrot.lane.b32.xlu0 %v7836_v14, %s6959_s10 }
 0x34a   :  { %2673 = vrot.lane.b32.xlu1 %v7843_v12, %s6959_s10 }
 0x34b   :  { %2675 = vrot.lane.b32.xlu0 %v7846_v10, %s6959_s10 }
 0x34e   :  { %2787 = vrot.lane.b32.xlu1 %v7832_v5, %s6960_s11 }
 0x34f   :  { %2789 = vrot.lane.b32.xlu0 %v7836_v14, %s6960_s11 }
 0x352   :  { %2791 = vrot.lane.b32.xlu1 %v7843_v12, %s6960_s11 }
 0x353   :  { %2793 = vrot.lane.b32.xlu0 %v7846_v10, %s6960_s11 }
 0x356   :  { %2905 = vrot.lane.b32.xlu1 %v7832_v5, %s6961_s12 }
 0x357   :  { %2907 = vrot.lane.b32.xlu0 %v7836_v14, %s6961_s12 }
 0x35a   :  { %2909 = vrot.lane.b32.xlu1 %v7843_v12, %s6961_s12 }
 0x35b   :  { %2911 = vrot.lane.b32.xlu0 %v7846_v10, %s6961_s12 }
 0x35e   :  { %3023 = vrot.lane.b32.xlu1 %v7832_v5, %s6962_s13 }
 0x35f   :  { %3025 = vrot.lane.b32.xlu0 %v7836_v14, %s6962_s13 }
 0x362   :  { %3027 = vrot.lane.b32.xlu1 %v7843_v12, %s6962_s13 }
 0x363   :  { %3029 = vrot.lane.b32.xlu0 %v7846_v10, %s6962_s13 }
 0x366   :  { %3141 = vrot.lane.b32.xlu1 %v7832_v5, %s6963_s14 }
 0x367   :  { %3143 = vrot.lane.b32.xlu0 %v7836_v14, %s6963_s14 }
 0x36a   :  { %3145 = vrot.lane.b32.xlu1 %v7843_v12, %s6963_s14 }
 0x36b   :  { %3147 = vrot.lane.b32.xlu0 %v7846_v10, %s6963_s14 }
 0x36e   :  { %3259 = vrot.lane.b32.xlu1 %v7832_v5, %s6964_s15 }
 0x36f   :  { %3261 = vrot.lane.b32.xlu0 %v7836_v14, %s6964_s15 }
 0x372   :  { %3263 = vrot.lane.b32.xlu1 %v7843_v12, %s6964_s15 }
 0x373   :  { %3265 = vrot.lane.b32.xlu0 %v7846_v10, %s6964_s15 }
 0x376   :  { %3377 = vrot.lane.b32.xlu1 %v7832_v5, %s6965_s16 }
 0x377   :  { %3379 = vrot.lane.b32.xlu0 %v7836_v14, %s6965_s16 }
 0x37a   :  { %3381 = vrot.lane.b32.xlu1 %v7843_v12, %s6965_s16 }
 0x37b   :  { %3383 = vrot.lane.b32.xlu0 %v7846_v10, %s6965_s16 }
 0x3b0   :  { %v2462_v15 = vpop.permute.xlu1 %2461 }
 0x3b1   :  { %v2464_v55 = vpop.permute.xlu0 %2463 }
 0x3b2   :  { %v2471_v57 = vsel %vm131_vm0, %v2462_v15, %v2464_v55 }
 0x3b3   :  { %v2474_v3 = vmul.f32 %v2471_v57, %v7115_v17 }
 0x3b4   :  { %v2466_v29 = vpop.permute.xlu1 %2465 }
 0x3b5   :  { %v2478_v32 = vpack.c.bf16 %v2474_v3, %v2474_v3  ;;  %v2470_v36 = vsel %vm131_vm0, %v2464_v55, %v2466_v29  ;;  %v2468_v6 = vpop.permute.xlu0 %2467 }
 0x3b6   :  { %v2475_v41 = vmul.f32 %v2470_v36, %v7124_v20  ;;  %v2469_v9 = vsel %vm131_vm0, %v2466_v29, %v2468_v6  ;;  %v2472_v2 = vsel %vm131_vm0, %v2468_v6, %v2462_v15  ;;  %v2459_v29 = vpack.c.bf16 %v7843_v12, %v7843_v12 }
 0x3b7   :  { %v2473_v0 = vmul.f32 %v2472_v2, %v7121_v19  ;;  %v2476_v37 = vmul.f32 %v2469_v9, %v7118_v18  ;;  %6770 = vmatprep.subr.msk.bf16.mxu0 %vm169_vm1, %v2478_v32  ;;  %v2457_v15 = vpack.c.bf16 %v7832_v5, %v7832_v5  ;;  %v2460_v9 = vpack.c.bf16 %v7846_v10, %v7846_v10 }
 0x3b8   :  { %v2479_v31 = vpack.c.bf16 %v2475_v41, %v2475_v41  ;;  %v2670_v33 = vpop.permute.xlu1 %2669  ;;  %v2458_v41 = vpack.c.bf16 %v7836_v14, %v7836_v14 }
 0x3b9   :  { %v2477_v58 = vpack.c.bf16 %v2473_v0, %v2473_v0  ;;  %v2480_v57 = vpack.c.bf16 %v2476_v37, %v2476_v37  ;;  %v2672_v55 = vpop.permute.xlu0 %2671 }
 0x3ba   :  { %v2679_v3 = vsel %vm369_vm2, %v2670_v33, %v2672_v55  ;;  %v2488_v36 = vsel %vm169_vm1, %v2479_v31, 0 }
 0x3bb   :  { %v2682_v6 = vmul.f32 %v2679_v3, %v7128_v23  ;;  %6772 = vmatprep.subr.msk.bf16.mxu1 %vm169_vm1, %v2480_v57  ;;  %v2482_v32 = vsel %vm169_vm1, %v2477_v58, 0  ;;  %v2582_v3 = vsel %vm169_vm1, %v2459_v29, 0 }
 0x3bc   :  { %2494 = vmatpush1.bf16.msra.mxu0 %v2482_v32  ;;  %2535 = vmatpush1.bf16.msra.mxu1 %v2488_v36  ;;  %v2674_v2 = vpop.permute.xlu1 %2673 }
 0x3bd   :  { %v2678_v0 = vsel %vm369_vm2, %v2672_v55, %v2674_v2  ;;  %v2676_v37 = vpop.permute.xlu0 %2675  ;;  %6774 = vmatprep.subr.msk.bf16.mxu0 %vm169_vm1, %v2458_v41  ;;  %6776 = vmatprep.subr.msk.bf16.mxu1 %vm169_vm1, %v2460_v9  ;;  %v2686_v31 = vpack.c.bf16 %v2682_v6, %v2682_v6  ;;  %v2576_v6 = vsel %vm169_vm1, %v2457_v15, 0 }
 0x3be   :  { %v2677_v58 = vsel %vm369_vm2, %v2674_v2, %v2676_v37  ;;  %v2680_v57 = vsel %vm369_vm2, %v2676_v37, %v2670_v33  ;;  %v2683_v36 = vmul.f32 %v2678_v0, %v7172_v51 }
 0x3bf   :  { %v2681_v32 = vmul.f32 %v2680_v57, %v7158_v45  ;;  %v2684_v55 = vmul.f32 %v2677_v58, %v7161_v46  ;;  %6771 = vmatmul.mubr.msk.bf16.vlgmr.msra.gmra.mrb[72].mxu0 %vm165_vm3, %v7155_v44  ;;  %6773 = vmatmul.mubr.msk.bf16.vlgmr.msra.gmra.mrb[72].mxu1 %vm165_vm3, %v7155_v44 }
 0x3c0   :  { %2629 = vmatpush1.bf16.msra.mxu1 %v2582_v3  ;;  %v2788_v41 = vpop.permute.xlu1 %2787  ;;  %2588 = vmatpush1.bf16.msra.mxu0 %v2576_v6  ;;  %v2687_v2 = vpack.c.bf16 %v2683_v36, %v2683_v36 }
 0x3c1   :  { %v2688_v33 = vpack.c.bf16 %v2684_v55, %v2684_v55  ;;  %v2790_v9 = vpop.permute.xlu0 %2789  ;;  %6778 = vmatprep.subr.msk.bf16.mxu0 %vm169_vm1, %v2686_v31  ;;  %2619 = vmatprep.mubr.bf16.mxu0 %v9039_v54  ;;  %v2685_v0 = vpack.c.bf16 %v2681_v32, %v2681_v32 }
 0x3c2   :  { %v2797_v29 = vsel %vm512_vm4, %v2788_v41, %v2790_v9  ;;  %2660 = vmatprep.mubr.bf16.mxu1 %v9039_v54 }
 0x3c3   :  { %v2800_v37 = vmul.f32 %v2797_v29, %v7179_v56  ;;  %6780 = vmatprep.subr.msk.bf16.mxu1 %vm169_vm1, %v2688_v33  ;;  %v2690_v33 = vsel %vm169_vm1, %v2685_v0, 0 }
 0x3c4   :  { %v2792_v15 = vpop.permute.xlu1 %2791 }
 0x3c5   :  { %v2804_v58 = vpack.c.bf16 %v2800_v37, %v2800_v37  ;;  %v2796_v57 = vsel %vm512_vm4, %v2790_v9, %v2792_v15  ;;  %v2794_v3 = vpop.permute.xlu0 %2793  ;;  %v2696_v9 = vsel %vm169_vm1, %v2687_v2, 0 }
 0x3c6   :  { %v2801_v31 = vmul.f32 %v2796_v57, %v7214_v21  ;;  %v2795_v55 = vsel %vm512_vm4, %v2792_v15, %v2794_v3  ;;  %v2798_v6 = vsel %vm512_vm4, %v2794_v3, %v2788_v41 }
 0x3c7   :  { %v2799_v36 = vmul.f32 %v2798_v6, %v7211_v16  ;;  %v2802_v32 = vmul.f32 %v2795_v55, %v7217_v22  ;;  %6775 = vmatmul.mubr.msk.bf16.vlgmr.msra.gmra.mrb[76].mxu0 %vm165_vm3, %v7202_v13  ;;  %6777 = vmatmul.mubr.msk.bf16.vlgmr.msra.gmra.mrb[76].mxu1 %vm165_vm3, %v7202_v13 }
 0x3c8   :  { %2702 = vmatpush1.bf16.msra.mxu0 %v2690_v33  ;;  %2743 = vmatpush1.bf16.msra.mxu1 %v2696_v9  ;;  %v2906_v29 = vpop.permute.xlu1 %2905  ;;  %v2805_v15 = vpack.c.bf16 %v2801_v31, %v2801_v31 }
 0x3c9   :  { %v2806_v37 = vpack.c.bf16 %v2802_v32, %v2802_v32  ;;  %6782 = vmatprep.subr.msk.bf16.mxu0 %vm169_vm1, %v2804_v58  ;;  %v2908_v41 = vpop.permute.xlu0 %2907  ;;  %2733 = vmatprep.mubr.bf16.mxu0 %v9039_v54  ;;  %v2803_v3 = vpack.c.bf16 %v2799_v36, %v2799_v36 }
 0x3ca   :  { %v2915_v57 = vsel %vm655_vm5, %v2906_v29, %v2908_v41  ;;  %2774 = vmatprep.mubr.bf16.mxu1 %v9039_v54  ;;  %v2814_v33 = vsel %vm169_vm1, %v2805_v15, 0 }
 0x3cb   :  { %v2918_v0 = vmul.f32 %v2915_v57, %v7222_v28  ;;  %6784 = vmatprep.subr.msk.bf16.mxu1 %vm169_vm1, %v2806_v37 }
 0x3cc   :  { %v2910_v2 = vpop.permute.xlu1 %2909 }
 0x3cd   :  { %v2922_v55 = vpack.c.bf16 %v2918_v0, %v2918_v0  ;;  %v2914_v6 = vsel %vm655_vm5, %v2908_v41, %v2910_v2  ;;  %v2912_v58 = vpop.permute.xlu0 %2911  ;;  %v2808_v41 = vsel %vm169_vm1, %v2803_v3, 0 }
 0x3ce   :  { %v2913_v32 = vsel %vm655_vm5, %v2910_v2, %v2912_v58  ;;  %v2916_v31 = vsel %vm655_vm5, %v2912_v58, %v2906_v29  ;;  %v2919_v36 = vmul.f32 %v2914_v6, %v7254_v49 }
 0x3cf   :  { %v2917_v9 = vmul.f32 %v2916_v31, %v7251_v48  ;;  %v2920_v37 = vmul.f32 %v2913_v32, %v7257_v50  ;;  %6779 = vmatmul.mubr.msk.bf16.vlgmr.msra.gmra.mrb[80].mxu0 %vm165_vm3, %v7245_v43  ;;  %6781 = vmatmul.mubr.msk.bf16.vlgmr.msra.gmra.mrb[80].mxu1 %vm165_vm3, %v7245_v43 }
 0x3d0   :  { %2820 = vmatpush1.bf16.msra.mxu0 %v2808_v41  ;;  %2861 = vmatpush1.bf16.msra.mxu1 %v2814_v33  ;;  %v3024_v57 = vpop.permute.xlu1 %3023  ;;  %v2923_v0 = vpack.c.bf16 %v2919_v36, %v2919_v36 }
 0x3d1   :  { %v2924_v29 = vpack.c.bf16 %v2920_v37, %v2920_v37  ;;  %6786 = vmatprep.subr.msk.bf16.mxu0 %vm169_vm1, %v2922_v55  ;;  %v3026_v15 = vpop.permute.xlu0 %3025  ;;  %2851 = vmatprep.mubr.bf16.mxu0 %v9039_v54  ;;  %v2921_v2 = vpack.c.bf16 %v2917_v9, %v2917_v9 }
 0x3d2   :  { %2892 = vmatprep.mubr.bf16.mxu1 %v9039_v54  ;;  %v3033_v6 = vsel %vm798_vm6, %v3024_v57, %v3026_v15 }
 0x3d3   :  { %6788 = vmatprep.subr.msk.bf16.mxu1 %vm169_vm1, %v2924_v29  ;;  %v3035_v31 = vmul.f32 %v3033_v6, %v7279_v1  ;;  %v2926_v41 = vsel %vm169_vm1, %v2921_v2, 0  ;;  %v2932_v29 = vsel %vm169_vm1, %v2923_v0, 0 }
 0x3d4   :  { %v3028_v58 = vpop.permute.xlu1 %3027 }
 0x3d5   :  { %v3032_v3 = vsel %vm798_vm6, %v3026_v15, %v3028_v58  ;;  %v3030_v32 = vpop.permute.xlu0 %3029 }
 0x3d6   :  { %v3036_v55 = vmul.f32 %v3032_v3, %v7296_v26  ;;  %v3031_v33 = vsel %vm798_vm6, %v3028_v58, %v3030_v32  ;;  %v3034_v36 = vsel %vm798_vm6, %v3030_v32, %v3024_v57  ;;  %v3039_v3 = vpack.c.bf16 %v3035_v31, %v3035_v31 }
 0x3d7   :  { %v3037_v9 = vmul.f32 %v3031_v33, %v7299_v27  ;;  %v3038_v37 = vmul.f32 %v3034_v36, %v7293_v25  ;;  %6783 = vmatmul.mubr.msk.bf16.vlgmr.msra.gmra.mrb[84].mxu0 %vm165_vm3, %v7289_v24  ;;  %6785 = vmatmul.mubr.msk.bf16.vlgmr.msra.gmra.mrb[84].mxu1 %vm165_vm3, %v7289_v24 }
 0x3d8   :  { %v3040_v15 = vpack.c.bf16 %v3036_v55, %v3036_v55  ;;  %2938 = vmatpush1.bf16.msra.mxu0 %v2926_v41  ;;  %2979 = vmatpush1.bf16.msra.mxu1 %v2932_v29  ;;  %v3142_v6 = vpop.permute.xlu1 %3141 }
 0x3d9   :  { %v3042_v58 = vpack.c.bf16 %v3038_v37, %v3038_v37  ;;  %v3144_v57 = vpop.permute.xlu0 %3143  ;;  %2969 = vmatprep.mubr.bf16.mxu0 %v9039_v54  ;;  %3010 = vmatprep.mubr.bf16.mxu1 %v9039_v54  ;;  %v3041_v32 = vpack.c.bf16 %v3037_v9, %v3037_v9  ;;  %v3044_v9 = vsel %vm169_vm1, %v3039_v3, 0 }
 0x3da   :  { %6790 = vmatprep.subr.msk.bf16.mxu0 %vm169_vm1, %v3040_v15  ;;  %v3151_v2 = vsel %vm941_vm7, %v3142_v6, %v3144_v57 }
 0x3db   :  { %6792 = vmatprep.subr.msk.bf16.mxu1 %vm169_vm1, %v3042_v58  ;;  %v3153_v41 = vmul.f32 %v3151_v2, %v7325_v47  ;;  %v3050_v58 = vsel %vm169_vm1, %v3041_v32, 0 }
 0x3dc   :  { %v3146_v0 = vpop.permute.xlu1 %3145 }
 0x3dd   :  { %v3150_v55 = vsel %vm941_vm7, %v3144_v57, %v3146_v0  ;;  %v3148_v33 = vpop.permute.xlu0 %3147  ;;  %v3157_v2 = vpack.c.bf16 %v3153_v41, %v3153_v41 }
 0x3de   :  { %v3154_v36 = vmul.f32 %v3150_v55, %v7339_v61  ;;  %v3149_v37 = vsel %vm941_vm7, %v3146_v0, %v3148_v33  ;;  %v3152_v31 = vsel %vm941_vm7, %v3148_v33, %v3142_v6 }
 0x3df   :  { %v3155_v29 = vmul.f32 %v3149_v37, %v7342_v62  ;;  %v3156_v15 = vmul.f32 %v3152_v31, %v7336_v60  ;;  %6787 = vmatmul.mubr.msk.bf16.vlgmr.msra.gmra.mrb[88].mxu0 %vm165_vm3, %v7331_v59  ;;  %6789 = vmatmul.mubr.msk.bf16.vlgmr.msra.gmra.mrb[88].mxu1 %vm165_vm3, %v7331_v59  ;;  %v9056_v59 = vld [vmem:[#allocation12_spill] sm:$0xff] }
 0x3e0   :  { %v3158_v57 = vpack.c.bf16 %v3154_v36, %v3154_v36  ;;  %3056 = vmatpush1.bf16.msra.mxu0 %v3044_v9  ;;  %3097 = vmatpush1.bf16.msra.mxu1 %v3050_v58  ;;  %v3260_v6 = vpop.permute.xlu1 %3259 }
 0x3e1   :  { %v3160_v0 = vpack.c.bf16 %v3156_v15, %v3156_v15  ;;  %v3262_v3 = vpop.permute.xlu0 %3261  ;;  %3087 = vmatprep.mubr.bf16.mxu0 %v9039_v54  ;;  %3128 = vmatprep.mubr.bf16.mxu1 %v9039_v54  ;;  %v3159_v55 = vpack.c.bf16 %v3155_v29, %v3155_v29 }
 0x3e2   :  { %6794 = vmatprep.subr.msk.bf16.mxu0 %vm169_vm1, %v3158_v57  ;;  %v3269_v33 = vsel %vm1084_vm8, %v3260_v6, %v3262_v3  ;;  %v9054_v57 = vld [vmem:[#allocation11_spill] sm:$0xff] }
 0x3e3   :  { %6796 = vmatprep.subr.msk.bf16.mxu1 %vm169_vm1, %v3160_v0  ;;  %v3271_v31 = vmul.f32 %v3269_v33, %v7368_v34  ;;  %v3162_v0 = vsel %vm169_vm1, %v3157_v2, 0 }
 0x3e4   :  { %v3264_v32 = vpop.permute.xlu1 %3263 }
 0x3e5   :  { %v3268_v36 = vsel %vm1084_vm8, %v3262_v3, %v3264_v32  ;;  %v3266_v37 = vpop.permute.xlu0 %3265  ;;  %v3168_v3 = vsel %vm169_vm1, %v3159_v55, 0 }
 0x3e6   :  { %v3272_v9 = vmul.f32 %v3268_v36, %v7382_v52  ;;  %v3267_v15 = vsel %vm1084_vm8, %v3264_v32, %v3266_v37  ;;  %v3270_v41 = vsel %vm1084_vm8, %v3266_v37, %v3260_v6  ;;  %v3275_v37 = vpack.c.bf16 %v3271_v31, %v3271_v31 }
 0x3e7   :  { %v3273_v29 = vmul.f32 %v3267_v15, %v7385_v53  ;;  %v3274_v58 = vmul.f32 %v3270_v41, %v7379_v42  ;;  %6791 = vmatmul.mubr.msk.bf16.vlgmr.msra.gmra.mrb[92].mxu0 %vm165_vm3, %v9054_v57  ;;  %6793 = vmatmul.mubr.msk.bf16.vlgmr.msra.gmra.mrb[92].mxu1 %vm165_vm3, %v9054_v57 }
 0x3e8   :  { %v3276_v33 = vpack.c.bf16 %v3272_v9, %v3272_v9  ;;  %3174 = vmatpush1.bf16.msra.mxu0 %v3162_v0  ;;  %3215 = vmatpush1.bf16.msra.mxu1 %v3168_v3  ;;  %v3378_v32 = vpop.permute.xlu1 %3377 }
 0x3e9   :  { %v3278_v36 = vpack.c.bf16 %v3274_v58, %v3274_v58  ;;  %v3380_v6 = vpop.permute.xlu0 %3379  ;;  %3205 = vmatprep.mubr.bf16.mxu0 %v9039_v54  ;;  %3246 = vmatprep.mubr.bf16.mxu1 %v9039_v54  ;;  %v3277_v15 = vpack.c.bf16 %v3273_v29, %v3273_v29  ;;  %v3280_v29 = vsel %vm169_vm1, %v3275_v37, 0 }
 0x3ea   :  { %6798 = vmatprep.subr.msk.bf16.mxu0 %vm169_vm1, %v3276_v33  ;;  %v3387_v2 = vsel %vm1227_vm9, %v3378_v32, %v3380_v6 }
 0x3eb   :  { %6800 = vmatprep.subr.msk.bf16.mxu1 %vm169_vm1, %v3278_v36  ;;  %v3389_v3 = vmul.f32 %v3387_v2, %v7411_v30  ;;  %v9055_v36 = vld [vmem:[#allocation13_spill] sm:$0xff] }
 0x3ec   :  { %v3382_v55 = vpop.permute.xlu1 %3381 }
 0x3ed   :  { %v3386_v9 = vsel %vm1227_vm9, %v3380_v6, %v3382_v55  ;;  %v3384_v41 = vpop.permute.xlu0 %3383  ;;  %v3286_v6 = vsel %vm169_vm1, %v3277_v15, 0  ;;  %v3393_v37 = vpack.c.bf16 %v3389_v3, %v3389_v3 }
 0x3ee   :  { %v3390_v58 = vmul.f32 %v3386_v9, %v7425_v39  ;;  %v3385_v0 = vsel %vm1227_vm9, %v3382_v55, %v3384_v41  ;;  %v3388_v31 = vsel %vm1227_vm9, %v3384_v41, %v3378_v32  ;;  %v9057_v9 = vld [vmem:[#allocation14_spill] sm:$0xff]  ;;  %v9058_v41 = vld [vmem:[#allocation15_spill] sm:$0xff] }
 0x3ef   :  { %v3391_v33 = vmul.f32 %v3385_v0, %v7428_v40  ;;  %v3392_v57 = vmul.f32 %v3388_v31, %v9055_v36  ;;  %6795 = vmatmul.mubr.msk.bf16.vlgmr.msra.gmra.mrb[96].mxu0 %vm165_vm3, %v9056_v59  ;;  %6797 = vmatmul.mubr.msk.bf16.vlgmr.msra.gmra.mrb[96].mxu1 %vm165_vm3, %v9056_v59  ;;  %v3398_v15 = vsel %vm169_vm1, %v3393_v37, 0 }
 0x3f0   :  { %v3394_v55 = vpack.c.bf16 %v3390_v58, %v3390_v58  ;;  %3292 = vmatpush1.bf16.msra.mxu0 %v3280_v29  ;;  %3333 = vmatpush1.bf16.msra.mxu1 %v3286_v6 }
 0x3f1   :  { %v3396_v32 = vpack.c.bf16 %v3392_v57, %v3392_v57  ;;  %3323 = vmatprep.mubr.bf16.mxu0 %v9039_v54  ;;  %3364 = vmatprep.mubr.bf16.mxu1 %v9039_v54  ;;  %v3395_v2 = vpack.c.bf16 %v3391_v33, %v3391_v33 }
 0x3f2   :  { %6802 = vmatprep.subr.msk.bf16.mxu0 %vm169_vm1, %v3394_v55 }
 0x3f3   :  { %6804 = vmatprep.subr.msk.bf16.mxu1 %vm169_vm1, %v3396_v32  ;;  %v3404_v57 = vsel %vm169_vm1, %v3395_v2, 0 }
 0x3f7   :  { %6799 = vmatmul.mubr.msk.bf16.vlgmr.msra.gmra.mrb[100].mxu0 %vm165_vm3, %v9057_v9  ;;  %6801 = vmatmul.mubr.msk.bf16.vlgmr.msra.gmra.mrb[100].mxu1 %vm165_vm3, %v9057_v9 }
 0x3f8   :  { %3410 = vmatpush1.bf16.msra.mxu0 %v3398_v15  ;;  %3451 = vmatpush1.bf16.msra.mxu1 %v3404_v57 }
 0x3f9   :  { %3441 = vmatprep.mubr.bf16.mxu0 %v9039_v54  ;;  %3482 = vmatprep.mubr.bf16.mxu1 %v9039_v54 }
 0x3ff   :  { %6803 = vmatmul.mubr.msk.bf16.vlgmr.msra.gmra.mrb[104].mxu0 %vm165_vm3, %v9058_v41  ;;  %6805 = vmatmul.mubr.msk.bf16.vlgmr.msra.gmra.mrb[104].mxu1 %vm165_vm3, %v9058_v41 }
 0x400   :  { %3571 = vmatprep.mubr.bf16.mxu0 %v9039_v54  ;;  %3612 = vmatprep.mubr.bf16.mxu1 %v9039_v54 }
 0x492   :  { %v2527_v58 = vpop.f32.mrb[72].mxu0  ;;  %v2568_v0 = vpop.f32.mrb[72].mxu1 }
 0x493   :  { %v2529_v31 = vpop.f32.mrb[73].mxu0  ;;  %v2570_v29 = vpop.f32.mrb[73].mxu1 }
 0x494   :  { %v2531_v3 = vpop.f32.mrb[74].mxu0  ;;  %v2572_v33 = vpop.f32.mrb[74].mxu1 }
 0x495   :  { %v2532_v6 = vpop.f32.mrb[75].mxu0  ;;  %v2573_v55 = vpop.f32.mrb[75].mxu1 }
 0x49a   :  { %v2621_v32 = vpop.f32.mrb[76].mxu0  ;;  %v2662_v37 = vpop.f32.mrb[76].mxu1 }
 0x49b   :  { %v2622_v2 = vadd.f32 %v2621_v32, %v2527_v58  ;;  %v2663_v15 = vadd.f32 %v2662_v37, %v2568_v0  ;;  %v2623_v57 = vpop.f32.mrb[77].mxu0  ;;  %v2664_v9 = vpop.f32.mrb[77].mxu1 }
 0x49c   :  { %v2624_v59 = vadd.f32 %v2623_v57, %v2529_v31  ;;  %v2665_v41 = vadd.f32 %v2664_v9, %v2570_v29  ;;  %v2625_v24 = vpop.f32.mrb[78].mxu0  ;;  %v2666_v43 = vpop.f32.mrb[78].mxu1 }
 0x49d   :  { %v2626_v13 = vpop.f32.mrb[79].mxu0  ;;  %v2667_v44 = vpop.f32.mrb[79].mxu1 }
 0x4a2   :  { %v2735_v11 = vpop.f32.mrb[80].mxu0  ;;  %v2776_v7 = vpop.f32.mrb[80].mxu1 }
 0x4a3   :  { %v2783_v38 = vadd.f32 %v2735_v11, %v2622_v2  ;;  %v2785_v63 = vadd.f32 %v2776_v7, %v2663_v15  ;;  %v2737_v3 = vpop.f32.mrb[81].mxu0  ;;  %v2778_v33 = vpop.f32.mrb[81].mxu1 }
 0x4a4   :  { %v2784_v6 = vadd.f32 %v2737_v3, %v2624_v59  ;;  %v2786_v55 = vadd.f32 %v2778_v33, %v2665_v41  ;;  %v2739_v35 = vpop.f32.mrb[82].mxu0  ;;  %v2780_v10 = vpop.f32.mrb[82].mxu1 }
 0x4a5   :  { %v2740_v58 = vpop.f32.mrb[83].mxu0  ;;  %v2781_v0 = vpop.f32.mrb[83].mxu1 }
 0x4aa   :  { %v2853_v32 = vpop.f32.mrb[84].mxu0  ;;  %v2894_v37 = vpop.f32.mrb[84].mxu1 }
 0x4ab   :  { %v2901_v31 = vadd.f32 %v2853_v32, %v2783_v38  ;;  %v2903_v9 = vadd.f32 %v2894_v37, %v2785_v63  ;;  %v2855_v24 = vpop.f32.mrb[85].mxu0  ;;  %v2896_v43 = vpop.f32.mrb[85].mxu1 }
 0x4ac   :  { %v2902_v13 = vadd.f32 %v2855_v24, %v2784_v6  ;;  %v2904_v44 = vadd.f32 %v2896_v43, %v2786_v55  ;;  %v2857_v29 = vpop.f32.mrb[86].mxu0  ;;  %v2898_v57 = vpop.f32.mrb[86].mxu1 }
 0x4ad   :  { %v2858_v11 = vpop.f32.mrb[87].mxu0  ;;  %v2899_v7 = vpop.f32.mrb[87].mxu1 }
 0x4b2   :  { %v2971_v2 = vpop.f32.mrb[88].mxu0  ;;  %v3012_v15 = vpop.f32.mrb[88].mxu1 }
 0x4b3   :  { %v3019_v59 = vadd.f32 %v2971_v2, %v2901_v31  ;;  %v3021_v41 = vadd.f32 %v3012_v15, %v2903_v9  ;;  %v2973_v35 = vpop.f32.mrb[89].mxu0  ;;  %v3014_v10 = vpop.f32.mrb[89].mxu1 }
 0x4b4   :  { %v3020_v3 = vadd.f32 %v2973_v35, %v2902_v13  ;;  %v3022_v33 = vadd.f32 %v3014_v10, %v2904_v44  ;;  %v2975_v58 = vpop.f32.mrb[90].mxu0  ;;  %v3016_v0 = vpop.f32.mrb[90].mxu1 }
 0x4b5   :  { %v2976_v38 = vpop.f32.mrb[91].mxu0  ;;  %v3017_v63 = vpop.f32.mrb[91].mxu1 }
 0x4ba   :  { %v3089_v32 = vpop.f32.mrb[92].mxu0  ;;  %v3130_v37 = vpop.f32.mrb[92].mxu1 }
 0x4bb   :  { %v3137_v6 = vadd.f32 %v3089_v32, %v3019_v59  ;;  %v3139_v55 = vadd.f32 %v3130_v37, %v3021_v41  ;;  %v3091_v24 = vpop.f32.mrb[93].mxu0  ;;  %v3132_v43 = vpop.f32.mrb[93].mxu1 }
 0x4bc   :  { %v3138_v29 = vadd.f32 %v3091_v24, %v3020_v3  ;;  %v3140_v57 = vadd.f32 %v3132_v43, %v3022_v33  ;;  %v3093_v11 = vpop.f32.mrb[94].mxu0  ;;  %v3134_v7 = vpop.f32.mrb[94].mxu1 }
 0x4bd   :  { %v3094_v31 = vpop.f32.mrb[95].mxu0  ;;  %v3135_v9 = vpop.f32.mrb[95].mxu1 }
 0x4c2   :  { %v3207_v2 = vpop.f32.mrb[96].mxu0  ;;  %v3248_v15 = vpop.f32.mrb[96].mxu1 }
 0x4c3   :  { %v3255_v13 = vadd.f32 %v3207_v2, %v3137_v6  ;;  %v3257_v44 = vadd.f32 %v3248_v15, %v3139_v55  ;;  %v3209_v35 = vpop.f32.mrb[97].mxu0  ;;  %v3250_v10 = vpop.f32.mrb[97].mxu1 }
 0x4c4   :  { %v3256_v58 = vadd.f32 %v3209_v35, %v3138_v29  ;;  %v3258_v0 = vadd.f32 %v3250_v10, %v3140_v57  ;;  %v3211_v38 = vpop.f32.mrb[98].mxu0  ;;  %v3252_v63 = vpop.f32.mrb[98].mxu1 }
 0x4c5   :  { %v3212_v59 = vpop.f32.mrb[99].mxu0  ;;  %v3253_v41 = vpop.f32.mrb[99].mxu1 }
 0x4ca   :  { %v3325_v32 = vpop.f32.mrb[100].mxu0  ;;  %v3366_v37 = vpop.f32.mrb[100].mxu1 }
 0x4cb   :  { %v3373_v3 = vadd.f32 %v3325_v32, %v3255_v13  ;;  %v3375_v33 = vadd.f32 %v3366_v37, %v3257_v44  ;;  %v3327_v24 = vpop.f32.mrb[101].mxu0  ;;  %v3368_v43 = vpop.f32.mrb[101].mxu1  ;;  %v9059_v13 = vld [vmem:[#allocation16_spill] sm:$0xff] }
 0x4cc   :  { %v3374_v11 = vadd.f32 %v3327_v24, %v3256_v58  ;;  %v3376_v7 = vadd.f32 %v3368_v43, %v3258_v0  ;;  %v3329_v31 = vpop.f32.mrb[102].mxu0  ;;  %v3370_v9 = vpop.f32.mrb[102].mxu1 }
 0x4cd   :  { %v3330_v6 = vpop.f32.mrb[103].mxu0  ;;  %v3371_v55 = vpop.f32.mrb[103].mxu1 }
 0x4d2   :  { %v3443_v2 = vpop.f32.mrb[104].mxu0  ;;  %v3484_v15 = vpop.f32.mrb[104].mxu1 }
 0x4d3   :  { %v3491_v29 = vadd.f32 %v3443_v2, %v3373_v3  ;;  %v3493_v57 = vadd.f32 %v3484_v15, %v3375_v33  ;;  %v3445_v35 = vpop.f32.mrb[105].mxu0  ;;  %v3486_v10 = vpop.f32.mrb[105].mxu1 }
 0x4d4   :  { %v3492_v38 = vadd.f32 %v3445_v35, %v3374_v11  ;;  %v3494_v63 = vadd.f32 %v3486_v10, %v3376_v7  ;;  %v3447_v59 = vpop.f32.mrb[106].mxu0  ;;  %v3488_v41 = vpop.f32.mrb[106].mxu1 }
 0x4d5   :  { %v3495_v44 = vadd.f32 %v3491_v29, %v9059_v13  ;;  %v3448_v32 = vpop.f32.mrb[107].mxu0  ;;  %v3489_v37 = vpop.f32.mrb[107].mxu1  ;;  %v3497_v24 = vadd.f32 %v3493_v57, %v9059_v13 }
 0x4d6   :  { %v3496_v58 = vadd.f32 %v3492_v38, %v9059_v13  ;;  %v3498_v3 = vadd.f32 %v3494_v63, %v9059_v13 }
 0x4d7   :  { %v8104_v0 = vmax.f32 %v3495_v44, 0.0  ;;  %v8114_v33 = vmax.f32 %v3497_v24, 0.0 }
 0x4d8   :  { %v8107_v43 = vmax.f32 %v3496_v58, 0.0  ;;  %v8116_v11 = vmax.f32 %v3498_v3, 0.0 }
 0x4d9   :  { %3507 = vrot.lane.b32.xlu1 %v8104_v0, %s6957_s28  ;;  %v3505_v3 = vpack.c.bf16 %v8114_v33, %v8114_v33 }
 0x4da   :  { %3509 = vrot.lane.b32.xlu0 %v8107_v43, %s6957_s28 }
 0x4dd   :  { %3511 = vrot.lane.b32.xlu1 %v8114_v33, %s6957_s28 }
 0x4de   :  { %3513 = vrot.lane.b32.xlu0 %v8116_v11, %s6957_s28 }
 0x4e1   :  { %3715 = vrot.lane.b32.xlu1 %v8104_v0, %s6959_s10 }
 0x4e2   :  { %3717 = vrot.lane.b32.xlu0 %v8107_v43, %s6959_s10 }
 0x4e5   :  { %3719 = vrot.lane.b32.xlu1 %v8114_v33, %s6959_s10 }
 0x4e6   :  { %3721 = vrot.lane.b32.xlu0 %v8116_v11, %s6959_s10 }
 0x4e9   :  { %3833 = vrot.lane.b32.xlu1 %v8104_v0, %s6960_s11 }
 0x4ea   :  { %3835 = vrot.lane.b32.xlu0 %v8107_v43, %s6960_s11 }
 0x4ed   :  { %3837 = vrot.lane.b32.xlu1 %v8114_v33, %s6960_s11 }
 0x4ee   :  { %3839 = vrot.lane.b32.xlu0 %v8116_v11, %s6960_s11 }
 0x4f1   :  { %3951 = vrot.lane.b32.xlu1 %v8104_v0, %s6961_s12 }
 0x4f2   :  { %3953 = vrot.lane.b32.xlu0 %v8107_v43, %s6961_s12 }
 0x4f5   :  { %3955 = vrot.lane.b32.xlu1 %v8114_v33, %s6961_s12 }
 0x4f6   :  { %3957 = vrot.lane.b32.xlu0 %v8116_v11, %s6961_s12 }
 0x4f9   :  { %4069 = vrot.lane.b32.xlu1 %v8104_v0, %s6962_s13 }
 0x4fa   :  { %4071 = vrot.lane.b32.xlu0 %v8107_v43, %s6962_s13 }
 0x4fd   :  { %4073 = vrot.lane.b32.xlu1 %v8114_v33, %s6962_s13 }
 0x4fe   :  { %4075 = vrot.lane.b32.xlu0 %v8116_v11, %s6962_s13 }
 0x501   :  { %4187 = vrot.lane.b32.xlu1 %v8104_v0, %s6963_s14 }
 0x502   :  { %4189 = vrot.lane.b32.xlu0 %v8107_v43, %s6963_s14 }
 0x505   :  { %4191 = vrot.lane.b32.xlu1 %v8114_v33, %s6963_s14 }
 0x506   :  { %4193 = vrot.lane.b32.xlu0 %v8116_v11, %s6963_s14 }
 0x509   :  { %4305 = vrot.lane.b32.xlu1 %v8104_v0, %s6964_s15 }
 0x50a   :  { %4307 = vrot.lane.b32.xlu0 %v8107_v43, %s6964_s15 }
 0x50d   :  { %4309 = vrot.lane.b32.xlu1 %v8114_v33, %s6964_s15 }
 0x50e   :  { %4311 = vrot.lane.b32.xlu0 %v8116_v11, %s6964_s15 }
 0x511   :  { %4423 = vrot.lane.b32.xlu1 %v8104_v0, %s6965_s16 }
 0x512   :  { %4425 = vrot.lane.b32.xlu0 %v8107_v43, %s6965_s16 }
 0x515   :  { %4427 = vrot.lane.b32.xlu1 %v8114_v33, %s6965_s16 }
 0x516   :  { %4429 = vrot.lane.b32.xlu0 %v8116_v11, %s6965_s16 }
 0x54b   :  { %v3508_v7 = vpop.permute.xlu1 %3507 }
 0x54c   :  { %v3510_v31 = vpop.permute.xlu0 %3509 }
 0x54d   :  { %v3517_v9 = vsel %vm131_vm0, %v3508_v7, %v3510_v31 }
 0x54e   :  { %v3520_v6 = vmul.f32 %v3517_v9, %v7115_v17 }
 0x54f   :  { %v3512_v55 = vpop.permute.xlu1 %3511 }
 0x550   :  { %v3524_v2 = vpack.c.bf16 %v3520_v6, %v3520_v6  ;;  %v3516_v15 = vsel %vm131_vm0, %v3510_v31, %v3512_v55  ;;  %v3514_v29 = vpop.permute.xlu0 %3513  ;;  %v3504_v6 = vpack.c.bf16 %v8107_v43, %v8107_v43 }
 0x551   :  { %v3521_v57 = vmul.f32 %v3516_v15, %v7124_v20  ;;  %v3515_v35 = vsel %vm131_vm0, %v3512_v55, %v3514_v29  ;;  %v3518_v10 = vsel %vm131_vm0, %v3514_v29, %v3508_v7  ;;  %v3503_v7 = vpack.c.bf16 %v8104_v0, %v8104_v0 }
 0x552   :  { %v3519_v38 = vmul.f32 %v3518_v10, %v7121_v19  ;;  %v3522_v63 = vmul.f32 %v3515_v35, %v7118_v18  ;;  %6806 = vmatprep.subr.msk.bf16.mxu0 %vm169_vm1, %v3524_v2  ;;  %v3506_v55 = vpack.c.bf16 %v8116_v11, %v8116_v11  ;;  %v3628_v11 = vsel %vm169_vm1, %v3505_v3, 0 }
 0x553   :  { %v3525_v59 = vpack.c.bf16 %v3521_v57, %v3521_v57  ;;  %v3716_v41 = vpop.permute.xlu1 %3715 }
 0x554   :  { %v3523_v44 = vpack.c.bf16 %v3519_v38, %v3519_v38  ;;  %v3526_v32 = vpack.c.bf16 %v3522_v63, %v3522_v63  ;;  %v3718_v37 = vpop.permute.xlu0 %3717  ;;  %v9060_v38 = vld [vmem:[#allocation17_spill] sm:$0xff]  ;;  %v3622_v63 = vsel %vm169_vm1, %v3503_v7, 0 }
 0x555   :  { %v3725_v58 = vsel %vm369_vm2, %v3716_v41, %v3718_v37  ;;  %v3534_v24 = vsel %vm169_vm1, %v3525_v59, 0 }
 0x556   :  { %v3728_v31 = vmul.f32 %v3725_v58, %v7128_v23  ;;  %6808 = vmatprep.subr.msk.bf16.mxu1 %vm169_vm1, %v3526_v32  ;;  %v3528_v9 = vsel %vm169_vm1, %v3523_v44, 0 }
 0x557   :  { %3540 = vmatpush1.bf16.msra.mxu0 %v3528_v9  ;;  %3581 = vmatpush1.bf16.msra.mxu1 %v3534_v24  ;;  %v3720_v2 = vpop.permute.xlu1 %3719 }
 0x558   :  { %v3724_v33 = vsel %vm369_vm2, %v3718_v37, %v3720_v2  ;;  %v3722_v15 = vpop.permute.xlu0 %3721  ;;  %6810 = vmatprep.subr.msk.bf16.mxu0 %vm169_vm1, %v3504_v6  ;;  %6812 = vmatprep.subr.msk.bf16.mxu1 %vm169_vm1, %v3506_v55  ;;  %v3732_v0 = vpack.c.bf16 %v3728_v31, %v3728_v31 }
 0x559   :  { %v3723_v29 = vsel %vm369_vm2, %v3720_v2, %v3722_v15  ;;  %v3726_v43 = vsel %vm369_vm2, %v3722_v15, %v3716_v41  ;;  %v3729_v57 = vmul.f32 %v3724_v33, %v7172_v51 }
 0x55a   :  { %v3727_v35 = vmul.f32 %v3726_v43, %v7158_v45  ;;  %v3730_v10 = vmul.f32 %v3723_v29, %v7161_v46  ;;  %6807 = vmatmul.mubr.msk.bf16.vlgmr.msra.gmra.mrb[108].mxu0 %vm165_vm3, %v9060_v38  ;;  %6809 = vmatmul.mubr.msk.bf16.vlgmr.msra.gmra.mrb[108].mxu1 %vm165_vm3, %v9060_v38 }
 0x55b   :  { %3675 = vmatpush1.bf16.msra.mxu1 %v3628_v11  ;;  %v3834_v59 = vpop.permute.xlu1 %3833  ;;  %3634 = vmatpush1.bf16.msra.mxu0 %v3622_v63  ;;  %v3733_v37 = vpack.c.bf16 %v3729_v57, %v3729_v57 }
 0x55c   :  { %v3734_v41 = vpack.c.bf16 %v3730_v10, %v3730_v10  ;;  %v3836_v44 = vpop.permute.xlu0 %3835  ;;  %6814 = vmatprep.subr.msk.bf16.mxu0 %vm169_vm1, %v3732_v0  ;;  %3665 = vmatprep.mubr.bf16.mxu0 %v9039_v54  ;;  %v3731_v58 = vpack.c.bf16 %v3727_v35, %v3727_v35  ;;  %v9061_v0 = vld [vmem:[#allocation18_spill] sm:$0xff] }
 0x55d   :  { %v3843_v32 = vsel %vm512_vm4, %v3834_v59, %v3836_v44  ;;  %3706 = vmatprep.mubr.bf16.mxu1 %v9039_v54  ;;  %v3742_v43 = vsel %vm169_vm1, %v3733_v37, 0 }
 0x55e   :  { %v3846_v24 = vmul.f32 %v3843_v32, %v7179_v56  ;;  %6816 = vmatprep.subr.msk.bf16.mxu1 %vm169_vm1, %v3734_v41  ;;  %v3736_v29 = vsel %vm169_vm1, %v3731_v58, 0 }
 0x55f   :  { %v3838_v3 = vpop.permute.xlu1 %3837 }
 0x560   :  { %v3850_v7 = vpack.c.bf16 %v3846_v24, %v3846_v24  ;;  %v3842_v31 = vsel %vm512_vm4, %v3836_v44, %v3838_v3  ;;  %v3840_v9 = vpop.permute.xlu0 %3839 }
 0x561   :  { %v3847_v6 = vmul.f32 %v3842_v31, %v7214_v21  ;;  %v3841_v55 = vsel %vm512_vm4, %v3838_v3, %v3840_v9  ;;  %v3844_v2 = vsel %vm512_vm4, %v3840_v9, %v3834_v59 }
 0x562   :  { %v3845_v33 = vmul.f32 %v3844_v2, %v7211_v16  ;;  %v3848_v15 = vmul.f32 %v3841_v55, %v7217_v22  ;;  %6811 = vmatmul.mubr.msk.bf16.vlgmr.msra.gmra.mrb[112].mxu0 %vm165_vm3, %v9061_v0  ;;  %6813 = vmatmul.mubr.msk.bf16.vlgmr.msra.gmra.mrb[112].mxu1 %vm165_vm3, %v9061_v0  ;;  %v9062_v55 = vld [vmem:[#allocation19_spill] sm:$0xff] }
 0x563   :  { %3748 = vmatpush1.bf16.msra.mxu0 %v3736_v29  ;;  %3789 = vmatpush1.bf16.msra.mxu1 %v3742_v43  ;;  %v3952_v11 = vpop.permute.xlu1 %3951  ;;  %v3851_v10 = vpack.c.bf16 %v3847_v6, %v3847_v6 }
 0x564   :  { %v3852_v57 = vpack.c.bf16 %v3848_v15, %v3848_v15  ;;  %6818 = vmatprep.subr.msk.bf16.mxu0 %vm169_vm1, %v3850_v7  ;;  %v3954_v35 = vpop.permute.xlu0 %3953  ;;  %3779 = vmatprep.mubr.bf16.mxu0 %v9039_v54  ;;  %v3849_v59 = vpack.c.bf16 %v3845_v33, %v3845_v33 }
 0x565   :  { %v3961_v63 = vsel %vm655_vm5, %v3952_v11, %v3954_v35  ;;  %3820 = vmatprep.mubr.bf16.mxu1 %v9039_v54  ;;  %v3860_v7 = vsel %vm169_vm1, %v3851_v10, 0 }
 0x566   :  { %v3964_v41 = vmul.f32 %v3961_v63, %v7222_v28  ;;  %6820 = vmatprep.subr.msk.bf16.mxu1 %vm169_vm1, %v3852_v57  ;;  %v3854_v2 = vsel %vm169_vm1, %v3849_v59, 0 }
 0x567   :  { %v3956_v44 = vpop.permute.xlu1 %3955 }
 0x568   :  { %v3968_v32 = vpack.c.bf16 %v3964_v41, %v3964_v41  ;;  %v3960_v37 = vsel %vm655_vm5, %v3954_v35, %v3956_v44  ;;  %v3958_v58 = vpop.permute.xlu0 %3957 }
 0x569   :  { %v3959_v24 = vsel %vm655_vm5, %v3956_v44, %v3958_v58  ;;  %v3962_v3 = vsel %vm655_vm5, %v3958_v58, %v3952_v11  ;;  %v3965_v31 = vmul.f32 %v3960_v37, %v7254_v49 }
 0x56a   :  { %v3963_v9 = vmul.f32 %v3962_v3, %v7251_v48  ;;  %v3966_v6 = vmul.f32 %v3959_v24, %v7257_v50  ;;  %6815 = vmatmul.mubr.msk.bf16.vlgmr.msra.gmra.mrb[116].mxu0 %vm165_vm3, %v9062_v55  ;;  %6817 = vmatmul.mubr.msk.bf16.vlgmr.msra.gmra.mrb[116].mxu1 %vm165_vm3, %v9062_v55  ;;  %v9063_v24 = vld [vmem:[#allocation20_spill] sm:$0xff] }
 0x56b   :  { %3866 = vmatpush1.bf16.msra.mxu0 %v3854_v2  ;;  %3907 = vmatpush1.bf16.msra.mxu1 %v3860_v7  ;;  %v4070_v33 = vpop.permute.xlu1 %4069  ;;  %v3969_v43 = vpack.c.bf16 %v3965_v31, %v3965_v31 }
 0x56c   :  { %v3970_v15 = vpack.c.bf16 %v3966_v6, %v3966_v6  ;;  %6822 = vmatprep.subr.msk.bf16.mxu0 %vm169_vm1, %v3968_v32  ;;  %v4072_v29 = vpop.permute.xlu0 %4071  ;;  %3897 = vmatprep.mubr.bf16.mxu0 %v9039_v54  ;;  %v3967_v11 = vpack.c.bf16 %v3963_v9, %v3963_v9 }
 0x56d   :  { %3938 = vmatprep.mubr.bf16.mxu1 %v9039_v54  ;;  %v4079_v57 = vsel %vm798_vm6, %v4070_v33, %v4072_v29  ;;  %v3978_v7 = vsel %vm169_vm1, %v3969_v43, 0 }
 0x56e   :  { %6824 = vmatprep.subr.msk.bf16.mxu1 %vm169_vm1, %v3970_v15  ;;  %v4081_v59 = vmul.f32 %v4079_v57, %v7279_v1  ;;  %v3972_v3 = vsel %vm169_vm1, %v3967_v11, 0 }
 0x56f   :  { %v4074_v35 = vpop.permute.xlu1 %4073 }
 0x570   :  { %v4078_v10 = vsel %vm798_vm6, %v4072_v29, %v4074_v35  ;;  %v4076_v63 = vpop.permute.xlu0 %4075 }
 0x571   :  { %v4082_v41 = vmul.f32 %v4078_v10, %v7296_v26  ;;  %v4077_v44 = vsel %vm798_vm6, %v4074_v35, %v4076_v63  ;;  %v4080_v32 = vsel %vm798_vm6, %v4076_v63, %v4070_v33  ;;  %v4085_v33 = vpack.c.bf16 %v4081_v59, %v4081_v59 }
 0x572   :  { %v4083_v37 = vmul.f32 %v4077_v44, %v7299_v27  ;;  %v4084_v58 = vmul.f32 %v4080_v32, %v7293_v25  ;;  %6819 = vmatmul.mubr.msk.bf16.vlgmr.msra.gmra.mrb[120].mxu0 %vm165_vm3, %v9063_v24  ;;  %6821 = vmatmul.mubr.msk.bf16.vlgmr.msra.gmra.mrb[120].mxu1 %vm165_vm3, %v9063_v24 }
 0x573   :  { %v4086_v31 = vpack.c.bf16 %v4082_v41, %v4082_v41  ;;  %3984 = vmatpush1.bf16.msra.mxu0 %v3972_v3  ;;  %4025 = vmatpush1.bf16.msra.mxu1 %v3978_v7  ;;  %v4188_v9 = vpop.permute.xlu1 %4187  ;;  %v4090_v59 = vsel %vm169_vm1, %v4085_v33, 0 }
 0x574   :  { %v4088_v6 = vpack.c.bf16 %v4084_v58, %v4084_v58  ;;  %v4190_v2 = vpop.permute.xlu0 %4189  ;;  %4015 = vmatprep.mubr.bf16.mxu0 %v9039_v54  ;;  %4056 = vmatprep.mubr.bf16.mxu1 %v9039_v54  ;;  %v4087_v15 = vpack.c.bf16 %v4083_v37, %v4083_v37  ;;  %v9064_v37 = vld [vmem:[#allocation21_spill] sm:$0xff] }
 0x575   :  { %6826 = vmatprep.subr.msk.bf16.mxu0 %vm169_vm1, %v4086_v31  ;;  %v4197_v29 = vsel %vm941_vm7, %v4188_v9, %v4190_v2 }
 0x576   :  { %6828 = vmatprep.subr.msk.bf16.mxu1 %vm169_vm1, %v4088_v6  ;;  %v4199_v41 = vmul.f32 %v4197_v29, %v7325_v47  ;;  %v4096_v58 = vsel %vm169_vm1, %v4087_v15, 0 }
 0x577   :  { %v4192_v43 = vpop.permute.xlu1 %4191 }
 0x578   :  { %v4196_v11 = vsel %vm941_vm7, %v4190_v2, %v4192_v43  ;;  %v4194_v57 = vpop.permute.xlu0 %4193  ;;  %v4203_v6 = vpack.c.bf16 %v4199_v41, %v4199_v41  ;;  %v9065_v41 = vld [vmem:[#allocation22_spill] sm:$0xff] }
 0x579   :  { %v4200_v35 = vmul.f32 %v4196_v11, %v7339_v61  ;;  %v4195_v10 = vsel %vm941_vm7, %v4192_v43, %v4194_v57  ;;  %v4198_v63 = vsel %vm941_vm7, %v4194_v57, %v4188_v9 }
 0x57a   :  { %v4201_v44 = vmul.f32 %v4195_v10, %v7342_v62  ;;  %v4202_v32 = vmul.f32 %v4198_v63, %v7336_v60  ;;  %6823 = vmatmul.mubr.msk.bf16.vlgmr.msra.gmra.mrb[124].mxu0 %vm165_vm3, %v9064_v37  ;;  %6825 = vmatmul.mubr.msk.bf16.vlgmr.msra.gmra.mrb[124].mxu1 %vm165_vm3, %v9064_v37 }
 0x57b   :  { %v4204_v3 = vpack.c.bf16 %v4200_v35, %v4200_v35  ;;  %4102 = vmatpush1.bf16.msra.mxu0 %v4090_v59  ;;  %4143 = vmatpush1.bf16.msra.mxu1 %v4096_v58  ;;  %v4306_v7 = vpop.permute.xlu1 %4305 }
 0x57c   :  { %v4206_v31 = vpack.c.bf16 %v4202_v32, %v4202_v32  ;;  %v4308_v9 = vpop.permute.xlu0 %4307  ;;  %4133 = vmatprep.mubr.bf16.mxu0 %v9039_v54  ;;  %4174 = vmatprep.mubr.bf16.mxu1 %v9039_v54  ;;  %v4205_v2 = vpack.c.bf16 %v4201_v44, %v4201_v44  ;;  %v4208_v44 = vsel %vm169_vm1, %v4203_v6, 0 }
 0x57d   :  { %6830 = vmatprep.subr.msk.bf16.mxu0 %vm169_vm1, %v4204_v3  ;;  %v4315_v33 = vsel %vm1084_vm8, %v4306_v7, %v4308_v9 }
 0x57e   :  { %6832 = vmatprep.subr.msk.bf16.mxu1 %vm169_vm1, %v4206_v31  ;;  %v4317_v11 = vmul.f32 %v4315_v33, %v7368_v34  ;;  %v4214_v32 = vsel %vm169_vm1, %v4205_v2, 0 }
 0x57f   :  { %v4310_v15 = vpop.permute.xlu1 %4309 }
 0x580   :  { %v4314_v29 = vsel %vm1084_vm8, %v4308_v9, %v4310_v15  ;;  %v4312_v43 = vpop.permute.xlu0 %4311  ;;  %v4321_v9 = vpack.c.bf16 %v4317_v11, %v4317_v11 }
 0x581   :  { %v4318_v57 = vmul.f32 %v4314_v29, %v7382_v52  ;;  %v4313_v35 = vsel %vm1084_vm8, %v4310_v15, %v4312_v43  ;;  %v4316_v10 = vsel %vm1084_vm8, %v4312_v43, %v4306_v7 }
 0x582   :  { %v4319_v63 = vmul.f32 %v4313_v35, %v7385_v53  ;;  %v4320_v59 = vmul.f32 %v4316_v10, %v7379_v42  ;;  %6827 = vmatmul.mubr.msk.bf16.vlgmr.msra.gmra.mrb[128].mxu0 %vm165_vm3, %v9065_v41  ;;  %6829 = vmatmul.mubr.msk.bf16.vlgmr.msra.gmra.mrb[128].mxu1 %vm165_vm3, %v9065_v41  ;;  %v4326_v35 = vsel %vm169_vm1, %v4321_v9, 0  ;;  %v9067_v9 = vld [vmem:[#allocation24_spill] sm:$0xff] }
 0x583   :  { %v4322_v58 = vpack.c.bf16 %v4318_v57, %v4318_v57  ;;  %4220 = vmatpush1.bf16.msra.mxu0 %v4208_v44  ;;  %4261 = vmatpush1.bf16.msra.mxu1 %v4214_v32  ;;  %v4424_v3 = vpop.permute.xlu1 %4423  ;;  %v9066_v44 = vld [vmem:[#allocation23_spill] sm:$0xff] }
 0x584   :  { %v4324_v31 = vpack.c.bf16 %v4320_v59, %v4320_v59  ;;  %v4426_v7 = vpop.permute.xlu0 %4425  ;;  %4251 = vmatprep.mubr.bf16.mxu0 %v9039_v54  ;;  %4292 = vmatprep.mubr.bf16.mxu1 %v9039_v54  ;;  %v4323_v33 = vpack.c.bf16 %v4319_v63, %v4319_v63 }
 0x585   :  { %6834 = vmatprep.subr.msk.bf16.mxu0 %vm169_vm1, %v4322_v58  ;;  %v4433_v6 = vsel %vm1227_vm9, %v4424_v3, %v4426_v7 }
 0x586   :  { %6836 = vmatprep.subr.msk.bf16.mxu1 %vm169_vm1, %v4324_v31  ;;  %v4435_v10 = vmul.f32 %v4433_v6, %v7411_v30  ;;  %v4332_v32 = vsel %vm169_vm1, %v4323_v33, 0 }
 0x587   :  { %v4428_v2 = vpop.permute.xlu1 %4427 }
 0x588   :  { %v4432_v15 = vsel %vm1227_vm9, %v4426_v7, %v4428_v2  ;;  %v4430_v29 = vpop.permute.xlu0 %4429  ;;  %v4439_v31 = vpack.c.bf16 %v4435_v10, %v4435_v10 }
 0x589   :  { %v4436_v43 = vmul.f32 %v4432_v15, %v7425_v39  ;;  %v4431_v57 = vsel %vm1227_vm9, %v4428_v2, %v4430_v29  ;;  %v4434_v11 = vsel %vm1227_vm9, %v4430_v29, %v4424_v3  ;;  %v9068_v2 = vld [vmem:[#allocation25_spill] sm:$0xff] }
 0x58a   :  { %v4437_v63 = vmul.f32 %v4431_v57, %v7428_v40  ;;  %v4438_v59 = vmul.f32 %v4434_v11, %v9055_v36  ;;  %6831 = vmatmul.mubr.msk.bf16.vlgmr.msra.gmra.mrb[132].mxu0 %vm165_vm3, %v9066_v44  ;;  %6833 = vmatmul.mubr.msk.bf16.vlgmr.msra.gmra.mrb[132].mxu1 %vm165_vm3, %v9066_v44  ;;  %v4444_v33 = vsel %vm169_vm1, %v4439_v31, 0 }
 0x58b   :  { %v4440_v58 = vpack.c.bf16 %v4436_v43, %v4436_v43  ;;  %4338 = vmatpush1.bf16.msra.mxu0 %v4326_v35  ;;  %4379 = vmatpush1.bf16.msra.mxu1 %v4332_v32 }
 0x58c   :  { %v4442_v3 = vpack.c.bf16 %v4438_v59, %v4438_v59  ;;  %4369 = vmatprep.mubr.bf16.mxu0 %v9039_v54  ;;  %4410 = vmatprep.mubr.bf16.mxu1 %v9039_v54  ;;  %v4441_v7 = vpack.c.bf16 %v4437_v63, %v4437_v63 }
 0x58d   :  { %6838 = vmatprep.subr.msk.bf16.mxu0 %vm169_vm1, %v4440_v58 }
 0x58e   :  { %6840 = vmatprep.subr.msk.bf16.mxu1 %vm169_vm1, %v4442_v3  ;;  %v4450_v6 = vsel %vm169_vm1, %v4441_v7, 0 }
 0x592   :  { %6835 = vmatmul.mubr.msk.bf16.vlgmr.msra.gmra.mrb[136].mxu0 %vm165_vm3, %v9067_v9  ;;  %6837 = vmatmul.mubr.msk.bf16.vlgmr.msra.gmra.mrb[136].mxu1 %vm165_vm3, %v9067_v9 }
 0x593   :  { %4456 = vmatpush1.bf16.msra.mxu0 %v4444_v33  ;;  %4497 = vmatpush1.bf16.msra.mxu1 %v4450_v6 }
 0x594   :  { %4487 = vmatprep.mubr.bf16.mxu0 %v9039_v54  ;;  %4528 = vmatprep.mubr.bf16.mxu1 %v9039_v54 }
 0x59a   :  { %6839 = vmatmul.mubr.msk.bf16.vlgmr.msra.gmra.mrb[140].mxu0 %vm165_vm3, %v9068_v2  ;;  %6841 = vmatmul.mubr.msk.bf16.vlgmr.msra.gmra.mrb[140].mxu1 %vm165_vm3, %v9068_v2 }
 0x59b   :  { %4625 = vmatprep.mubr.bf16.mxu0 %v9039_v54  ;;  %4666 = vmatprep.mubr.bf16.mxu1 %v9039_v54 }
 0x62d   :  { %v3573_v15 = vpop.f32.mrb[108].mxu0  ;;  %v3614_v29 = vpop.f32.mrb[108].mxu1 }
 0x62e   :  { %v3575_v43 = vpop.f32.mrb[109].mxu0  ;;  %v3616_v57 = vpop.f32.mrb[109].mxu1 }
 0x62f   :  { %v3577_v11 = vpop.f32.mrb[110].mxu0  ;;  %v3618_v35 = vpop.f32.mrb[110].mxu1 }
 0x630   :  { %v3578_v10 = vpop.f32.mrb[111].mxu0  ;;  %v3619_v63 = vpop.f32.mrb[111].mxu1 }
 0x635   :  { %v3667_v59 = vpop.f32.mrb[112].mxu0  ;;  %v3708_v32 = vpop.f32.mrb[112].mxu1 }
 0x636   :  { %v3668_v58 = vadd.f32 %v3667_v59, %v3573_v15  ;;  %v3709_v3 = vadd.f32 %v3708_v32, %v3614_v29  ;;  %v3669_v31 = vpop.f32.mrb[113].mxu0  ;;  %v3710_v7 = vpop.f32.mrb[113].mxu1 }
 0x637   :  { %v3670_v33 = vadd.f32 %v3669_v31, %v3575_v43  ;;  %v3711_v6 = vadd.f32 %v3710_v7, %v3616_v57  ;;  %v3671_v2 = vpop.f32.mrb[114].mxu0  ;;  %v3712_v9 = vpop.f32.mrb[114].mxu1 }
 0x638   :  { %v3672_v44 = vpop.f32.mrb[115].mxu0  ;;  %v3713_v41 = vpop.f32.mrb[115].mxu1 }
 0x63d   :  { %v3781_v37 = vpop.f32.mrb[116].mxu0  ;;  %v3822_v24 = vpop.f32.mrb[116].mxu1 }
 0x63e   :  { %v3829_v55 = vadd.f32 %v3781_v37, %v3668_v58  ;;  %v3831_v0 = vadd.f32 %v3822_v24, %v3709_v3  ;;  %v3783_v11 = vpop.f32.mrb[117].mxu0  ;;  %v3824_v35 = vpop.f32.mrb[117].mxu1 }
 0x63f   :  { %v3830_v10 = vadd.f32 %v3783_v11, %v3670_v33  ;;  %v3832_v63 = vadd.f32 %v3824_v35, %v3711_v6  ;;  %v3785_v38 = vpop.f32.mrb[118].mxu0  ;;  %v3826_v13 = vpop.f32.mrb[118].mxu1 }
 0x640   :  { %v3786_v15 = vpop.f32.mrb[119].mxu0  ;;  %v3827_v29 = vpop.f32.mrb[119].mxu1 }
 0x645   :  { %v3899_v59 = vpop.f32.mrb[120].mxu0  ;;  %v3940_v32 = vpop.f32.mrb[120].mxu1 }
 0x646   :  { %v3947_v43 = vadd.f32 %v3899_v59, %v3829_v55  ;;  %v3949_v57 = vadd.f32 %v3940_v32, %v3831_v0  ;;  %v3901_v2 = vpop.f32.mrb[121].mxu0  ;;  %v3942_v9 = vpop.f32.mrb[121].mxu1 }
 0x647   :  { %v3948_v44 = vadd.f32 %v3901_v2, %v3830_v10  ;;  %v3950_v41 = vadd.f32 %v3942_v9, %v3832_v63  ;;  %v3903_v31 = vpop.f32.mrb[122].mxu0  ;;  %v3944_v7 = vpop.f32.mrb[122].mxu1 }
 0x648   :  { %v3904_v37 = vpop.f32.mrb[123].mxu0  ;;  %v3945_v24 = vpop.f32.mrb[123].mxu1 }
 0x64d   :  { %v4017_v58 = vpop.f32.mrb[124].mxu0  ;;  %v4058_v3 = vpop.f32.mrb[124].mxu1 }
 0x64e   :  { %v4065_v33 = vadd.f32 %v4017_v58, %v3947_v43  ;;  %v4067_v6 = vadd.f32 %v4058_v3, %v3949_v57  ;;  %v4019_v38 = vpop.f32.mrb[125].mxu0  ;;  %v4060_v13 = vpop.f32.mrb[125].mxu1 }
 0x64f   :  { %v4066_v11 = vadd.f32 %v4019_v38, %v3948_v44  ;;  %v4068_v35 = vadd.f32 %v4060_v13, %v3950_v41  ;;  %v4021_v15 = vpop.f32.mrb[126].mxu0  ;;  %v4062_v29 = vpop.f32.mrb[126].mxu1 }
 0x650   :  { %v4022_v55 = vpop.f32.mrb[127].mxu0  ;;  %v4063_v0 = vpop.f32.mrb[127].mxu1 }
 0x655   :  { %v4135_v59 = vpop.f32.mrb[128].mxu0  ;;  %v4176_v32 = vpop.f32.mrb[128].mxu1 }
 0x656   :  { %v4183_v10 = vadd.f32 %v4135_v59, %v4065_v33  ;;  %v4185_v63 = vadd.f32 %v4176_v32, %v4067_v6  ;;  %v4137_v2 = vpop.f32.mrb[129].mxu0  ;;  %v4178_v9 = vpop.f32.mrb[129].mxu1 }
 0x657   :  { %v4184_v31 = vadd.f32 %v4137_v2, %v4066_v11  ;;  %v4186_v7 = vadd.f32 %v4178_v9, %v4068_v35  ;;  %v4139_v37 = vpop.f32.mrb[130].mxu0  ;;  %v4180_v24 = vpop.f32.mrb[130].mxu1 }
 0x658   :  { %v4140_v43 = vpop.f32.mrb[131].mxu0  ;;  %v4181_v57 = vpop.f32.mrb[131].mxu1 }
 0x65d   :  { %v4253_v58 = vpop.f32.mrb[132].mxu0  ;;  %v4294_v3 = vpop.f32.mrb[132].mxu1 }
 0x65e   :  { %v4301_v44 = vadd.f32 %v4253_v58, %v4183_v10  ;;  %v4303_v41 = vadd.f32 %v4294_v3, %v4185_v63  ;;  %v4255_v38 = vpop.f32.mrb[133].mxu0  ;;  %v4296_v13 = vpop.f32.mrb[133].mxu1 }
 0x65f   :  { %v4302_v15 = vadd.f32 %v4255_v38, %v4184_v31  ;;  %v4304_v29 = vadd.f32 %v4296_v13, %v4186_v7  ;;  %v4257_v55 = vpop.f32.mrb[134].mxu0  ;;  %v4298_v0 = vpop.f32.mrb[134].mxu1 }
 0x660   :  { %v4258_v33 = vpop.f32.mrb[135].mxu0  ;;  %v4299_v6 = vpop.f32.mrb[135].mxu1 }
 0x665   :  { %v4371_v59 = vpop.f32.mrb[136].mxu0  ;;  %v4412_v32 = vpop.f32.mrb[136].mxu1 }
 0x666   :  { %v4419_v11 = vadd.f32 %v4371_v59, %v4301_v44  ;;  %v4421_v35 = vadd.f32 %v4412_v32, %v4303_v41  ;;  %v4373_v2 = vpop.f32.mrb[137].mxu0  ;;  %v4414_v9 = vpop.f32.mrb[137].mxu1 }
 0x667   :  { %v4420_v37 = vadd.f32 %v4373_v2, %v4302_v15  ;;  %v4422_v24 = vadd.f32 %v4414_v9, %v4304_v29  ;;  %v4375_v43 = vpop.f32.mrb[138].mxu0  ;;  %v4416_v57 = vpop.f32.mrb[138].mxu1  ;;  %v9069_v9 = vld [vmem:[#allocation31_spill] sm:$0xff] }
 0x668   :  { %v4376_v10 = vpop.f32.mrb[139].mxu0  ;;  %v4417_v63 = vpop.f32.mrb[139].mxu1  ;;  %v9071_v57 = vld [vmem:[#allocation27_spill] sm:$0xff] }
 0x669   :  { %v9072_v63 = vld [vmem:[#allocation30_spill] sm:$0xff] }
 0x66d   :  { %v4489_v58 = vpop.f32.mrb[140].mxu0  ;;  %v4530_v3 = vpop.f32.mrb[140].mxu1 }
 0x66e   :  { %v4537_v31 = vadd.f32 %v4489_v58, %v4419_v11  ;;  %v4539_v7 = vadd.f32 %v4530_v3, %v4421_v35  ;;  %v4491_v38 = vpop.f32.mrb[141].mxu0  ;;  %v4532_v13 = vpop.f32.mrb[141].mxu1  ;;  %v9073_v3 = vld [vmem:[#allocation28_spill] sm:$0xff] }
 0x66f   :  { %v4538_v55 = vadd.f32 %v4491_v38, %v4420_v37  ;;  %v4540_v0 = vadd.f32 %v4532_v13, %v4422_v24  ;;  %v4493_v33 = vpop.f32.mrb[142].mxu0  ;;  %v4534_v6 = vpop.f32.mrb[142].mxu1  ;;  %v9070_v24 = vld [vmem:[#allocation26_spill] sm:$0xff]  ;;  %v9074_v38 = vld [vmem:[#allocation29_spill] sm:$0xff] }
 0x670   :  { %v4541_v44 = vadd.f32 %v4537_v31, %v7797_v4  ;;  %v4543_v41 = vadd.f32 %v4539_v7, %v7797_v4  ;;  %v4494_v15 = vpop.f32.mrb[143].mxu0  ;;  %v4535_v29 = vpop.f32.mrb[143].mxu1 }
 0x671   :  { %v4542_v59 = vadd.f32 %v4538_v55, %v7797_v4  ;;  %v4544_v32 = vadd.f32 %v4540_v0, %v7797_v4 }
 0x672   :  { %v4545_v2 = vadd.f32 %v4541_v44, %v7832_v5  ;;  %v4547_v11 = vadd.f32 %v4543_v41, %v7843_v12 }
 0x673   :  { %v4546_v35 = vadd.f32 %v4542_v59, %v7836_v14  ;;  %v4548_v37 = vadd.f32 %v4544_v32, %v9069_v9 }
 0x674   :  { %v4549_v43 = vadd.f32 %v4545_v2, %v9070_v24  ;;  %v4551_v31 = vadd.f32 %v4547_v11, %v9073_v3 }
 0x675   :  { %v4550_v10 = vadd.f32 %v4546_v35, %v9071_v57  ;;  %v4552_v5 = vadd.f32 %v4548_v37, %v9074_v38 }
 0x676   :  { %v8383_v58 = vmul.f32 %v4549_v43, %v9072_v63  ;;  %v8395_v14 = vmul.f32 %v4551_v31, %v9072_v63 }
 0x677   :  { %v8387_v7 = vmul.f32 %v4550_v10, %v9072_v63  ;;  %v8398_v12 = vmul.f32 %v4552_v5, %v9072_v63 }
 0x678   :  { %4561 = vrot.lane.b32.xlu1 %v8383_v58, %s6957_s28 }
 0x679   :  { %4563 = vrot.lane.b32.xlu0 %v8387_v7, %s6957_s28  ;;  %9075 = vst [vmem:[#allocation13_spill] sm:$0xff] %v8398_v12 }
 0x67c   :  { %4565 = vrot.lane.b32.xlu1 %v8395_v14, %s6957_s28 }
 0x67d   :  { %4567 = vrot.lane.b32.xlu0 %v8398_v12, %s6957_s28 }
 0x680   :  { %4769 = vrot.lane.b32.xlu1 %v8383_v58, %s6959_s10 }
 0x681   :  { %4771 = vrot.lane.b32.xlu0 %v8387_v7, %s6959_s10 }
 0x684   :  { %4773 = vrot.lane.b32.xlu1 %v8395_v14, %s6959_s10 }
 0x685   :  { %4775 = vrot.lane.b32.xlu0 %v8398_v12, %s6959_s10 }
 0x688   :  { %4887 = vrot.lane.b32.xlu1 %v8383_v58, %s6960_s11 }
 0x689   :  { %4889 = vrot.lane.b32.xlu0 %v8387_v7, %s6960_s11 }
 0x68c   :  { %4891 = vrot.lane.b32.xlu1 %v8395_v14, %s6960_s11 }
 0x68d   :  { %4893 = vrot.lane.b32.xlu0 %v8398_v12, %s6960_s11 }
 0x690   :  { %5005 = vrot.lane.b32.xlu1 %v8383_v58, %s6961_s12 }
 0x691   :  { %5007 = vrot.lane.b32.xlu0 %v8387_v7, %s6961_s12 }
 0x694   :  { %5009 = vrot.lane.b32.xlu1 %v8395_v14, %s6961_s12 }
 0x695   :  { %5011 = vrot.lane.b32.xlu0 %v8398_v12, %s6961_s12 }
 0x698   :  { %5123 = vrot.lane.b32.xlu1 %v8383_v58, %s6962_s13 }
 0x699   :  { %5125 = vrot.lane.b32.xlu0 %v8387_v7, %s6962_s13 }
 0x69c   :  { %5127 = vrot.lane.b32.xlu1 %v8395_v14, %s6962_s13 }
 0x69d   :  { %5129 = vrot.lane.b32.xlu0 %v8398_v12, %s6962_s13 }
 0x6a0   :  { %5241 = vrot.lane.b32.xlu1 %v8383_v58, %s6963_s14 }
 0x6a1   :  { %5243 = vrot.lane.b32.xlu0 %v8387_v7, %s6963_s14 }
 0x6a4   :  { %5245 = vrot.lane.b32.xlu1 %v8395_v14, %s6963_s14 }
 0x6a5   :  { %5247 = vrot.lane.b32.xlu0 %v8398_v12, %s6963_s14 }
 0x6a8   :  { %5359 = vrot.lane.b32.xlu1 %v8383_v58, %s6964_s15 }
 0x6a9   :  { %5361 = vrot.lane.b32.xlu0 %v8387_v7, %s6964_s15 }
 0x6ac   :  { %5363 = vrot.lane.b32.xlu1 %v8395_v14, %s6964_s15 }
 0x6ad   :  { %5365 = vrot.lane.b32.xlu0 %v8398_v12, %s6964_s15 }
 0x6b0   :  { %5477 = vrot.lane.b32.xlu1 %v8383_v58, %s6965_s16 }
 0x6b1   :  { %5479 = vrot.lane.b32.xlu0 %v8387_v7, %s6965_s16 }
 0x6b4   :  { %5481 = vrot.lane.b32.xlu1 %v8395_v14, %s6965_s16 }
 0x6b5   :  { %5483 = vrot.lane.b32.xlu0 %v8398_v12, %s6965_s16 }
 0x6ea   :  { %v4562_v13 = vpop.permute.xlu1 %4561 }
 0x6eb   :  { %v4564_v55 = vpop.permute.xlu0 %4563 }
 0x6ec   :  { %v4571_v0 = vsel %vm131_vm0, %v4562_v13, %v4564_v55 }
 0x6ed   :  { %v4574_v33 = vmul.f32 %v4571_v0, %v7115_v17 }
 0x6ee   :  { %v4566_v6 = vpop.permute.xlu1 %4565 }
 0x6ef   :  { %v4578_v44 = vpack.c.bf16 %v4574_v33, %v4574_v33  ;;  %v4570_v41 = vsel %vm131_vm0, %v4564_v55, %v4566_v6  ;;  %v4568_v15 = vpop.permute.xlu0 %4567  ;;  %v4559_v55 = vpack.c.bf16 %v8395_v14, %v8395_v14 }
 0x6f0   :  { %v4575_v29 = vmul.f32 %v4570_v41, %v7124_v20  ;;  %v4569_v59 = vsel %vm131_vm0, %v4566_v6, %v4568_v15  ;;  %v4572_v32 = vsel %vm131_vm0, %v4568_v15, %v4562_v13  ;;  %v4557_v13 = vpack.c.bf16 %v8383_v58, %v8383_v58 }
 0x6f1   :  { %v4573_v2 = vmul.f32 %v4572_v32, %v7121_v19  ;;  %v4576_v11 = vmul.f32 %v4569_v59, %v7118_v18  ;;  %6842 = vmatprep.subr.msk.bf16.mxu0 %vm169_vm1, %v4578_v44  ;;  %v4558_v6 = vpack.c.bf16 %v8387_v7, %v8387_v7  ;;  %v4560_v44 = vpack.c.bf16 %v8398_v12, %v8398_v12 }
 0x6f2   :  { %v4579_v35 = vpack.c.bf16 %v4575_v29, %v4575_v29  ;;  %v4770_v9 = vpop.permute.xlu1 %4769 }
 0x6f3   :  { %v4577_v37 = vpack.c.bf16 %v4573_v2, %v4573_v2  ;;  %v4580_v43 = vpack.c.bf16 %v4576_v11, %v4576_v11  ;;  %v4772_v10 = vpop.permute.xlu0 %4771  ;;  %v4682_v11 = vsel %vm169_vm1, %v4559_v55, 0 }
 0x6f4   :  { %v4779_v31 = vsel %vm369_vm2, %v4770_v9, %v4772_v10  ;;  %v4588_v5 = vsel %vm169_vm1, %v4579_v35, 0 }
 0x6f5   :  { %v4782_v0 = vmul.f32 %v4779_v31, %v7128_v23  ;;  %6844 = vmatprep.subr.msk.bf16.mxu1 %vm169_vm1, %v4580_v43  ;;  %v4582_v33 = vsel %vm169_vm1, %v4577_v37, 0  ;;  %v4676_v31 = vsel %vm169_vm1, %v4557_v13, 0 }
 0x6f6   :  { %4594 = vmatpush1.bf16.msra.mxu0 %v4582_v33  ;;  %4635 = vmatpush1.bf16.msra.mxu1 %v4588_v5  ;;  %v4774_v41 = vpop.permute.xlu1 %4773 }
 0x6f7   :  { %v4778_v15 = vsel %vm369_vm2, %v4772_v10, %v4774_v41  ;;  %v4776_v29 = vpop.permute.xlu0 %4775  ;;  %6846 = vmatprep.subr.msk.bf16.mxu0 %vm169_vm1, %v4558_v6  ;;  %6848 = vmatprep.subr.msk.bf16.mxu1 %vm169_vm1, %v4560_v44  ;;  %v4786_v59 = vpack.c.bf16 %v4782_v0, %v4782_v0  ;;  %v9076_v10 = vld [vmem:[#allocation6_spill] sm:$0xff] }
 0x6f8   :  { %v4777_v32 = vsel %vm369_vm2, %v4774_v41, %v4776_v29  ;;  %v4780_v2 = vsel %vm369_vm2, %v4776_v29, %v4770_v9  ;;  %v4783_v35 = vmul.f32 %v4778_v15, %v7172_v51 }
 0x6f9   :  { %v4781_v37 = vmul.f32 %v4780_v2, %v7158_v45  ;;  %v4784_v43 = vmul.f32 %v4777_v32, %v7161_v46  ;;  %6843 = vmatmul.mubr.msk.bf16.vlgmr.msra.gmra.mrb[144].mxu0 %vm165_vm3, %v9076_v10  ;;  %6845 = vmatmul.mubr.msk.bf16.vlgmr.msra.gmra.mrb[144].mxu1 %vm165_vm3, %v9076_v10 }
 0x6fa   :  { %4729 = vmatpush1.bf16.msra.mxu1 %v4682_v11  ;;  %v4888_v5 = vpop.permute.xlu1 %4887  ;;  %4688 = vmatpush1.bf16.msra.mxu0 %v4676_v31  ;;  %v4787_v33 = vpack.c.bf16 %v4783_v35, %v4783_v35 }
 0x6fb   :  { %v4788_v9 = vpack.c.bf16 %v4784_v43, %v4784_v43  ;;  %v4890_v0 = vpop.permute.xlu0 %4889  ;;  %6850 = vmatprep.subr.msk.bf16.mxu0 %vm169_vm1, %v4786_v59  ;;  %4719 = vmatprep.mubr.bf16.mxu0 %v9039_v54  ;;  %v4785_v6 = vpack.c.bf16 %v4781_v37, %v4781_v37  ;;  %v9077_v37 = vld [vmem:[#allocation7_spill] sm:$0xff] }
 0x6fc   :  { %v4897_v55 = vsel %vm512_vm4, %v4888_v5, %v4890_v0  ;;  %4760 = vmatprep.mubr.bf16.mxu1 %v9039_v54  ;;  %v4796_v10 = vsel %vm169_vm1, %v4787_v33, 0 }
 0x6fd   :  { %v4900_v44 = vmul.f32 %v4897_v55, %v7179_v56  ;;  %6852 = vmatprep.subr.msk.bf16.mxu1 %vm169_vm1, %v4788_v9  ;;  %v4790_v43 = vsel %vm169_vm1, %v4785_v6, 0 }
 0x6fe   :  { %v4892_v13 = vpop.permute.xlu1 %4891 }
 0x6ff   :  { %v4904_v41 = vpack.c.bf16 %v4900_v44, %v4900_v44  ;;  %v4896_v15 = vsel %vm512_vm4, %v4890_v0, %v4892_v13  ;;  %v4894_v29 = vpop.permute.xlu0 %4893 }
 0x700   :  { %v4901_v59 = vmul.f32 %v4896_v15, %v7214_v21  ;;  %v4895_v32 = vsel %vm512_vm4, %v4892_v13, %v4894_v29  ;;  %v4898_v2 = vsel %vm512_vm4, %v4894_v29, %v4888_v5 }
 0x701   :  { %v4899_v11 = vmul.f32 %v4898_v2, %v7211_v16  ;;  %v4902_v35 = vmul.f32 %v4895_v32, %v7217_v22  ;;  %6847 = vmatmul.mubr.msk.bf16.vlgmr.msra.gmra.mrb[148].mxu0 %vm165_vm3, %v9077_v37  ;;  %6849 = vmatmul.mubr.msk.bf16.vlgmr.msra.gmra.mrb[148].mxu1 %vm165_vm3, %v9077_v37  ;;  %v9078_v37 = vld [vmem:[#allocation8_spill] sm:$0xff] }
 0x702   :  { %4802 = vmatpush1.bf16.msra.mxu0 %v4790_v43  ;;  %4843 = vmatpush1.bf16.msra.mxu1 %v4796_v10  ;;  %v5006_v31 = vpop.permute.xlu1 %5005  ;;  %v4905_v0 = vpack.c.bf16 %v4901_v59, %v4901_v59 }
 0x703   :  { %v4906_v9 = vpack.c.bf16 %v4902_v35, %v4902_v35  ;;  %6854 = vmatprep.subr.msk.bf16.mxu0 %vm169_vm1, %v4904_v41  ;;  %v5008_v5 = vpop.permute.xlu0 %5007  ;;  %4833 = vmatprep.mubr.bf16.mxu0 %v9039_v54  ;;  %v4903_v44 = vpack.c.bf16 %v4899_v11, %v4899_v11 }
 0x704   :  { %v5015_v55 = vsel %vm655_vm5, %v5006_v31, %v5008_v5  ;;  %4874 = vmatprep.mubr.bf16.mxu1 %v9039_v54  ;;  %v4914_v32 = vsel %vm169_vm1, %v4905_v0, 0 }
 0x705   :  { %v5018_v6 = vmul.f32 %v5015_v55, %v7222_v28  ;;  %6856 = vmatprep.subr.msk.bf16.mxu1 %vm169_vm1, %v4906_v9  ;;  %v4908_v43 = vsel %vm169_vm1, %v4903_v44, 0 }
 0x706   :  { %v5010_v33 = vpop.permute.xlu1 %5009 }
 0x707   :  { %v5022_v13 = vpack.c.bf16 %v5018_v6, %v5018_v6  ;;  %v5014_v15 = vsel %vm655_vm5, %v5008_v5, %v5010_v33  ;;  %v5012_v41 = vpop.permute.xlu0 %5011 }
 0x708   :  { %v5013_v29 = vsel %vm655_vm5, %v5010_v33, %v5012_v41  ;;  %v5016_v59 = vsel %vm655_vm5, %v5012_v41, %v5006_v31  ;;  %v5019_v2 = vmul.f32 %v5014_v15, %v7254_v49 }
 0x709   :  { %v5017_v11 = vmul.f32 %v5016_v59, %v7251_v48  ;;  %v5020_v35 = vmul.f32 %v5013_v29, %v7257_v50  ;;  %6851 = vmatmul.mubr.msk.bf16.vlgmr.msra.gmra.mrb[152].mxu0 %vm165_vm3, %v9078_v37  ;;  %6853 = vmatmul.mubr.msk.bf16.vlgmr.msra.gmra.mrb[152].mxu1 %vm165_vm3, %v9078_v37 }
 0x70a   :  { %4920 = vmatpush1.bf16.msra.mxu0 %v4908_v43  ;;  %4961 = vmatpush1.bf16.msra.mxu1 %v4914_v32  ;;  %v5124_v10 = vpop.permute.xlu1 %5123  ;;  %v5023_v5 = vpack.c.bf16 %v5019_v2, %v5019_v2  ;;  %v9079_v2 = vld [vmem:[#allocation9_spill] sm:$0xff] }
 0x70b   :  { %v5024_v31 = vpack.c.bf16 %v5020_v35, %v5020_v35  ;;  %6858 = vmatprep.subr.msk.bf16.mxu0 %vm169_vm1, %v5022_v13  ;;  %v5126_v9 = vpop.permute.xlu0 %5125  ;;  %4951 = vmatprep.mubr.bf16.mxu0 %v9039_v54  ;;  %v5021_v0 = vpack.c.bf16 %v5017_v11, %v5017_v11 }
 0x70c   :  { %4992 = vmatprep.mubr.bf16.mxu1 %v9039_v54  ;;  %v5133_v55 = vsel %vm798_vm6, %v5124_v10, %v5126_v9  ;;  %v5032_v35 = vsel %vm169_vm1, %v5023_v5, 0 }
 0x70d   :  { %6860 = vmatprep.subr.msk.bf16.mxu1 %vm169_vm1, %v5024_v31  ;;  %v5135_v15 = vmul.f32 %v5133_v55, %v7279_v1  ;;  %v5026_v11 = vsel %vm169_vm1, %v5021_v0, 0 }
 0x70e   :  { %v5128_v6 = vpop.permute.xlu1 %5127 }
 0x70f   :  { %v5132_v44 = vsel %vm798_vm6, %v5126_v9, %v5128_v6  ;;  %v5130_v33 = vpop.permute.xlu0 %5129  ;;  %v5139_v9 = vpack.c.bf16 %v5135_v15, %v5135_v15 }
 0x710   :  { %v5136_v13 = vmul.f32 %v5132_v44, %v7296_v26  ;;  %v5131_v41 = vsel %vm798_vm6, %v5128_v6, %v5130_v33  ;;  %v5134_v29 = vsel %vm798_vm6, %v5130_v33, %v5124_v10 }
 0x711   :  { %v5137_v59 = vmul.f32 %v5131_v41, %v7299_v27  ;;  %v5138_v32 = vmul.f32 %v5134_v29, %v7293_v25  ;;  %6855 = vmatmul.mubr.msk.bf16.vlgmr.msra.gmra.mrb[156].mxu0 %vm165_vm3, %v9079_v2  ;;  %6857 = vmatmul.mubr.msk.bf16.vlgmr.msra.gmra.mrb[156].mxu1 %vm165_vm3, %v9079_v2  ;;  %v5144_v41 = vsel %vm169_vm1, %v5139_v9, 0  ;;  %v9080_v2 = vld [vmem:[#allocation10_spill] sm:$0xff] }
 0x712   :  { %v5140_v37 = vpack.c.bf16 %v5136_v13, %v5136_v13  ;;  %5038 = vmatpush1.bf16.msra.mxu0 %v5026_v11  ;;  %5079 = vmatpush1.bf16.msra.mxu1 %v5032_v35  ;;  %v5242_v43 = vpop.permute.xlu1 %5241 }
 0x713   :  { %v5142_v31 = vpack.c.bf16 %v5138_v32, %v5138_v32  ;;  %v5244_v10 = vpop.permute.xlu0 %5243  ;;  %5069 = vmatprep.mubr.bf16.mxu0 %v9039_v54  ;;  %5110 = vmatprep.mubr.bf16.mxu1 %v9039_v54  ;;  %v5141_v55 = vpack.c.bf16 %v5137_v59, %v5137_v59 }
 0x714   :  { %6862 = vmatprep.subr.msk.bf16.mxu0 %vm169_vm1, %v5140_v37  ;;  %v5251_v0 = vsel %vm941_vm7, %v5242_v43, %v5244_v10 }
 0x715   :  { %6864 = vmatprep.subr.msk.bf16.mxu1 %vm169_vm1, %v5142_v31  ;;  %v5253_v29 = vmul.f32 %v5251_v0, %v7325_v47  ;;  %v5150_v11 = vsel %vm169_vm1, %v5141_v55, 0 }
 0x716   :  { %v5246_v5 = vpop.permute.xlu1 %5245 }
 0x717   :  { %v5250_v6 = vsel %vm941_vm7, %v5244_v10, %v5246_v5  ;;  %v5248_v44 = vpop.permute.xlu0 %5247  ;;  %v5257_v10 = vpack.c.bf16 %v5253_v29, %v5253_v29 }
 0x718   :  { %v5254_v33 = vmul.f32 %v5250_v6, %v7339_v61  ;;  %v5249_v13 = vsel %vm941_vm7, %v5246_v5, %v5248_v44  ;;  %v5252_v15 = vsel %vm941_vm7, %v5248_v44, %v5242_v43 }
 0x719   :  { %v5255_v59 = vmul.f32 %v5249_v13, %v7342_v62  ;;  %v5256_v32 = vmul.f32 %v5252_v15, %v7336_v60  ;;  %6859 = vmatmul.mubr.msk.bf16.vlgmr.msra.gmra.mrb[160].mxu0 %vm165_vm3, %v9080_v2  ;;  %6861 = vmatmul.mubr.msk.bf16.vlgmr.msra.gmra.mrb[160].mxu1 %vm165_vm3, %v9080_v2 }
 0x71a   :  { %v5258_v35 = vpack.c.bf16 %v5254_v33, %v5254_v33  ;;  %5156 = vmatpush1.bf16.msra.mxu0 %v5144_v41  ;;  %5197 = vmatpush1.bf16.msra.mxu1 %v5150_v11  ;;  %v5360_v37 = vpop.permute.xlu1 %5359 }
 0x71b   :  { %v5260_v43 = vpack.c.bf16 %v5256_v32, %v5256_v32  ;;  %v5362_v31 = vpop.permute.xlu0 %5361  ;;  %5187 = vmatprep.mubr.bf16.mxu0 %v9039_v54  ;;  %5228 = vmatprep.mubr.bf16.mxu1 %v9039_v54  ;;  %v5259_v9 = vpack.c.bf16 %v5255_v59, %v5255_v59  ;;  %v9081_v59 = vld [vmem:[#allocation11_spill] sm:$0xff]  ;;  %v5262_v32 = vsel %vm169_vm1, %v5257_v10, 0 }
 0x71c   :  { %6866 = vmatprep.subr.msk.bf16.mxu0 %vm169_vm1, %v5258_v35  ;;  %v5369_v0 = vsel %vm1084_vm8, %v5360_v37, %v5362_v31 }
 0x71d   :  { %6868 = vmatprep.subr.msk.bf16.mxu1 %vm169_vm1, %v5260_v43  ;;  %v5371_v44 = vmul.f32 %v5369_v0, %v7368_v34  ;;  %v5268_v2 = vsel %vm169_vm1, %v5259_v9, 0 }
 0x71e   :  { %v5364_v55 = vpop.permute.xlu1 %5363 }
 0x71f   :  { %v5368_v5 = vsel %vm1084_vm8, %v5362_v31, %v5364_v55  ;;  %v5366_v6 = vpop.permute.xlu0 %5365  ;;  %v5375_v31 = vpack.c.bf16 %v5371_v44, %v5371_v44 }
 0x720   :  { %v5372_v33 = vmul.f32 %v5368_v5, %v7382_v52  ;;  %v5367_v13 = vsel %vm1084_vm8, %v5364_v55, %v5366_v6  ;;  %v5370_v15 = vsel %vm1084_vm8, %v5366_v6, %v5360_v37 }
 0x721   :  { %v5373_v41 = vmul.f32 %v5367_v13, %v7385_v53  ;;  %v5374_v29 = vmul.f32 %v5370_v15, %v7379_v42  ;;  %6863 = vmatmul.mubr.msk.bf16.vlgmr.msra.gmra.mrb[164].mxu0 %vm165_vm3, %v9081_v59  ;;  %6865 = vmatmul.mubr.msk.bf16.vlgmr.msra.gmra.mrb[164].mxu1 %vm165_vm3, %v9081_v59  ;;  %v5380_v13 = vsel %vm169_vm1, %v5375_v31, 0  ;;  %v9082_v59 = vld [vmem:[#allocation12_spill] sm:$0xff] }
 0x722   :  { %v5376_v11 = vpack.c.bf16 %v5372_v33, %v5372_v33  ;;  %5274 = vmatpush1.bf16.msra.mxu0 %v5262_v32  ;;  %5315 = vmatpush1.bf16.msra.mxu1 %v5268_v2  ;;  %v5478_v35 = vpop.permute.xlu1 %5477 }
 0x723   :  { %v5378_v43 = vpack.c.bf16 %v5374_v29, %v5374_v29  ;;  %v5480_v37 = vpop.permute.xlu0 %5479  ;;  %5305 = vmatprep.mubr.bf16.mxu0 %v9039_v54  ;;  %5346 = vmatprep.mubr.bf16.mxu1 %v9039_v54  ;;  %v5377_v0 = vpack.c.bf16 %v5373_v41, %v5373_v41 }
 0x724   :  { %6870 = vmatprep.subr.msk.bf16.mxu0 %vm169_vm1, %v5376_v11  ;;  %v5487_v10 = vsel %vm1227_vm9, %v5478_v35, %v5480_v37 }
 0x725   :  { %6872 = vmatprep.subr.msk.bf16.mxu1 %vm169_vm1, %v5378_v43  ;;  %v5489_v15 = vmul.f32 %v5487_v10, %v7411_v30  ;;  %v5386_v32 = vsel %vm169_vm1, %v5377_v0, 0  ;;  %v9084_v10 = vld [vmem:[#allocation15_spill] sm:$0xff] }
 0x726   :  { %v5482_v9 = vpop.permute.xlu1 %5481 }
 0x727   :  { %v5486_v55 = vsel %vm1227_vm9, %v5480_v37, %v5482_v9  ;;  %v5484_v5 = vpop.permute.xlu0 %5483  ;;  %v9083_v37 = vld [vmem:[#allocation14_spill] sm:$0xff] }
 0x728   :  { %v5490_v6 = vmul.f32 %v5486_v55, %v7425_v39  ;;  %v5485_v33 = vsel %vm1227_vm9, %v5482_v9, %v5484_v5  ;;  %v5488_v44 = vsel %vm1227_vm9, %v5484_v5, %v5478_v35  ;;  %v5493_v35 = vpack.c.bf16 %v5489_v15, %v5489_v15 }
 0x729   :  { %v5491_v41 = vmul.f32 %v5485_v33, %v7428_v40  ;;  %v5492_v29 = vmul.f32 %v5488_v44, %v9055_v36  ;;  %6867 = vmatmul.mubr.msk.bf16.vlgmr.msra.gmra.mrb[168].mxu0 %vm165_vm3, %v9082_v59  ;;  %6869 = vmatmul.mubr.msk.bf16.vlgmr.msra.gmra.mrb[168].mxu1 %vm165_vm3, %v9082_v59 }
 0x72a   :  { %v5494_v2 = vpack.c.bf16 %v5490_v6, %v5490_v6  ;;  %5392 = vmatpush1.bf16.msra.mxu0 %v5380_v13  ;;  %5433 = vmatpush1.bf16.msra.mxu1 %v5386_v32  ;;  %v5498_v31 = vsel %vm169_vm1, %v5493_v35, 0 }
 0x72b   :  { %v5496_v11 = vpack.c.bf16 %v5492_v29, %v5492_v29  ;;  %5423 = vmatprep.mubr.bf16.mxu0 %v9039_v54  ;;  %5464 = vmatprep.mubr.bf16.mxu1 %v9039_v54  ;;  %v5495_v43 = vpack.c.bf16 %v5491_v41, %v5491_v41 }
 0x72c   :  { %6874 = vmatprep.subr.msk.bf16.mxu0 %vm169_vm1, %v5494_v2 }
 0x72d   :  { %6876 = vmatprep.subr.msk.bf16.mxu1 %vm169_vm1, %v5496_v11  ;;  %v5504_v0 = vsel %vm169_vm1, %v5495_v43, 0 }
 0x731   :  { %6871 = vmatmul.mubr.msk.bf16.vlgmr.msra.gmra.mrb[172].mxu0 %vm165_vm3, %v9083_v37  ;;  %6873 = vmatmul.mubr.msk.bf16.vlgmr.msra.gmra.mrb[172].mxu1 %vm165_vm3, %v9083_v37 }
 0x732   :  { %5510 = vmatpush1.bf16.msra.mxu0 %v5498_v31  ;;  %5551 = vmatpush1.bf16.msra.mxu1 %v5504_v0 }
 0x733   :  { %5541 = vmatprep.mubr.bf16.mxu0 %v9039_v54  ;;  %5582 = vmatprep.mubr.bf16.mxu1 %v9039_v54 }
 0x739   :  { %6875 = vmatmul.mubr.msk.bf16.vlgmr.msra.gmra.mrb[176].mxu0 %vm165_vm3, %v9084_v10  ;;  %6877 = vmatmul.mubr.msk.bf16.vlgmr.msra.gmra.mrb[176].mxu1 %vm165_vm3, %v9084_v10 }
 0x73a   :  { %5671 = vmatprep.mubr.bf16.mxu0 %v9039_v54  ;;  %5712 = vmatprep.mubr.bf16.mxu1 %v9039_v54 }
 0x7cc   :  { %v4627_v9 = vpop.f32.mrb[144].mxu0  ;;  %v4668_v55 = vpop.f32.mrb[144].mxu1 }
 0x7cd   :  { %v4629_v5 = vpop.f32.mrb[145].mxu0  ;;  %v4670_v6 = vpop.f32.mrb[145].mxu1 }
 0x7ce   :  { %v4631_v33 = vpop.f32.mrb[146].mxu0  ;;  %v4672_v44 = vpop.f32.mrb[146].mxu1 }
 0x7cf   :  { %v4632_v13 = vpop.f32.mrb[147].mxu0  ;;  %v4673_v15 = vpop.f32.mrb[147].mxu1 }
 0x7d4   :  { %v4721_v41 = vpop.f32.mrb[148].mxu0  ;;  %v4762_v29 = vpop.f32.mrb[148].mxu1 }
 0x7d5   :  { %v4722_v59 = vadd.f32 %v4721_v41, %v4627_v9  ;;  %v4763_v32 = vadd.f32 %v4762_v29, %v4668_v55  ;;  %v4723_v2 = vpop.f32.mrb[149].mxu0  ;;  %v4764_v11 = vpop.f32.mrb[149].mxu1 }
 0x7d6   :  { %v4724_v35 = vadd.f32 %v4723_v2, %v4629_v5  ;;  %v4765_v43 = vadd.f32 %v4764_v11, %v4670_v6  ;;  %v4725_v37 = vpop.f32.mrb[150].mxu0  ;;  %v4766_v31 = vpop.f32.mrb[150].mxu1 }
 0x7d7   :  { %v4726_v0 = vpop.f32.mrb[151].mxu0  ;;  %v4767_v10 = vpop.f32.mrb[151].mxu1 }
 0x7dc   :  { %v4835_v63 = vpop.f32.mrb[152].mxu0  ;;  %v4876_v38 = vpop.f32.mrb[152].mxu1 }
 0x7dd   :  { %v4883_v57 = vadd.f32 %v4835_v63, %v4722_v59  ;;  %v4885_v3 = vadd.f32 %v4876_v38, %v4763_v32  ;;  %v4837_v33 = vpop.f32.mrb[153].mxu0  ;;  %v4878_v44 = vpop.f32.mrb[153].mxu1 }
 0x7de   :  { %v4884_v13 = vadd.f32 %v4837_v33, %v4724_v35  ;;  %v4886_v15 = vadd.f32 %v4878_v44, %v4765_v43  ;;  %v4839_v24 = vpop.f32.mrb[154].mxu0  ;;  %v4880_v12 = vpop.f32.mrb[154].mxu1 }
 0x7df   :  { %v4840_v9 = vpop.f32.mrb[155].mxu0  ;;  %v4881_v55 = vpop.f32.mrb[155].mxu1 }
 0x7e4   :  { %v4953_v41 = vpop.f32.mrb[156].mxu0  ;;  %v4994_v29 = vpop.f32.mrb[156].mxu1 }
 0x7e5   :  { %v5001_v5 = vadd.f32 %v4953_v41, %v4883_v57  ;;  %v5003_v6 = vadd.f32 %v4994_v29, %v4885_v3  ;;  %v4955_v2 = vpop.f32.mrb[157].mxu0  ;;  %v4996_v11 = vpop.f32.mrb[157].mxu1 }
 0x7e6   :  { %v5002_v37 = vadd.f32 %v4955_v2, %v4884_v13  ;;  %v5004_v31 = vadd.f32 %v4996_v11, %v4886_v15  ;;  %v4957_v0 = vpop.f32.mrb[158].mxu0  ;;  %v4998_v10 = vpop.f32.mrb[158].mxu1 }
 0x7e7   :  { %v4958_v63 = vpop.f32.mrb[159].mxu0  ;;  %v4999_v38 = vpop.f32.mrb[159].mxu1 }
 0x7ec   :  { %v5071_v59 = vpop.f32.mrb[160].mxu0  ;;  %v5112_v32 = vpop.f32.mrb[160].mxu1 }
 0x7ed   :  { %v5119_v35 = vadd.f32 %v5071_v59, %v5001_v5  ;;  %v5121_v43 = vadd.f32 %v5112_v32, %v5003_v6  ;;  %v5073_v24 = vpop.f32.mrb[161].mxu0  ;;  %v5114_v12 = vpop.f32.mrb[161].mxu1 }
 0x7ee   :  { %v5120_v33 = vadd.f32 %v5073_v24, %v5002_v37  ;;  %v5122_v44 = vadd.f32 %v5114_v12, %v5004_v31  ;;  %v5075_v9 = vpop.f32.mrb[162].mxu0  ;;  %v5116_v55 = vpop.f32.mrb[162].mxu1 }
 0x7ef   :  { %v5076_v57 = vpop.f32.mrb[163].mxu0  ;;  %v5117_v3 = vpop.f32.mrb[163].mxu1 }
 0x7f4   :  { %v5189_v41 = vpop.f32.mrb[164].mxu0  ;;  %v5230_v29 = vpop.f32.mrb[164].mxu1 }
 0x7f5   :  { %v5237_v13 = vadd.f32 %v5189_v41, %v5119_v35  ;;  %v5239_v15 = vadd.f32 %v5230_v29, %v5121_v43  ;;  %v5191_v2 = vpop.f32.mrb[165].mxu0  ;;  %v5232_v11 = vpop.f32.mrb[165].mxu1 }
 0x7f6   :  { %v5238_v0 = vadd.f32 %v5191_v2, %v5120_v33  ;;  %v5240_v10 = vadd.f32 %v5232_v11, %v5122_v44  ;;  %v5193_v63 = vpop.f32.mrb[166].mxu0  ;;  %v5234_v38 = vpop.f32.mrb[166].mxu1 }
 0x7f7   :  { %v5194_v5 = vpop.f32.mrb[167].mxu0  ;;  %v5235_v6 = vpop.f32.mrb[167].mxu1 }
 0x7fc   :  { %v5307_v59 = vpop.f32.mrb[168].mxu0  ;;  %v5348_v32 = vpop.f32.mrb[168].mxu1 }
 0x7fd   :  { %v5355_v37 = vadd.f32 %v5307_v59, %v5237_v13  ;;  %v5357_v31 = vadd.f32 %v5348_v32, %v5239_v15  ;;  %v5309_v24 = vpop.f32.mrb[169].mxu0  ;;  %v5350_v12 = vpop.f32.mrb[169].mxu1 }
 0x7fe   :  { %v5356_v9 = vadd.f32 %v5309_v24, %v5238_v0  ;;  %v5358_v55 = vadd.f32 %v5350_v12, %v5240_v10  ;;  %v5311_v57 = vpop.f32.mrb[170].mxu0  ;;  %v5352_v3 = vpop.f32.mrb[170].mxu1 }
 0x7ff   :  { %v5312_v35 = vpop.f32.mrb[171].mxu0  ;;  %v5353_v43 = vpop.f32.mrb[171].mxu1 }
 0x804   :  { %v5425_v41 = vpop.f32.mrb[172].mxu0  ;;  %v5466_v29 = vpop.f32.mrb[172].mxu1 }
 0x805   :  { %v5473_v33 = vadd.f32 %v5425_v41, %v5355_v37  ;;  %v5475_v44 = vadd.f32 %v5466_v29, %v5357_v31  ;;  %v5427_v2 = vpop.f32.mrb[173].mxu0  ;;  %v5468_v11 = vpop.f32.mrb[173].mxu1  ;;  %v9085_v37 = vld [vmem:[#allocation16_spill] sm:$0xff] }
 0x806   :  { %v5474_v63 = vadd.f32 %v5427_v2, %v5356_v9  ;;  %v5476_v38 = vadd.f32 %v5468_v11, %v5358_v55  ;;  %v5429_v5 = vpop.f32.mrb[174].mxu0  ;;  %v5470_v6 = vpop.f32.mrb[174].mxu1 }
 0x807   :  { %v5430_v13 = vpop.f32.mrb[175].mxu0  ;;  %v5471_v15 = vpop.f32.mrb[175].mxu1 }
 0x80c   :  { %v5543_v59 = vpop.f32.mrb[176].mxu0  ;;  %v5584_v32 = vpop.f32.mrb[176].mxu1 }
 0x80d   :  { %v5591_v0 = vadd.f32 %v5543_v59, %v5473_v33  ;;  %v5593_v10 = vadd.f32 %v5584_v32, %v5475_v44  ;;  %v5545_v24 = vpop.f32.mrb[177].mxu0  ;;  %v5586_v12 = vpop.f32.mrb[177].mxu1 }
 0x80e   :  { %v5592_v57 = vadd.f32 %v5545_v24, %v5474_v63  ;;  %v5594_v3 = vadd.f32 %v5586_v12, %v5476_v38  ;;  %v5547_v35 = vpop.f32.mrb[178].mxu0  ;;  %v5588_v43 = vpop.f32.mrb[178].mxu1 }
 0x80f   :  { %v5595_v31 = vadd.f32 %v5591_v0, %v9085_v37  ;;  %v5548_v41 = vpop.f32.mrb[179].mxu0  ;;  %v5589_v29 = vpop.f32.mrb[179].mxu1  ;;  %v5597_v2 = vadd.f32 %v5593_v10, %v9085_v37 }
 0x810   :  { %v5596_v9 = vadd.f32 %v5592_v57, %v9085_v37  ;;  %v5598_v33 = vadd.f32 %v5594_v3, %v9085_v37 }
 0x811   :  { %v8656_v55 = vmax.f32 %v5595_v31, 0.0  ;;  %v8666_v44 = vmax.f32 %v5597_v2, 0.0 }
 0x812   :  { %v8659_v11 = vmax.f32 %v5596_v9, 0.0  ;;  %v8668_v63 = vmax.f32 %v5598_v33, 0.0 }
 0x813   :  { %5607 = vrot.lane.b32.xlu1 %v8656_v55, %s6957_s28  ;;  %v5605_v29 = vpack.c.bf16 %v8666_v44, %v8666_v44 }
 0x814   :  { %5609 = vrot.lane.b32.xlu0 %v8659_v11, %s6957_s28  ;;  %v5604_v2 = vpack.c.bf16 %v8659_v11, %v8659_v11  ;;  %v5606_v33 = vpack.c.bf16 %v8668_v63, %v8668_v63 }
 0x817   :  { %5611 = vrot.lane.b32.xlu1 %v8666_v44, %s6957_s28 }
 0x818   :  { %5613 = vrot.lane.b32.xlu0 %v8668_v63, %s6957_s28  ;;  %s6667_s28 = sshll.u32 %s6966_s1, 4  ;;  %s6668_s28 = int_to_ptr.vmem [resolvable:$true] %s6667_s28 }
 0x819   :  { %p6938_p1 = scmp.lt.s32.totalorder %s6668_s28, %s6668_s28 }
 0x81b   :  { %5815 = vrot.lane.b32.xlu1 %v8656_v55, %s6959_s10 }
 0x81c   :  { %5817 = vrot.lane.b32.xlu0 %v8659_v11, %s6959_s10 }
 0x81f   :  { %5819 = vrot.lane.b32.xlu1 %v8666_v44, %s6959_s10 }
 0x820   :  { %5821 = vrot.lane.b32.xlu0 %v8668_v63, %s6959_s10  ;;  %s6933_s10 = scalar_lea.vmem %s6668_s28, 512 }
 0x821   :  { %p6934_p0 = scmp.ne.s32.totalorder %s6668_s28, %s6933_s10  ;;  %p6939_p2 = scmp.lt.s32.totalorder %s6933_s10, %s6933_s10 }
 0x823   :  { %5933 = vrot.lane.b32.xlu1 %v8656_v55, %s6960_s11  ;;  %p6940_p3 = por %p6939_p2, %p6938_p1 }
 0x824   :  { %5935 = vrot.lane.b32.xlu0 %v8659_v11, %s6960_s11 }
 0x825   :  { %p6941_p4 = pnand %p6940_p3, %p6934_p0 }
 0x827   :  { %5937 = vrot.lane.b32.xlu1 %v8666_v44, %s6960_s11 }
 0x828   :  { %5939 = vrot.lane.b32.xlu0 %v8668_v63, %s6960_s11 }
 0x82b   :  { %6051 = vrot.lane.b32.xlu1 %v8656_v55, %s6961_s12 }
 0x82c   :  { %6053 = vrot.lane.b32.xlu0 %v8659_v11, %s6961_s12 }
 0x82f   :  { %6055 = vrot.lane.b32.xlu1 %v8666_v44, %s6961_s12 }
 0x830   :  { %6057 = vrot.lane.b32.xlu0 %v8668_v63, %s6961_s12 }
 0x833   :  { %6169 = vrot.lane.b32.xlu1 %v8656_v55, %s6962_s13 }
 0x834   :  { %6171 = vrot.lane.b32.xlu0 %v8659_v11, %s6962_s13 }
 0x837   :  { %6173 = vrot.lane.b32.xlu1 %v8666_v44, %s6962_s13 }
 0x838   :  { %6175 = vrot.lane.b32.xlu0 %v8668_v63, %s6962_s13 }
 0x83b   :  { %6287 = vrot.lane.b32.xlu1 %v8656_v55, %s6963_s14 }
 0x83c   :  { %6289 = vrot.lane.b32.xlu0 %v8659_v11, %s6963_s14 }
 0x83f   :  { %6291 = vrot.lane.b32.xlu1 %v8666_v44, %s6963_s14 }
 0x840   :  { %6293 = vrot.lane.b32.xlu0 %v8668_v63, %s6963_s14 }
 0x843   :  { %6405 = vrot.lane.b32.xlu1 %v8656_v55, %s6964_s15 }
 0x844   :  { %6407 = vrot.lane.b32.xlu0 %v8659_v11, %s6964_s15 }
 0x847   :  { %6409 = vrot.lane.b32.xlu1 %v8666_v44, %s6964_s15 }
 0x848   :  { %6411 = vrot.lane.b32.xlu0 %v8668_v63, %s6964_s15 }
 0x84b   :  { %6523 = vrot.lane.b32.xlu1 %v8656_v55, %s6965_s16 }
 0x84c   :  { %6525 = vrot.lane.b32.xlu0 %v8659_v11, %s6965_s16 }
 0x84f   :  { %6527 = vrot.lane.b32.xlu1 %v8666_v44, %s6965_s16 }
 0x850   :  { %6529 = vrot.lane.b32.xlu0 %v8668_v63, %s6965_s16  ;;  %v5728_v63 = vsel %vm169_vm1, %v5605_v29, 0 }
 0x885   :  { %v5608_v38 = vpop.permute.xlu1 %5607 }
 0x886   :  { %v5610_v5 = vpop.permute.xlu0 %5609 }
 0x887   :  { %v5617_v6 = vsel %vm131_vm0, %v5608_v38, %v5610_v5 }
 0x888   :  { %v5620_v13 = vmul.f32 %v5617_v6, %v7115_v17 }
 0x889   :  { %v5612_v15 = vpop.permute.xlu1 %5611 }
 0x88a   :  { %v5624_v59 = vpack.c.bf16 %v5620_v13, %v5620_v13  ;;  %v5616_v32 = vsel %vm131_vm0, %v5610_v5, %v5612_v15  ;;  %v5614_v0 = vpop.permute.xlu0 %5613 }
 0x88b   :  { %v5621_v10 = vmul.f32 %v5616_v32, %v7124_v20  ;;  %v5615_v24 = vsel %vm131_vm0, %v5612_v15, %v5614_v0  ;;  %v5618_v12 = vsel %vm131_vm0, %v5614_v0, %v5608_v38 }
 0x88c   :  { %v5619_v57 = vmul.f32 %v5618_v12, %v7121_v19  ;;  %v5622_v3 = vmul.f32 %v5615_v24, %v7118_v18  ;;  %6878 = vmatprep.subr.msk.bf16.mxu0 %vm169_vm1, %v5624_v59  ;;  %v5603_v19 = vpack.c.bf16 %v8656_v55, %v8656_v55  ;;  %v9086_v59 = vld [vmem:[#allocation17_spill] sm:$0xff] }
 0x88d   :  { %v5625_v17 = vpack.c.bf16 %v5621_v10, %v5621_v10  ;;  %v5816_v35 = vpop.permute.xlu1 %5815 }
 0x88e   :  { %v5623_v43 = vpack.c.bf16 %v5619_v57, %v5619_v57  ;;  %v5626_v37 = vpack.c.bf16 %v5622_v3, %v5622_v3  ;;  %v5818_v31 = vpop.permute.xlu0 %5817  ;;  %v5722_v32 = vsel %vm169_vm1, %v5603_v19, 0 }
 0x88f   :  { %v5825_v20 = vsel %vm369_vm2, %v5816_v35, %v5818_v31  ;;  %v5634_v41 = vsel %vm169_vm1, %v5625_v17, 0 }
 0x890   :  { %v5828_v18 = vmul.f32 %v5825_v20, %v7128_v23  ;;  %6880 = vmatprep.subr.msk.bf16.mxu1 %vm169_vm1, %v5626_v37  ;;  %v5628_v9 = vsel %vm169_vm1, %v5623_v43, 0 }
 0x891   :  { %5640 = vmatpush1.bf16.msra.mxu0 %v5628_v9  ;;  %5681 = vmatpush1.bf16.msra.mxu1 %v5634_v41  ;;  %v5820_v38 = vpop.permute.xlu1 %5819  ;;  %v9087_v41 = vld [vmem:[#allocation18_spill] sm:$0xff] }
 0x892   :  { %v5824_v44 = vsel %vm369_vm2, %v5818_v31, %v5820_v38  ;;  %v5822_v5 = vpop.permute.xlu0 %5821  ;;  %6882 = vmatprep.subr.msk.bf16.mxu0 %vm169_vm1, %v5604_v2  ;;  %6884 = vmatprep.subr.msk.bf16.mxu1 %vm169_vm1, %v5606_v33  ;;  %v5832_v23 = vpack.c.bf16 %v5828_v18, %v5828_v18 }
 0x893   :  { %v5823_v55 = vsel %vm369_vm2, %v5820_v38, %v5822_v5  ;;  %v5826_v11 = vsel %vm369_vm2, %v5822_v5, %v5816_v35  ;;  %v5829_v6 = vmul.f32 %v5824_v44, %v7172_v51 }
 0x894   :  { %v5827_v13 = vmul.f32 %v5826_v11, %v7158_v45  ;;  %v5830_v15 = vmul.f32 %v5823_v55, %v7161_v46  ;;  %6879 = vmatmul.mubr.msk.bf16.vlgmr.msra.gmra.mrb[180].mxu0 %vm165_vm3, %v9086_v59  ;;  %6881 = vmatmul.mubr.msk.bf16.vlgmr.msra.gmra.mrb[180].mxu1 %vm165_vm3, %v9086_v59 }
 0x895   :  { %5775 = vmatpush1.bf16.msra.mxu1 %v5728_v63  ;;  %v5934_v0 = vpop.permute.xlu1 %5933  ;;  %5734 = vmatpush1.bf16.msra.mxu0 %v5722_v32  ;;  %v5833_v46 = vpack.c.bf16 %v5829_v6, %v5829_v6 }
 0x896   :  { %v5834_v10 = vpack.c.bf16 %v5830_v15, %v5830_v15  ;;  %v5936_v24 = vpop.permute.xlu0 %5935  ;;  %6886 = vmatprep.subr.msk.bf16.mxu0 %vm169_vm1, %v5832_v23  ;;  %5765 = vmatprep.mubr.bf16.mxu0 %v9039_v54  ;;  %v5831_v51 = vpack.c.bf16 %v5827_v13, %v5827_v13  ;;  %v9088_v15 = vld [vmem:[#allocation19_spill] sm:$0xff] }
 0x897   :  { %v5943_v45 = vsel %vm512_vm4, %v5934_v0, %v5936_v24  ;;  %5806 = vmatprep.mubr.bf16.mxu1 %v9039_v54 }
 0x898   :  { %v5946_v12 = vmul.f32 %v5943_v45, %v7179_v56  ;;  %6888 = vmatprep.subr.msk.bf16.mxu1 %vm169_vm1, %v5834_v10  ;;  %v5836_v29 = vsel %vm169_vm1, %v5831_v51, 0 }
 0x899   :  { %v5938_v57 = vpop.permute.xlu1 %5937 }
 0x89a   :  { %v5950_v3 = vpack.c.bf16 %v5946_v12, %v5946_v12  ;;  %v5942_v17 = vsel %vm512_vm4, %v5936_v24, %v5938_v57  ;;  %v5940_v35 = vpop.permute.xlu0 %5939 }
 0x89b   :  { %v5947_v43 = vmul.f32 %v5942_v17, %v7214_v21  ;;  %v5941_v37 = vsel %vm512_vm4, %v5938_v57, %v5940_v35  ;;  %v5944_v31 = vsel %vm512_vm4, %v5940_v35, %v5934_v0  ;;  %v5842_v21 = vsel %vm169_vm1, %v5833_v46, 0 }
 0x89c   :  { %v5945_v20 = vmul.f32 %v5944_v31, %v7211_v16  ;;  %v5948_v56 = vmul.f32 %v5941_v37, %v7217_v22  ;;  %6883 = vmatmul.mubr.msk.bf16.vlgmr.msra.gmra.mrb[184].mxu0 %vm165_vm3, %v9087_v41  ;;  %6885 = vmatmul.mubr.msk.bf16.vlgmr.msra.gmra.mrb[184].mxu1 %vm165_vm3, %v9087_v41 }
 0x89d   :  { %5848 = vmatpush1.bf16.msra.mxu0 %v5836_v29  ;;  %5889 = vmatpush1.bf16.msra.mxu1 %v5842_v21  ;;  %v6052_v19 = vpop.permute.xlu1 %6051  ;;  %v5951_v16 = vpack.c.bf16 %v5947_v43, %v5947_v43  ;;  %v9089_v43 = vld [vmem:[#allocation20_spill] sm:$0xff] }
 0x89e   :  { %v5952_v18 = vpack.c.bf16 %v5948_v56, %v5948_v56  ;;  %6890 = vmatprep.subr.msk.bf16.mxu0 %vm169_vm1, %v5950_v3  ;;  %v6054_v9 = vpop.permute.xlu0 %6053  ;;  %5879 = vmatprep.mubr.bf16.mxu0 %v9039_v54  ;;  %v5949_v2 = vpack.c.bf16 %v5945_v20, %v5945_v20 }
 0x89f   :  { %v6061_v22 = vsel %vm655_vm5, %v6052_v19, %v6054_v9  ;;  %5920 = vmatprep.mubr.bf16.mxu1 %v9039_v54  ;;  %v5960_v63 = vsel %vm169_vm1, %v5951_v16, 0 }
 0x8a0   :  { %v6064_v33 = vmul.f32 %v6061_v22, %v7222_v28  ;;  %6892 = vmatprep.subr.msk.bf16.mxu1 %vm169_vm1, %v5952_v18  ;;  %v5954_v59 = vsel %vm169_vm1, %v5949_v2, 0 }
 0x8a1   :  { %v6056_v38 = vpop.permute.xlu1 %6055 }
 0x8a2   :  { %v6068_v44 = vpack.c.bf16 %v6064_v33, %v6064_v33  ;;  %v6060_v5 = vsel %vm655_vm5, %v6054_v9, %v6056_v38  ;;  %v6058_v23 = vpop.permute.xlu0 %6057 }
 0x8a3   :  { %v6059_v55 = vsel %vm655_vm5, %v6056_v38, %v6058_v23  ;;  %v6062_v11 = vsel %vm655_vm5, %v6058_v23, %v6052_v19  ;;  %v6065_v6 = vmul.f32 %v6060_v5, %v7254_v49 }
 0x8a4   :  { %v6063_v28 = vmul.f32 %v6062_v11, %v7251_v48  ;;  %v6066_v13 = vmul.f32 %v6059_v55, %v7257_v50  ;;  %6887 = vmatmul.mubr.msk.bf16.vlgmr.msra.gmra.mrb[188].mxu0 %vm165_vm3, %v9088_v15  ;;  %6889 = vmatmul.mubr.msk.bf16.vlgmr.msra.gmra.mrb[188].mxu1 %vm165_vm3, %v9088_v15 }
 0x8a5   :  { %5966 = vmatpush1.bf16.msra.mxu0 %v5954_v59  ;;  %6007 = vmatpush1.bf16.msra.mxu1 %v5960_v63  ;;  %v6170_v32 = vpop.permute.xlu1 %6169  ;;  %v6069_v48 = vpack.c.bf16 %v6065_v6, %v6065_v6 }
 0x8a6   :  { %v6070_v0 = vpack.c.bf16 %v6066_v13, %v6066_v13  ;;  %6894 = vmatprep.subr.msk.bf16.mxu0 %vm169_vm1, %v6068_v44  ;;  %v6172_v10 = vpop.permute.xlu0 %6171  ;;  %5997 = vmatprep.mubr.bf16.mxu0 %v9039_v54  ;;  %v6067_v49 = vpack.c.bf16 %v6063_v28, %v6063_v28  ;;  %v9090_v44 = vld [vmem:[#allocation21_spill] sm:$0xff] }
 0x8a7   :  { %6038 = vmatprep.mubr.bf16.mxu1 %v9039_v54  ;;  %v6179_v50 = vsel %vm798_vm6, %v6170_v32, %v6172_v10 }
 0x8a8   :  { %6896 = vmatprep.subr.msk.bf16.mxu1 %vm169_vm1, %v6070_v0  ;;  %v6181_v51 = vmul.f32 %v6179_v50, %v7279_v1  ;;  %v6072_v1 = vsel %vm169_vm1, %v6067_v49, 0 }
 0x8a9   :  { %v6174_v24 = vpop.permute.xlu1 %6173 }
 0x8aa   :  { %v6178_v45 = vsel %vm798_vm6, %v6172_v10, %v6174_v24  ;;  %v6176_v46 = vpop.permute.xlu0 %6175 }
 0x8ab   :  { %v6182_v12 = vmul.f32 %v6178_v45, %v7296_v26  ;;  %v6177_v57 = vsel %vm798_vm6, %v6174_v24, %v6176_v46  ;;  %v6180_v3 = vsel %vm798_vm6, %v6176_v46, %v6170_v32  ;;  %v6078_v26 = vsel %vm169_vm1, %v6069_v48, 0  ;;  %v9091_v48 = vld [vmem:[#allocation22_spill] sm:$0xff] }
 0x8ac   :  { %v6183_v17 = vmul.f32 %v6177_v57, %v7299_v27  ;;  %v6184_v35 = vmul.f32 %v6180_v3, %v7293_v25  ;;  %6891 = vmatmul.mubr.msk.bf16.vlgmr.msra.gmra.mrb[192].mxu0 %vm165_vm3, %v9089_v43  ;;  %6893 = vmatmul.mubr.msk.bf16.vlgmr.msra.gmra.mrb[192].mxu1 %vm165_vm3, %v9089_v43  ;;  %v6185_v25 = vpack.c.bf16 %v6181_v51, %v6181_v51 }
 0x8ad   :  { %v6186_v37 = vpack.c.bf16 %v6182_v12, %v6182_v12  ;;  %6084 = vmatpush1.bf16.msra.mxu0 %v6072_v1  ;;  %6125 = vmatpush1.bf16.msra.mxu1 %v6078_v26  ;;  %v6288_v31 = vpop.permute.xlu1 %6287 }
 0x8ae   :  { %v6188_v20 = vpack.c.bf16 %v6184_v35, %v6184_v35  ;;  %v6290_v56 = vpop.permute.xlu0 %6289  ;;  %6115 = vmatprep.mubr.bf16.mxu0 %v9039_v54  ;;  %6156 = vmatprep.mubr.bf16.mxu1 %v9039_v54  ;;  %v6187_v27 = vpack.c.bf16 %v6183_v17, %v6183_v17  ;;  %v6190_v22 = vsel %vm169_vm1, %v6185_v25, 0 }
 0x8af   :  { %6898 = vmatprep.subr.msk.bf16.mxu0 %vm169_vm1, %v6186_v37  ;;  %v6297_v41 = vsel %vm941_vm7, %v6288_v31, %v6290_v56 }
 0x8b0   :  { %6900 = vmatprep.subr.msk.bf16.mxu1 %vm169_vm1, %v6188_v20  ;;  %v6299_v2 = vmul.f32 %v6297_v41, %v7325_v47 }
 0x8b1   :  { %v6292_v29 = vpop.permute.xlu1 %6291 }
 0x8b2   :  { %v6296_v21 = vsel %vm941_vm7, %v6290_v56, %v6292_v29  ;;  %v6294_v19 = vpop.permute.xlu0 %6293  ;;  %v6303_v47 = vpack.c.bf16 %v6299_v2, %v6299_v2 }
 0x8b3   :  { %v6300_v18 = vmul.f32 %v6296_v21, %v7339_v61  ;;  %v6295_v9 = vsel %vm941_vm7, %v6292_v29, %v6294_v19  ;;  %v6298_v16 = vsel %vm941_vm7, %v6294_v19, %v6288_v31  ;;  %v6196_v61 = vsel %vm169_vm1, %v6187_v27, 0  ;;  %v9092_v31 = vld [vmem:[#allocation23_spill] sm:$0xff]  ;;  %v9094_v27 = vld [vmem:[#allocation25_spill] sm:$0xff] }
 0x8b4   :  { %v6301_v33 = vmul.f32 %v6295_v9, %v7342_v62  ;;  %v6302_v38 = vmul.f32 %v6298_v16, %v7336_v60  ;;  %6895 = vmatmul.mubr.msk.bf16.vlgmr.msra.gmra.mrb[196].mxu0 %vm165_vm3, %v9090_v44  ;;  %6897 = vmatmul.mubr.msk.bf16.vlgmr.msra.gmra.mrb[196].mxu1 %vm165_vm3, %v9090_v44 }
 0x8b5   :  { %v6304_v5 = vpack.c.bf16 %v6300_v18, %v6300_v18  ;;  %6202 = vmatpush1.bf16.msra.mxu0 %v6190_v22  ;;  %6243 = vmatpush1.bf16.msra.mxu1 %v6196_v61  ;;  %v6406_v23 = vpop.permute.xlu1 %6405 }
 0x8b6   :  { %v6306_v55 = vpack.c.bf16 %v6302_v38, %v6302_v38  ;;  %v6408_v11 = vpop.permute.xlu0 %6407  ;;  %6233 = vmatprep.mubr.bf16.mxu0 %v9039_v54  ;;  %6274 = vmatprep.mubr.bf16.mxu1 %v9039_v54  ;;  %v6305_v60 = vpack.c.bf16 %v6301_v33, %v6301_v33 }
 0x8b7   :  { %6902 = vmatprep.subr.msk.bf16.mxu0 %vm169_vm1, %v6304_v5  ;;  %v6415_v62 = vsel %vm1084_vm8, %v6406_v23, %v6408_v11 }
 0x8b8   :  { %6904 = vmatprep.subr.msk.bf16.mxu1 %vm169_vm1, %v6306_v55  ;;  %v6417_v13 = vmul.f32 %v6415_v62, %v7368_v34  ;;  %v6308_v34 = vsel %vm169_vm1, %v6303_v47, 0 }
 0x8b9   :  { %v6410_v63 = vpop.permute.xlu1 %6409 }
 0x8ba   :  { %v6414_v6 = vsel %vm1084_vm8, %v6408_v11, %v6410_v63  ;;  %v6412_v28 = vpop.permute.xlu0 %6411 }
 0x8bb   :  { %v6418_v15 = vmul.f32 %v6414_v6, %v7382_v52  ;;  %v6413_v59 = vsel %vm1084_vm8, %v6410_v63, %v6412_v28  ;;  %v6416_v32 = vsel %vm1084_vm8, %v6412_v28, %v6406_v23  ;;  %v6314_v52 = vsel %vm169_vm1, %v6305_v60, 0 }
 0x8bc   :  { %v6419_v0 = vmul.f32 %v6413_v59, %v7385_v53  ;;  %v6420_v10 = vmul.f32 %v6416_v32, %v7379_v42  ;;  %6899 = vmatmul.mubr.msk.bf16.vlgmr.msra.gmra.mrb[200].mxu0 %vm165_vm3, %v9091_v48  ;;  %6901 = vmatmul.mubr.msk.bf16.vlgmr.msra.gmra.mrb[200].mxu1 %vm165_vm3, %v9091_v48  ;;  %v6421_v42 = vpack.c.bf16 %v6417_v13, %v6417_v13 }
 0x8bd   :  { %v6422_v49 = vpack.c.bf16 %v6418_v15, %v6418_v15  ;;  %6320 = vmatpush1.bf16.msra.mxu0 %v6308_v34  ;;  %6361 = vmatpush1.bf16.msra.mxu1 %v6314_v52  ;;  %v6524_v50 = vpop.permute.xlu1 %6523 }
 0x8be   :  { %v6424_v24 = vpack.c.bf16 %v6420_v10, %v6420_v10  ;;  %v6526_v45 = vpop.permute.xlu0 %6525  ;;  %6351 = vmatprep.mubr.bf16.mxu0 %v9039_v54  ;;  %6392 = vmatprep.mubr.bf16.mxu1 %v9039_v54  ;;  %v6423_v53 = vpack.c.bf16 %v6419_v0, %v6419_v0  ;;  %v6426_v43 = vsel %vm169_vm1, %v6421_v42, 0 }
 0x8bf   :  { %6906 = vmatprep.subr.msk.bf16.mxu0 %vm169_vm1, %v6422_v49  ;;  %v6533_v46 = vsel %vm1227_vm9, %v6524_v50, %v6526_v45 }
 0x8c0   :  { %6908 = vmatprep.subr.msk.bf16.mxu1 %vm169_vm1, %v6424_v24  ;;  %v6535_v1 = vmul.f32 %v6533_v46, %v7411_v30 }
 0x8c1   :  { %v6528_v51 = vpop.permute.xlu1 %6527 }
 0x8c2   :  { %v6532_v12 = vsel %vm1227_vm9, %v6526_v45, %v6528_v51  ;;  %v6530_v57 = vpop.permute.xlu0 %6529  ;;  %v6539_v30 = vpack.c.bf16 %v6535_v1, %v6535_v1 }
 0x8c3   :  { %v6536_v3 = vmul.f32 %v6532_v12, %v7425_v39  ;;  %v6531_v17 = vsel %vm1227_vm9, %v6528_v51, %v6530_v57  ;;  %v6534_v35 = vsel %vm1227_vm9, %v6530_v57, %v6524_v50  ;;  %v6432_v39 = vsel %vm169_vm1, %v6423_v53, 0 }
 0x8c4   :  { %v6537_v26 = vmul.f32 %v6531_v17, %v7428_v40  ;;  %v6538_v37 = vmul.f32 %v6534_v35, %v9055_v36  ;;  %6903 = vmatmul.mubr.msk.bf16.vlgmr.msra.gmra.mrb[204].mxu0 %vm165_vm3, %v9092_v31  ;;  %6905 = vmatmul.mubr.msk.bf16.vlgmr.msra.gmra.mrb[204].mxu1 %vm165_vm3, %v9092_v31  ;;  %v9093_v36 = vld [vmem:[#allocation24_spill] sm:$0xff]  ;;  %v6544_v56 = vsel %vm169_vm1, %v6539_v30, 0 }
 0x8c5   :  { %v6540_v20 = vpack.c.bf16 %v6536_v3, %v6536_v3  ;;  %6438 = vmatpush1.bf16.msra.mxu0 %v6426_v43  ;;  %6479 = vmatpush1.bf16.msra.mxu1 %v6432_v39 }
 0x8c6   :  { %v6542_v8 = vpack.c.bf16 %v6538_v37, %v6538_v37  ;;  %6469 = vmatprep.mubr.bf16.mxu0 %v9039_v54  ;;  %6510 = vmatprep.mubr.bf16.mxu1 %v9039_v54  ;;  %v6541_v40 = vpack.c.bf16 %v6537_v26, %v6537_v26 }
 0x8c7   :  { %6910 = vmatprep.subr.msk.bf16.mxu0 %vm169_vm1, %v6540_v20 }
 0x8c8   :  { %6912 = vmatprep.subr.msk.bf16.mxu1 %vm169_vm1, %v6542_v8  ;;  %v6550_v25 = vsel %vm169_vm1, %v6541_v40, 0 }
 0x8cc   :  { %6907 = vmatmul.mubr.msk.bf16.vlgmr.msra.gmra.mrb[208].mxu0 %vm165_vm3, %v9093_v36  ;;  %6909 = vmatmul.mubr.msk.bf16.vlgmr.msra.gmra.mrb[208].mxu1 %vm165_vm3, %v9093_v36 }
 0x8cd   :  { %6556 = vmatpush1.bf16.msra.mxu0 %v6544_v56  ;;  %6597 = vmatpush1.bf16.msra.mxu1 %v6550_v25 }
 0x8ce   :  { %6587 = vmatprep.mubr.bf16.mxu0 %v9039_v54  ;;  %6628 = vmatprep.mubr.bf16.mxu1 %v9039_v54 }
 0x8d4   :  { %6911 = vmatmul.mubr.msk.bf16.vlgmr.msra.gmra.mrb[212].mxu0 %vm165_vm3, %v9094_v27  ;;  %6913 = vmatmul.mubr.msk.bf16.vlgmr.msra.gmra.mrb[212].mxu1 %vm165_vm3, %v9094_v27 }
 0x967   :  { %v5673_v41 = vpop.f32.mrb[180].mxu0  ;;  %v5714_v29 = vpop.f32.mrb[180].mxu1 }
 0x968   :  { %v5675_v21 = vpop.f32.mrb[181].mxu0  ;;  %v5716_v19 = vpop.f32.mrb[181].mxu1 }
 0x969   :  { %v5677_v18 = vpop.f32.mrb[182].mxu0  ;;  %v5718_v9 = vpop.f32.mrb[182].mxu1 }
 0x96a   :  { %v5678_v16 = vpop.f32.mrb[183].mxu0  ;;  %v5719_v22 = vpop.f32.mrb[183].mxu1 }
 0x96f   :  { %v5767_v2 = vpop.f32.mrb[184].mxu0  ;;  %v5808_v33 = vpop.f32.mrb[184].mxu1 }
 0x970   :  { %v5768_v38 = vadd.f32 %v5767_v2, %v5673_v41  ;;  %v5809_v44 = vadd.f32 %v5808_v33, %v5714_v29  ;;  %v5769_v61 = vpop.f32.mrb[185].mxu0  ;;  %v5810_v54 = vpop.f32.mrb[185].mxu1 }
 0x971   :  { %v5770_v5 = vadd.f32 %v5769_v61, %v5675_v21  ;;  %v5811_v23 = vadd.f32 %v5810_v54, %v5716_v19  ;;  %v5771_v55 = vpop.f32.mrb[186].mxu0  ;;  %v5812_v11 = vpop.f32.mrb[186].mxu1 }
 0x972   :  { %v5772_v47 = vpop.f32.mrb[187].mxu0  ;;  %v5813_v60 = vpop.f32.mrb[187].mxu1 }
 0x977   :  { %v5881_v62 = vpop.f32.mrb[188].mxu0  ;;  %v5922_v63 = vpop.f32.mrb[188].mxu1 }
 0x978   :  { %v5929_v6 = vadd.f32 %v5881_v62, %v5768_v38  ;;  %v5931_v28 = vadd.f32 %v5922_v63, %v5809_v44  ;;  %v5883_v13 = vpop.f32.mrb[189].mxu0  ;;  %v5924_v15 = vpop.f32.mrb[189].mxu1 }
 0x979   :  { %v5930_v59 = vadd.f32 %v5883_v13, %v5770_v5  ;;  %v5932_v32 = vadd.f32 %v5924_v15, %v5811_v23  ;;  %v5885_v0 = vpop.f32.mrb[190].mxu0  ;;  %v5926_v10 = vpop.f32.mrb[190].mxu1 }
 0x97a   :  { %v5886_v48 = vpop.f32.mrb[191].mxu0  ;;  %v5927_v34 = vpop.f32.mrb[191].mxu1 }
 0x97f   :  { %v5999_v52 = vpop.f32.mrb[192].mxu0  ;;  %v6040_v49 = vpop.f32.mrb[192].mxu1 }
 0x980   :  { %v6047_v50 = vadd.f32 %v5999_v52, %v5929_v6  ;;  %v6049_v24 = vadd.f32 %v6040_v49, %v5931_v28  ;;  %v6001_v45 = vpop.f32.mrb[193].mxu0  ;;  %v6042_v42 = vpop.f32.mrb[193].mxu1 }
 0x981   :  { %v6048_v53 = vadd.f32 %v6001_v45, %v5930_v59  ;;  %v6050_v46 = vadd.f32 %v6042_v42, %v5932_v32  ;;  %v6003_v51 = vpop.f32.mrb[194].mxu0  ;;  %v6044_v12 = vpop.f32.mrb[194].mxu1 }
 0x982   :  { %v6004_v57 = vpop.f32.mrb[195].mxu0  ;;  %v6045_v3 = vpop.f32.mrb[195].mxu1 }
 0x987   :  { %v6117_v17 = vpop.f32.mrb[196].mxu0  ;;  %v6158_v35 = vpop.f32.mrb[196].mxu1 }
 0x988   :  { %v6165_v43 = vadd.f32 %v6117_v17, %v6047_v50  ;;  %v6167_v1 = vadd.f32 %v6158_v35, %v6049_v24  ;;  %v6119_v26 = vpop.f32.mrb[197].mxu0  ;;  %v6160_v37 = vpop.f32.mrb[197].mxu1 }
 0x989   :  { %v6166_v31 = vadd.f32 %v6119_v26, %v6048_v53  ;;  %v6168_v39 = vadd.f32 %v6160_v37, %v6050_v46  ;;  %v6121_v20 = vpop.f32.mrb[198].mxu0  ;;  %v6162_v8 = vpop.f32.mrb[198].mxu1 }
 0x98a   :  { %v6122_v30 = vpop.f32.mrb[199].mxu0  ;;  %v6163_v40 = vpop.f32.mrb[199].mxu1  ;;  %v9096_v8 = vld [vmem:[#allocation26_spill] sm:$0xff] }
 0x98b   :  { %v9097_v40 = vld [vmem:[#allocation28_spill] sm:$0xff] }
 0x98f   :  { %v6235_v36 = vpop.f32.mrb[200].mxu0  ;;  %v6276_v56 = vpop.f32.mrb[200].mxu1 }
 0x990   :  { %v6283_v25 = vadd.f32 %v6235_v36, %v6165_v43  ;;  %v6285_v27 = vadd.f32 %v6276_v56, %v6167_v1  ;;  %v6237_v41 = vpop.f32.mrb[201].mxu0  ;;  %v6278_v29 = vpop.f32.mrb[201].mxu1  ;;  %v9098_v56 = vld [vmem:[#allocation27_spill] sm:$0xff] }
 0x991   :  { %v6284_v21 = vadd.f32 %v6237_v41, %v6166_v31  ;;  %v6286_v19 = vadd.f32 %v6278_v29, %v6168_v39  ;;  %v6239_v18 = vpop.f32.mrb[202].mxu0  ;;  %v6280_v9 = vpop.f32.mrb[202].mxu1  ;;  %v9095_v39 = vld [vmem:[#allocation13_spill] sm:$0xff]  ;;  %v9100_v29 = vld [vmem:[#allocation30_spill] sm:$0xff] }
 0x992   :  { %v6240_v16 = vpop.f32.mrb[203].mxu0  ;;  %v6281_v22 = vpop.f32.mrb[203].mxu1 }
 0x997   :  { %v6353_v2 = vpop.f32.mrb[204].mxu0  ;;  %v6394_v33 = vpop.f32.mrb[204].mxu1 }
 0x998   :  { %v6401_v38 = vadd.f32 %v6353_v2, %v6283_v25  ;;  %v6403_v44 = vadd.f32 %v6394_v33, %v6285_v27  ;;  %v6355_v61 = vpop.f32.mrb[205].mxu0  ;;  %v6396_v54 = vpop.f32.mrb[205].mxu1  ;;  %v9099_v27 = vld [vmem:[#allocation29_spill] sm:$0xff] }
 0x999   :  { %v6402_v5 = vadd.f32 %v6355_v61, %v6284_v21  ;;  %v6404_v23 = vadd.f32 %v6396_v54, %v6286_v19  ;;  %v6357_v55 = vpop.f32.mrb[206].mxu0  ;;  %v6398_v11 = vpop.f32.mrb[206].mxu1 }
 0x99a   :  { %v6358_v47 = vpop.f32.mrb[207].mxu0  ;;  %v6399_v60 = vpop.f32.mrb[207].mxu1 }
 0x99f   :  { %v6471_v62 = vpop.f32.mrb[208].mxu0  ;;  %v6512_v63 = vpop.f32.mrb[208].mxu1 }
 0x9a0   :  { %v6519_v6 = vadd.f32 %v6471_v62, %v6401_v38  ;;  %v6521_v28 = vadd.f32 %v6512_v63, %v6403_v44  ;;  %v6473_v13 = vpop.f32.mrb[209].mxu0  ;;  %v6514_v15 = vpop.f32.mrb[209].mxu1 }
 0x9a1   :  { %v6520_v59 = vadd.f32 %v6473_v13, %v6402_v5  ;;  %v6522_v32 = vadd.f32 %v6514_v15, %v6404_v23  ;;  %v6475_v0 = vpop.f32.mrb[210].mxu0  ;;  %v6516_v10 = vpop.f32.mrb[210].mxu1 }
 0x9a2   :  { %v6476_v48 = vpop.f32.mrb[211].mxu0  ;;  %v6517_v34 = vpop.f32.mrb[211].mxu1 }
 0x9a7   :  { %v6589_v52 = vpop.f32.mrb[212].mxu0  ;;  %v6630_v49 = vpop.f32.mrb[212].mxu1 }
 0x9a8   :  { %v6637_v50 = vadd.f32 %v6589_v52, %v6519_v6  ;;  %v6639_v24 = vadd.f32 %v6630_v49, %v6521_v28  ;;  %v6591_v45 = vpop.f32.mrb[213].mxu0  ;;  %v6632_v42 = vpop.f32.mrb[213].mxu1 }
 0x9a9   :  { %v6638_v53 = vadd.f32 %v6591_v45, %v6520_v59  ;;  %v6640_v46 = vadd.f32 %v6632_v42, %v6522_v32  ;;  %v6593_v51 = vpop.f32.mrb[214].mxu0  ;;  %v6634_v12 = vpop.f32.mrb[214].mxu1 }
 0x9aa   :  { %v6641_v57 = vadd.f32 %v6637_v50, %v7797_v4  ;;  %v6643_v3 = vadd.f32 %v6639_v24, %v7797_v4  ;;  %v6594_v17 = vpop.f32.mrb[215].mxu0  ;;  %v6635_v35 = vpop.f32.mrb[215].mxu1 }
 0x9ab   :  { %v6642_v43 = vadd.f32 %v6638_v53, %v7797_v4  ;;  %v6644_v1 = vadd.f32 %v6640_v46, %v7797_v4 }
 0x9ac   :  { %v6645_v26 = vadd.f32 %v6641_v57, %v8383_v58  ;;  %v6647_v37 = vadd.f32 %v6643_v3, %v8395_v14 }
 0x9ad   :  { %v6646_v31 = vadd.f32 %v6642_v43, %v8387_v7  ;;  %v6648_v20 = vadd.f32 %v6644_v1, %v9095_v39 }
 0x9ae   :  { %v6649_v30 = vadd.f32 %v6645_v26, %v9096_v8  ;;  %v6651_v36 = vadd.f32 %v6647_v37, %v9097_v40 }
 0x9af   :  { %v6650_v25 = vadd.f32 %v6646_v31, %v9098_v56  ;;  %v6652_v41 = vadd.f32 %v6648_v20, %v9099_v27 }
 0x9b0   :  { %v6653_v4 = vmul.f32 %v6649_v30, %v9100_v29  ;;  %v6655_v58 = vmul.f32 %v6651_v36, %v9100_v29 }
 0x9b1   :  { %v6654_v14 = vmul.f32 %v6650_v25, %v9100_v29  ;;  %v6656_v7 = vmul.f32 %v6652_v41, %v9100_v29 }
 0x9b2   :  { %6657 = vst [vmem:[#allocation3] sm:$0xff] %v6653_v4  ;;  %6659 = vst [vmem:[#allocation3 + $0x10] sm:$0xff] %v6655_v58 }
 0x9b3   :  { %6658 = vst [vmem:[#allocation3 + $0x8] sm:$0xff] %v6654_v14  ;;  %6660 = vst [vmem:[#allocation3 + $0x18] sm:$0xff] %v6656_v7 }
 0x9b4   :  { %6944 = shalt.err (!%p6941_p4)
}
 0x9b5   :  { %s6945_s13 = scalar_lea.hbm %s8957_s7, 512 }
 0x9b6   :  { %p6946_p5 = scmp.ne.s32.totalorder %s8957_s7, %s6945_s13  ;;  %p6949_p6 = scmp.lt.u32.totalorder %s6945_s13, %s8957_s7 }
 0x9b8   :  { %p6951_p7 = pnand %p6949_p6, %p6946_p5 }
 0x9ba   :  { %6954 = shalt.err (!%p6951_p7)
}
 0x9bb   :  { %6670 = dma.vmem_to_hbm [thread:$0]  %s6668_s28, 512, %s8957_s7, [#allocation4]  }
 0x9bc   :  { %6955 = dma.done.wait [#allocation4], 512  }
 0x9bd   :  { %6956 = vsyncadd [#allocation4], 4294966784 }
 0x9be   :  { %6674 = vsyncpa [#allocation4], 1 }

</bundles_post_ra>
